<compile_context>
chip_gen: v6e
topology: v6e:2x2x1
jax: 0.10.0
libtpu: 0.0.40
codegen_flags: <defaults>
</compile_context>

<pallas_src>
import numpy as np

import jax
import jax.numpy as jnp
from jax.experimental import pallas as pl
from jax.experimental.pallas import tpu as pltpu

# ----------------------------- config (opt) ---------------------------------
KERNEL_SIZE = 10          # opt.kernel_size (asserted == 10 in the reference)
D_MODEL     = 16          # opt.d_model
DCT_N       = 8           # opt.dct_n
IN_FEATURES = 12          # opt.in_features  -> node_n = 4
NODE_N      = IN_FEATURES // 3
INPUT_N     = 10          # opt.obs_frames_num
OUTPUT_N    = 10          # opt.pred_frames_num
NUM_STAGES  = 4
NUM_ENC_LAYERS = 1        # encoder_layer_num (kernel indexing assumes 1)
NUM_DEC_LAYERS = 2        # decoder_layer_num (kernel indexing assumes 2)
BATCH = 2
DTYPE = jnp.float32

assert KERNEL_SIZE == 10
assert NUM_ENC_LAYERS == 1 and NUM_DEC_LAYERS == 2

NT_E = NODE_N * DCT_N          # encoder (node, dct) flattened = 32
NT_D = NODE_N * 2 * DCT_N      # decoder (node, 2*dct) flattened = 64

# Lane-batch factor: BB batch elements per grid step (whole batch in one step
# here; on v7x use BATCH // 2 so both TensorCores get a "parallel" step).
BB = BATCH
assert BATCH % BB == 0


# --------------------------- util.get_dct_matrix ----------------------------
def get_dct_matrix(N):
    dct_m = np.eye(N)
    for k in range(N):
        for i in range(N):
            w = np.sqrt(2 / N)
            if k == 0:
                w = np.sqrt(1 / N)
            dct_m[k, i] = w * np.cos(np.pi * (i + 0.5) * k / N)
    idct_m = np.linalg.inv(dct_m)
    return dct_m, idct_m


DCT_M_NP, IDCT_M_NP = get_dct_matrix(INPUT_N + OUTPUT_N)
DCT_M = jnp.asarray(DCT_M_NP, DTYPE)
IDCT_M = jnp.asarray(IDCT_M_NP, DTYPE)

# Fold the frame-index gather (idx = range(10) + [9]*10) into the DCT matrix.
_IDX = list(range(KERNEL_SIZE)) + [KERNEL_SIZE - 1] * OUTPUT_N
_S = np.zeros((INPUT_N + OUTPUT_N, INPUT_N), np.float32)
for _row, _col in enumerate(_IDX):
    _S[_row, _col] = 1.0
DCTSEL = jnp.asarray(DCT_M_NP[:DCT_N].astype(np.float32) @ _S)     # (8, 10)


# Constant 0/1 matrices for cat((x,x),dim=T) and the [..., :dct_n] slice.
def _dup_matrix(node_n, t):
    m = np.zeros((node_n * t, node_n * 2 * t), np.float32)
    for n in range(node_n):
        for i in range(t):
            m[n * t + i, n * 2 * t + i] = 1.0
            m[n * t + i, n * 2 * t + t + i] = 1.0
    return m


def _sel_matrix(node_n, t):
    m = np.zeros((node_n * 2 * t, node_n * t), np.float32)
    for n in range(node_n):
        for i in range(t):
            m[n * 2 * t + i, n * t + i] = 1.0
    return m


DUP_NP = _dup_matrix(NODE_N, DCT_N)      # (32, 64)
SEL_NP = _sel_matrix(NODE_N, DCT_N)      # (64, 32)


# ------------------------------ Pallas kernel --------------------------------
def fused_kernel(x_ref,
                 enc_mix_ref, enc_sh_ref, enc_win_ref, blk_w_ref,
                 dec1_mix_ref, dec_mix_ref, dec_sh_ref,
                 out_mix_ref, out_w_ref, out_sh_ref,
                 o_ref):
    """All 32 graph-convolutions for BB lane-batched elements, fully unrolled.

    Activation layout: (channels, BB*node*seq).  Per gconv:
        y = x @ kron(I_BB, A^T (x) Wt * bn_scale)   (one MXU matmul)
        y = Wc @ y                                  (channel mix)
        y = y + shift                               (bias + eval BN folded)
        y = tanh(y)                                 (except gc_out)
        y = y + residual                            (2nd gconv of each block)
    DUP is folded into the first decoder gc1 mix; SEL into gc_out.
    """
    f32 = jnp.float32

    def gconv(x, m, w, sh, apply_tanh=True, res=None):
        y = jnp.dot(x, m, preferred_element_type=f32)
        y = jnp.dot(w, y, preferred_element_type=f32)
        y = y + sh
        if apply_tanh:
            y = jnp.tanh(y)
        if res is not None:
            y = y + res
        return y

    x = x_ref[...]                                # (3, BB*NT_E)
    dup = dec1_mix_ref[NUM_STAGES]                # block-diag DUP, (BB*NT_E, BB*NT_D)
    stage_outs = []
    for s in range(NUM_STAGES):
        # ----------------------- GCN encoder: gc_in + GC_Block ---------------
        h = gconv(x, enc_mix_ref[3 * s], enc_win_ref[s], enc_sh_ref[3 * s])
        r = h
        h = gconv(h, enc_mix_ref[3 * s + 1], blk_w_ref[6 * s], enc_sh_ref[3 * s + 1])
        h = gconv(h, enc_mix_ref[3 * s + 2], blk_w_ref[6 * s + 1],
                  enc_sh_ref[3 * s + 2], res=r)                  # lat, (16, BB*NT_E)
        # ----------------- decoder block 1 (DUP folded into gc1 mix) ---------
        r = jnp.dot(h, dup, preferred_element_type=f32)           # residual, off crit-path
        d = gconv(h, dec1_mix_ref[s], blk_w_ref[6 * s + 2], dec_sh_ref[4 * s])
        d = gconv(d, dec_mix_ref[3 * s], blk_w_ref[6 * s + 3],
                  dec_sh_ref[4 * s + 1], res=r)                   # (16, BB*NT_D)
        # --------------------------- decoder block 2 --------------------------
        r = d
        d = gconv(d, dec_mix_ref[3 * s + 1], blk_w_ref[6 * s + 4], dec_sh_ref[4 * s + 2])
        d = gconv(d, dec_mix_ref[3 * s + 2], blk_w_ref[6 * s + 5],
                  dec_sh_ref[4 * s + 3], res=r)
        # ------------------- gc_out (+ [..., :dct_n] via folded SEL) ---------
        x = gconv(d, out_mix_ref[s], out_w_ref[s], out_sh_ref[s], apply_tanh=False)
        stage_outs.append(x)                                      # (3, BB*NT_E)

    # single lane-dense store: 4 stages concatenated along lanes
    o_ref[...] = jnp.concatenate(stage_outs, axis=-1)             # (3, 4*BB*NT_E)


def _full_spec(arr):
    nd = arr.ndim
    return pl.BlockSpec(arr.shape, lambda *_: (0,) * nd)          # resident, fetched once


def fused_forward(packed, x0):
    """x0: (G, 3, BB*NT_E) -> (G, 3, NUM_STAGES*BB*NT_E)."""
    G, _, E = x0.shape
    weights = (packed["enc_mix"], packed["enc_sh"], packed["enc_win"], packed["blk_w"],
               packed["dec1_mix"], packed["dec_mix"], packed["dec_sh"],
               packed["out_mix"], packed["out_w"], packed["out_sh"])
    return pl.pallas_call(
        fused_kernel,
        out_shape=jax.ShapeDtypeStruct((G, 3, NUM_STAGES * E), DTYPE),
        grid=(G,),
        in_specs=[pl.BlockSpec((None, 3, E), lambda g: (g, 0, 0))]
                 + [_full_spec(w) for w in weights],
        out_specs=pl.BlockSpec((None, 3, NUM_STAGES * E), lambda g: (g, 0, 0)),
        compiler_params=pltpu.CompilerParams(dimension_semantics=("parallel",)),
    )(x0, *weights)


# ------------------------------ parameter init -------------------------------
def _uniform(key, shape, stdv):
    return jax.random.uniform(key, shape, dtype=DTYPE, minval=-stdv, maxval=stdv)


def init_gconv(key, in_c, out_c, node_n, seq_len):
    ks = jax.random.split(key, 4)
    stdv = 1.0 / np.sqrt(seq_len)
    return {
        "wt":   _uniform(ks[0], (seq_len, seq_len), stdv),       # temporal weight (T, T)
        "att":  _uniform(ks[1], (node_n, node_n), stdv),         # learned graph adjacency
        "wct":  _uniform(ks[2], (in_c, out_c), stdv).T,          # channel weight stored (out, in)
        "bias": _uniform(ks[3], (seq_len,), stdv),                # per-seq bias
        "bn_scale": jnp.ones((node_n * seq_len,), DTYPE),         # eval BN per-(node*seq), identity
        "bn_shift": jnp.zeros((node_n * seq_len,), DTYPE),
    }


def init_gc_block(key, ch, node_n, seq_len):
    k1, k2 = jax.random.split(key)
    return {"gc1": init_gconv(k1, ch, ch, node_n, seq_len),
            "gc2": init_gconv(k2, ch, ch, node_n, seq_len)}


def init_encoder(key, in_c, out_c, node_n, seq_len, num_stage):
    ks = jax.random.split(key, num_stage + 1)
    return {"gc_in": init_gconv(ks[0], in_c, out_c, node_n, seq_len),
            "blocks": [init_gc_block(ks[i + 1], out_c, node_n, seq_len)
                       for i in range(num_stage)]}


def init_decoder(key, in_c, out_c, node_n, seq_len, num_stage):
    ks = jax.random.split(key, num_stage + 1)
    return {"blocks": [init_gc_block(ks[i], in_c, node_n, seq_len)
                       for i in range(num_stage)],
            "gc_out": init_gconv(ks[num_stage], in_c, out_c, node_n, seq_len)}


# -------------------------- parameter packing (once) -------------------------
def pack_gconv_mix(p, node_n):
    """Fold one GraphConvolution into (mix, w_ch, shift).

    mix  = kron(att^T, wt) with bn_scale folded into its columns,
    shift = bn_scale * tile(bias) + bn_shift   (per node*seq column).
    """
    m = jnp.kron(p["att"].T, p["wt"])                            # exact dense (NT, NT)
    scale = p["bn_scale"]                                        # (NT,), identity at init
    m = m * scale[None, :]
    bias_tiled = jnp.tile(p["bias"], (node_n,))                  # (NT,)
    shift = scale * bias_tiled + p["bn_shift"]                   # (NT,)
    return m, p["wct"], shift


def pack_params(params, bb):
    """Fold weights, build block-diag lane-batched mixes, stack per shape class."""
    eye_bb = jnp.eye(bb, dtype=DTYPE)

    def kron_bb(m):
        return jnp.kron(eye_bb, m)

    def tile_sh(sh):
        return jnp.tile(sh, (bb,)).reshape(1, -1)

    dup = jnp.asarray(DUP_NP)                                    # (32, 64)
    sel = jnp.asarray(SEL_NP)                                    # (64, 32)

    enc_mix, enc_sh, enc_win, blk_w = [], [], [], []
    dec1_mix, dec_mix, dec_sh = [], [], []
    out_mix, out_w, out_sh = [], [], []

    for s in range(1, NUM_STAGES + 1):
        enc = params[f"enc{s}"]
        dec = params[f"dec{s}"]
        # encoder gc_in
        m, w, sh = pack_gconv_mix(enc["gc_in"], NODE_N)
        enc_mix.append(kron_bb(m)); enc_sh.append(tile_sh(sh)); enc_win.append(w)
        # encoder block (1 block x 2 gconvs)
        for blk in enc["blocks"]:
            for gname in ("gc1", "gc2"):
                m, w, sh = pack_gconv_mix(blk[gname], NODE_N)
                enc_mix.append(kron_bb(m)); enc_sh.append(tile_sh(sh)); blk_w.append(w)
        # decoder blocks (2 blocks x 2 gconvs)
        for bi, blk in enumerate(dec["blocks"]):
            for gi, gname in enumerate(("gc1", "gc2")):
                m, w, sh = pack_gconv_mix(blk[gname], NODE_N)
                if bi == 0 and gi == 0:
                    dec1_mix.append(kron_bb(dup @ m))            # DUP folded (exact)
                else:
                    dec_mix.append(kron_bb(m))
                dec_sh.append(tile_sh(sh)); blk_w.append(w)
        # decoder gc_out with [..., :dct_n] column-selection (SEL) folded (exact)
        m, w, sh = pack_gconv_mix(dec["gc_out"], NODE_N)
        out_mix.append(kron_bb(m @ sel)); out_sh.append(tile_sh(sh @ sel)); out_w.append(w)

    dec1_mix.append(kron_bb(dup))                                # index NUM_STAGES = DUP (residual)

    st = jnp.stack
    return {
        "enc_mix": st(enc_mix),    # (12, BB*32, BB*32)
        "enc_sh":  st(enc_sh),     # (12, 1, BB*32)
        "enc_win": st(enc_win),    # (4, 16, 3)
        "blk_w":   st(blk_w),      # (24, 16, 16)  [per stage: enc gc1,gc2, dec b1 gc1,gc2, b2 gc1,gc2]
        "dec1_mix": st(dec1_mix),  # (5, BB*32, BB*64)  [4 stage gc1 mixes + DUP]
        "dec_mix": st(dec_mix),    # (12, BB*64, BB*64)
        "dec_sh":  st(dec_sh),     # (16, 1, BB*64)
        "out_mix": st(out_mix),    # (4, BB*64, BB*32)
        "out_w":   st(out_w),      # (4, 3, 16)
        "out_sh":  st(out_sh),     # (4, 1, BB*32)
    }


# ------------------------------ model forward --------------------------------
def multi_stage_forward(packed, src):
    """src: (B, input_n, in_features) -> 4 outputs of (B, input_n+output_n, in_features)."""
    B = src.shape[0]
    G = B // BB
    # --- input glue (XLA): frame gather + DCT folded into one matrix, then layout ---
    t0 = jnp.einsum("ti,bif->bft", DCTSEL, src)                              # (B, F, dct_n)
    x0 = (t0.reshape(B, NODE_N, 3, DCT_N)
            .transpose(0, 2, 1, 3)
            .reshape(B, 3, NT_E))                                            # (B, 3, N*dct_n)
    # lane-batch BB elements per grid step: (G, 3, BB*NT_E)
    x0 = (x0.reshape(G, BB, 3, NT_E)
            .transpose(0, 2, 1, 3)
            .reshape(G, 3, BB * NT_E))

    # --- one fused Pallas kernel: all 4 stages, 32 graph-convolutions ---
    o = fused_forward(packed, x0)                                            # (G, 3, 4*BB*NT_E)

    # --- output glue (XLA): one batched IDCT over all 4 stage outputs ---
    stages = o.reshape(G, 3, NUM_STAGES, BB, NODE_N, DCT_N)
    stages = stages.transpose(2, 0, 3, 1, 4, 5).reshape(NUM_STAGES, B, 3, NODE_N, DCT_N)
    frames = jnp.einsum("ft,sbcnt->sbfnc", IDCT_M[:, :DCT_N], stages)        # (S, B, 20, N, 3)
    frames = frames.reshape(NUM_STAGES, B, INPUT_N + OUTPUT_N, IN_FEATURES)
    # stages[s] == output_dct_{s+1}; module returns (output_4, output_3, output_2, output_1)
    return frames[3], frames[2], frames[1], frames[0]


# ----------------------- pure-JAX reference (for checking) -------------------
def reference_forward(params, src):
    bs = src.shape[0]
    idx = np.array(list(range(KERNEL_SIZE)) + [KERNEL_SIZE - 1] * OUTPUT_N)
    input_gcn = src[:, idx]                                                  # (B, 20, F)
    d = jnp.einsum("ti,bif->btf", DCT_M[:DCT_N], input_gcn)                  # (B, dct_n, F)
    d = jnp.transpose(d, (0, 2, 1)).reshape(bs, NODE_N, 3, DCT_N).transpose(0, 2, 1, 3)

    def gconv(x, p, tanh=True, res=None):
        y = jnp.einsum("bcnt,tu->bcnu", x, p["wt"])
        y = jnp.einsum("mn,bcnt->bcmt", p["att"], y)
        y = jnp.einsum("dc,bcnt->bdnt", p["wct"], y)
        y = y + p["bias"]
        if tanh:
            y = jnp.tanh(y)
        if res is not None:
            y = y + res
        return y

    def block(x, p):
        h = gconv(x, p["gc1"])
        return gconv(h, p["gc2"], res=x)

    def encoder(x, p):
        h = gconv(x, p["gc_in"])
        for b in p["blocks"]:
            h = block(h, b)
        return h

    def decoder(x, p):
        h = x
        for b in p["blocks"]:
            h = block(h, b)
        return gconv(h, p["gc_out"], tanh=False)

    def stage(x, pe, pd):
        lat = encoder(x, pe)
        lat = jnp.concatenate([lat, lat], axis=3)
        return decoder(lat, pd)[:, :, :, :DCT_N]

    o1 = stage(d, params["enc1"], params["dec1"])
    o2 = stage(o1, params["enc2"], params["dec2"])
    o3 = stage(o2, params["enc3"], params["dec3"])
    o4 = stage(o3, params["enc4"], params["dec4"])

    def frames(o):
        od = jnp.transpose(o, (0, 2, 1, 3)).reshape(bs, -1, DCT_N)           # (B, F, dct_n)
        return jnp.einsum("ft,bgt->bfg", IDCT_M[:, :DCT_N], od)              # (B, 20, F)

    return frames(o4), frames(o3), frames(o2), frames(o1)


# ------------------------------------ main ------------------------------------
if __name__ == "__main__":
    key = jax.random.PRNGKey(0)
    k_src, k_par = jax.random.split(key)

    src = jax.random.normal(k_src, (BATCH, INPUT_N, IN_FEATURES), dtype=DTYPE)

    pk = jax.random.split(k_par, 8)
    params = {
        "enc1": init_encoder(pk[0], 3, D_MODEL, NODE_N, DCT_N, NUM_ENC_LAYERS),
        "dec1": init_decoder(pk[1], D_MODEL, 3, NODE_N, 2 * DCT_N, NUM_DEC_LAYERS),
        "enc2": init_encoder(pk[2], 3, D_MODEL, NODE_N, DCT_N, NUM_ENC_LAYERS),
        "dec2": init_decoder(pk[3], D_MODEL, 3, NODE_N, 2 * DCT_N, NUM_DEC_LAYERS),
        "enc3": init_encoder(pk[4], 3, D_MODEL, NODE_N, DCT_N, NUM_ENC_LAYERS),
        "dec3": init_decoder(pk[5], D_MODEL, 3, NODE_N, 2 * DCT_N, NUM_DEC_LAYERS),
        "enc4": init_encoder(pk[6], 3, D_MODEL, NODE_N, DCT_N, NUM_ENC_LAYERS),
        "dec4": init_decoder(pk[7], D_MODEL, 3, NODE_N, 2 * DCT_N, NUM_DEC_LAYERS),
    }
    packed = pack_params(params, BB)      # one-time weight folding (outside jit)

    fwd = jax.jit(multi_stage_forward)
    outs = jax.block_until_ready(fwd(packed, src))

    expected = (BATCH, INPUT_N + OUTPUT_N, IN_FEATURES)
    for o in outs:
        assert o.shape == expected, (o.shape, expected)
        assert bool(jnp.all(jnp.isfinite(o)))

    # correctness vs a pure-JAX translation of the same module
    ref_outs = jax.block_until_ready(jax.jit(reference_forward)(params, src))
    for a, b in zip(outs, ref_outs):
        np.testing.assert_allclose(np.asarray(a), np.asarray(b), rtol=1e-3, atol=1e-3)

    print("KERNEL_OK")
</pallas_src>

<mosaic_0001>
module attributes {stable_mosaic.version = 11 : i64} {
  func.func @fused_kernel(%arg0: i32, %arg1: memref<1x3x64xf32, #tpu.memory_space<vmem>>, %arg2: memref<12x64x64xf32, #tpu.memory_space<vmem>>, %arg3: memref<12x1x64xf32, #tpu.memory_space<vmem>>, %arg4: memref<4x16x3xf32, #tpu.memory_space<vmem>>, %arg5: memref<24x16x16xf32, #tpu.memory_space<vmem>>, %arg6: memref<5x64x128xf32, #tpu.memory_space<vmem>>, %arg7: memref<12x128x128xf32, #tpu.memory_space<vmem>>, %arg8: memref<16x1x128xf32, #tpu.memory_space<vmem>>, %arg9: memref<4x128x64xf32, #tpu.memory_space<vmem>>, %arg10: memref<4x3x16xf32, #tpu.memory_space<vmem>>, %arg11: memref<4x1x64xf32, #tpu.memory_space<vmem>>, %arg12: memref<1x3x256xf32, #tpu.memory_space<vmem>>) attributes {dimension_semantics = [#tpu.dimension_semantics<parallel>], iteration_bounds = array<i64: 1>, scalar_prefetch = 0 : i64, scratch_operands = 0 : i64, tpu.core_type = #tpu.core_type<tc>, window_params = [{transform_indices = @transform_0, window_bounds = array<i64: 1, 3, 64>}, {pipeline_mode = #tpu.pipeline_mode<synchronous>, transform_indices = @transform_1, window_bounds = array<i64: 12, 64, 64>}, {pipeline_mode = #tpu.pipeline_mode<synchronous>, transform_indices = @transform_2, window_bounds = array<i64: 12, 1, 64>}, {pipeline_mode = #tpu.pipeline_mode<synchronous>, transform_indices = @transform_3, window_bounds = array<i64: 4, 16, 3>}, {pipeline_mode = #tpu.pipeline_mode<synchronous>, transform_indices = @transform_4, window_bounds = array<i64: 24, 16, 16>}, {pipeline_mode = #tpu.pipeline_mode<synchronous>, transform_indices = @transform_5, window_bounds = array<i64: 5, 64, 128>}, {pipeline_mode = #tpu.pipeline_mode<synchronous>, transform_indices = @transform_6, window_bounds = array<i64: 12, 128, 128>}, {pipeline_mode = #tpu.pipeline_mode<synchronous>, transform_indices = @transform_7, window_bounds = array<i64: 16, 1, 128>}, {pipeline_mode = #tpu.pipeline_mode<synchronous>, transform_indices = @transform_8, window_bounds = array<i64: 4, 128, 64>}, {pipeline_mode = #tpu.pipeline_mode<synchronous>, transform_indices = @transform_9, window_bounds = array<i64: 4, 3, 16>}, {pipeline_mode = #tpu.pipeline_mode<synchronous>, transform_indices = @transform_10, window_bounds = array<i64: 4, 1, 64>}, {transform_indices = @transform_11, window_bounds = array<i64: 1, 3, 256>}]} {
    %c0 = arith.constant 0 : index
    %c0_0 = arith.constant 0 : index
    %c0_1 = arith.constant 0 : index
    %0 = vector.load %arg1[%c0, %c0_0, %c0_1] : memref<1x3x64xf32, #tpu.memory_space<vmem>>, vector<1x3x64xf32>
    %1 = vector.shape_cast %0 : vector<1x3x64xf32> to vector<3x64xf32>
    %c4 = arith.constant 4 : index
    %c0_2 = arith.constant 0 : index
    %c0_3 = arith.constant 0 : index
    %2 = vector.load %arg6[%c4, %c0_2, %c0_3] : memref<5x64x128xf32, #tpu.memory_space<vmem>>, vector<1x64x128xf32>
    %3 = vector.shape_cast %2 : vector<1x64x128xf32> to vector<64x128xf32>
    %c0_4 = arith.constant 0 : index
    %c0_5 = arith.constant 0 : index
    %c0_6 = arith.constant 0 : index
    %4 = vector.load %arg2[%c0_4, %c0_5, %c0_6] : memref<12x64x64xf32, #tpu.memory_space<vmem>>, vector<1x64x64xf32>
    %5 = vector.shape_cast %4 : vector<1x64x64xf32> to vector<64x64xf32>
    %c0_7 = arith.constant 0 : index
    %c0_8 = arith.constant 0 : index
    %c0_9 = arith.constant 0 : index
    %6 = vector.load %arg4[%c0_7, %c0_8, %c0_9] : memref<4x16x3xf32, #tpu.memory_space<vmem>>, vector<1x16x3xf32>
    %7 = vector.shape_cast %6 : vector<1x16x3xf32> to vector<16x3xf32>
    %c0_10 = arith.constant 0 : index
    %c0_11 = arith.constant 0 : index
    %c0_12 = arith.constant 0 : index
    %8 = vector.load %arg3[%c0_10, %c0_11, %c0_12] : memref<12x1x64xf32, #tpu.memory_space<vmem>>, vector<1x1x64xf32>
    %9 = vector.shape_cast %8 : vector<1x1x64xf32> to vector<1x64xf32>
    %cst = arith.constant dense<0.000000e+00> : vector<3x64xf32>
    %10 = tpu.matmul %1, %5, %cst {dimension_numbers = #tpu.dot_dimension_numbers<[1], [0], [0], [1], [0, 0, 1, 1], [], []>} : vector<3x64xf32>, vector<64x64xf32>, vector<3x64xf32> -> vector<3x64xf32>
    %cst_13 = arith.constant dense<0.000000e+00> : vector<16x64xf32>
    %11 = tpu.matmul %7, %10, %cst_13 {dimension_numbers = #tpu.dot_dimension_numbers<[1], [0], [0], [1], [0, 0, 1, 1], [], []>} : vector<16x3xf32>, vector<3x64xf32>, vector<16x64xf32> -> vector<16x64xf32>
    %12 = vector.broadcast %9 : vector<1x64xf32> to vector<16x64xf32>
    %13 = arith.addf %11, %12 : vector<16x64xf32>
    %14 = math.tanh %13 : vector<16x64xf32>
    %c1 = arith.constant 1 : index
    %c0_14 = arith.constant 0 : index
    %c0_15 = arith.constant 0 : index
    %15 = vector.load %arg2[%c1, %c0_14, %c0_15] : memref<12x64x64xf32, #tpu.memory_space<vmem>>, vector<1x64x64xf32>
    %16 = vector.shape_cast %15 : vector<1x64x64xf32> to vector<64x64xf32>
    %c0_16 = arith.constant 0 : index
    %c0_17 = arith.constant 0 : index
    %c0_18 = arith.constant 0 : index
    %17 = vector.load %arg5[%c0_16, %c0_17, %c0_18] : memref<24x16x16xf32, #tpu.memory_space<vmem>>, vector<1x16x16xf32>
    %18 = vector.shape_cast %17 : vector<1x16x16xf32> to vector<16x16xf32>
    %c1_19 = arith.constant 1 : index
    %c0_20 = arith.constant 0 : index
    %c0_21 = arith.constant 0 : index
    %19 = vector.load %arg3[%c1_19, %c0_20, %c0_21] : memref<12x1x64xf32, #tpu.memory_space<vmem>>, vector<1x1x64xf32>
    %20 = vector.shape_cast %19 : vector<1x1x64xf32> to vector<1x64xf32>
    %cst_22 = arith.constant dense<0.000000e+00> : vector<16x64xf32>
    %21 = tpu.matmul %14, %16, %cst_22 {dimension_numbers = #tpu.dot_dimension_numbers<[1], [0], [0], [1], [0, 0, 1, 1], [], []>} : vector<16x64xf32>, vector<64x64xf32>, vector<16x64xf32> -> vector<16x64xf32>
    %cst_23 = arith.constant dense<0.000000e+00> : vector<16x64xf32>
    %22 = tpu.matmul %18, %21, %cst_23 {dimension_numbers = #tpu.dot_dimension_numbers<[1], [0], [0], [1], [0, 0, 1, 1], [], []>} : vector<16x16xf32>, vector<16x64xf32>, vector<16x64xf32> -> vector<16x64xf32>
    %23 = vector.broadcast %20 : vector<1x64xf32> to vector<16x64xf32>
    %24 = arith.addf %22, %23 : vector<16x64xf32>
    %25 = math.tanh %24 : vector<16x64xf32>
    %c2 = arith.constant 2 : index
    %c0_24 = arith.constant 0 : index
    %c0_25 = arith.constant 0 : index
    %26 = vector.load %arg2[%c2, %c0_24, %c0_25] : memref<12x64x64xf32, #tpu.memory_space<vmem>>, vector<1x64x64xf32>
    %27 = vector.shape_cast %26 : vector<1x64x64xf32> to vector<64x64xf32>
    %c1_26 = arith.constant 1 : index
    %c0_27 = arith.constant 0 : index
    %c0_28 = arith.constant 0 : index
    %28 = vector.load %arg5[%c1_26, %c0_27, %c0_28] : memref<24x16x16xf32, #tpu.memory_space<vmem>>, vector<1x16x16xf32>
    %29 = vector.shape_cast %28 : vector<1x16x16xf32> to vector<16x16xf32>
    %c2_29 = arith.constant 2 : index
    %c0_30 = arith.constant 0 : index
    %c0_31 = arith.constant 0 : index
    %30 = vector.load %arg3[%c2_29, %c0_30, %c0_31] : memref<12x1x64xf32, #tpu.memory_space<vmem>>, vector<1x1x64xf32>
    %31 = vector.shape_cast %30 : vector<1x1x64xf32> to vector<1x64xf32>
    %cst_32 = arith.constant dense<0.000000e+00> : vector<16x64xf32>
    %32 = tpu.matmul %25, %27, %cst_32 {dimension_numbers = #tpu.dot_dimension_numbers<[1], [0], [0], [1], [0, 0, 1, 1], [], []>} : vector<16x64xf32>, vector<64x64xf32>, vector<16x64xf32> -> vector<16x64xf32>
    %cst_33 = arith.constant dense<0.000000e+00> : vector<16x64xf32>
    %33 = tpu.matmul %29, %32, %cst_33 {dimension_numbers = #tpu.dot_dimension_numbers<[1], [0], [0], [1], [0, 0, 1, 1], [], []>} : vector<16x16xf32>, vector<16x64xf32>, vector<16x64xf32> -> vector<16x64xf32>
    %34 = vector.broadcast %31 : vector<1x64xf32> to vector<16x64xf32>
    %35 = arith.addf %33, %34 : vector<16x64xf32>
    %36 = math.tanh %35 : vector<16x64xf32>
    %37 = arith.addf %36, %14 : vector<16x64xf32>
    %cst_34 = arith.constant dense<0.000000e+00> : vector<16x128xf32>
    %38 = tpu.matmul %37, %3, %cst_34 {dimension_numbers = #tpu.dot_dimension_numbers<[1], [0], [0], [1], [0, 0, 1, 1], [], []>} : vector<16x64xf32>, vector<64x128xf32>, vector<16x128xf32> -> vector<16x128xf32>
    %c0_35 = arith.constant 0 : index
    %c0_36 = arith.constant 0 : index
    %c0_37 = arith.constant 0 : index
    %39 = vector.load %arg6[%c0_35, %c0_36, %c0_37] : memref<5x64x128xf32, #tpu.memory_space<vmem>>, vector<1x64x128xf32>
    %40 = vector.shape_cast %39 : vector<1x64x128xf32> to vector<64x128xf32>
    %c2_38 = arith.constant 2 : index
    %c0_39 = arith.constant 0 : index
    %c0_40 = arith.constant 0 : index
    %41 = vector.load %arg5[%c2_38, %c0_39, %c0_40] : memref<24x16x16xf32, #tpu.memory_space<vmem>>, vector<1x16x16xf32>
    %42 = vector.shape_cast %41 : vector<1x16x16xf32> to vector<16x16xf32>
    %c0_41 = arith.constant 0 : index
    %c0_42 = arith.constant 0 : index
    %c0_43 = arith.constant 0 : index
    %43 = vector.load %arg8[%c0_41, %c0_42, %c0_43] : memref<16x1x128xf32, #tpu.memory_space<vmem>>, vector<1x1x128xf32>
    %44 = vector.shape_cast %43 : vector<1x1x128xf32> to vector<1x128xf32>
    %cst_44 = arith.constant dense<0.000000e+00> : vector<16x128xf32>
    %45 = tpu.matmul %37, %40, %cst_44 {dimension_numbers = #tpu.dot_dimension_numbers<[1], [0], [0], [1], [0, 0, 1, 1], [], []>} : vector<16x64xf32>, vector<64x128xf32>, vector<16x128xf32> -> vector<16x128xf32>
    %cst_45 = arith.constant dense<0.000000e+00> : vector<16x128xf32>
    %46 = tpu.matmul %42, %45, %cst_45 {dimension_numbers = #tpu.dot_dimension_numbers<[1], [0], [0], [1], [0, 0, 1, 1], [], []>} : vector<16x16xf32>, vector<16x128xf32>, vector<16x128xf32> -> vector<16x128xf32>
    %47 = vector.broadcast %44 : vector<1x128xf32> to vector<16x128xf32>
    %48 = arith.addf %46, %47 : vector<16x128xf32>
    %49 = math.tanh %48 : vector<16x128xf32>
    %c0_46 = arith.constant 0 : index
    %c0_47 = arith.constant 0 : index
    %c0_48 = arith.constant 0 : index
    %50 = vector.load %arg7[%c0_46, %c0_47, %c0_48] : memref<12x128x128xf32, #tpu.memory_space<vmem>>, vector<1x128x128xf32>
    %51 = vector.shape_cast %50 : vector<1x128x128xf32> to vector<128x128xf32>
    %c3 = arith.constant 3 : index
    %c0_49 = arith.constant 0 : index
    %c0_50 = arith.constant 0 : index
    %52 = vector.load %arg5[%c3, %c0_49, %c0_50] : memref<24x16x16xf32, #tpu.memory_space<vmem>>, vector<1x16x16xf32>
    %53 = vector.shape_cast %52 : vector<1x16x16xf32> to vector<16x16xf32>
    %c1_51 = arith.constant 1 : index
    %c0_52 = arith.constant 0 : index
    %c0_53 = arith.constant 0 : index
    %54 = vector.load %arg8[%c1_51, %c0_52, %c0_53] : memref<16x1x128xf32, #tpu.memory_space<vmem>>, vector<1x1x128xf32>
    %55 = vector.shape_cast %54 : vector<1x1x128xf32> to vector<1x128xf32>
    %cst_54 = arith.constant dense<0.000000e+00> : vector<16x128xf32>
    %56 = tpu.matmul %49, %51, %cst_54 {dimension_numbers = #tpu.dot_dimension_numbers<[1], [0], [0], [1], [0, 0, 1, 1], [], []>} : vector<16x128xf32>, vector<128x128xf32>, vector<16x128xf32> -> vector<16x128xf32>
    %cst_55 = arith.constant dense<0.000000e+00> : vector<16x128xf32>
    %57 = tpu.matmul %53, %56, %cst_55 {dimension_numbers = #tpu.dot_dimension_numbers<[1], [0], [0], [1], [0, 0, 1, 1], [], []>} : vector<16x16xf32>, vector<16x128xf32>, vector<16x128xf32> -> vector<16x128xf32>
    %58 = vector.broadcast %55 : vector<1x128xf32> to vector<16x128xf32>
    %59 = arith.addf %57, %58 : vector<16x128xf32>
    %60 = math.tanh %59 : vector<16x128xf32>
    %61 = arith.addf %60, %38 : vector<16x128xf32>
    %c1_56 = arith.constant 1 : index
    %c0_57 = arith.constant 0 : index
    %c0_58 = arith.constant 0 : index
    %62 = vector.load %arg7[%c1_56, %c0_57, %c0_58] : memref<12x128x128xf32, #tpu.memory_space<vmem>>, vector<1x128x128xf32>
    %63 = vector.shape_cast %62 : vector<1x128x128xf32> to vector<128x128xf32>
    %c4_59 = arith.constant 4 : index
    %c0_60 = arith.constant 0 : index
    %c0_61 = arith.constant 0 : index
    %64 = vector.load %arg5[%c4_59, %c0_60, %c0_61] : memref<24x16x16xf32, #tpu.memory_space<vmem>>, vector<1x16x16xf32>
    %65 = vector.shape_cast %64 : vector<1x16x16xf32> to vector<16x16xf32>
    %c2_62 = arith.constant 2 : index
    %c0_63 = arith.constant 0 : index
    %c0_64 = arith.constant 0 : index
    %66 = vector.load %arg8[%c2_62, %c0_63, %c0_64] : memref<16x1x128xf32, #tpu.memory_space<vmem>>, vector<1x1x128xf32>
    %67 = vector.shape_cast %66 : vector<1x1x128xf32> to vector<1x128xf32>
    %cst_65 = arith.constant dense<0.000000e+00> : vector<16x128xf32>
    %68 = tpu.matmul %61, %63, %cst_65 {dimension_numbers = #tpu.dot_dimension_numbers<[1], [0], [0], [1], [0, 0, 1, 1], [], []>} : vector<16x128xf32>, vector<128x128xf32>, vector<16x128xf32> -> vector<16x128xf32>
    %cst_66 = arith.constant dense<0.000000e+00> : vector<16x128xf32>
    %69 = tpu.matmul %65, %68, %cst_66 {dimension_numbers = #tpu.dot_dimension_numbers<[1], [0], [0], [1], [0, 0, 1, 1], [], []>} : vector<16x16xf32>, vector<16x128xf32>, vector<16x128xf32> -> vector<16x128xf32>
    %70 = vector.broadcast %67 : vector<1x128xf32> to vector<16x128xf32>
    %71 = arith.addf %69, %70 : vector<16x128xf32>
    %72 = math.tanh %71 : vector<16x128xf32>
    %c2_67 = arith.constant 2 : index
    %c0_68 = arith.constant 0 : index
    %c0_69 = arith.constant 0 : index
    %73 = vector.load %arg7[%c2_67, %c0_68, %c0_69] : memref<12x128x128xf32, #tpu.memory_space<vmem>>, vector<1x128x128xf32>
    %74 = vector.shape_cast %73 : vector<1x128x128xf32> to vector<128x128xf32>
    %c5 = arith.constant 5 : index
    %c0_70 = arith.constant 0 : index
    %c0_71 = arith.constant 0 : index
    %75 = vector.load %arg5[%c5, %c0_70, %c0_71] : memref<24x16x16xf32, #tpu.memory_space<vmem>>, vector<1x16x16xf32>
    %76 = vector.shape_cast %75 : vector<1x16x16xf32> to vector<16x16xf32>
    %c3_72 = arith.constant 3 : index
    %c0_73 = arith.constant 0 : index
    %c0_74 = arith.constant 0 : index
    %77 = vector.load %arg8[%c3_72, %c0_73, %c0_74] : memref<16x1x128xf32, #tpu.memory_space<vmem>>, vector<1x1x128xf32>
    %78 = vector.shape_cast %77 : vector<1x1x128xf32> to vector<1x128xf32>
    %cst_75 = arith.constant dense<0.000000e+00> : vector<16x128xf32>
    %79 = tpu.matmul %72, %74, %cst_75 {dimension_numbers = #tpu.dot_dimension_numbers<[1], [0], [0], [1], [0, 0, 1, 1], [], []>} : vector<16x128xf32>, vector<128x128xf32>, vector<16x128xf32> -> vector<16x128xf32>
    %cst_76 = arith.constant dense<0.000000e+00> : vector<16x128xf32>
    %80 = tpu.matmul %76, %79, %cst_76 {dimension_numbers = #tpu.dot_dimension_numbers<[1], [0], [0], [1], [0, 0, 1, 1], [], []>} : vector<16x16xf32>, vector<16x128xf32>, vector<16x128xf32> -> vector<16x128xf32>
    %81 = vector.broadcast %78 : vector<1x128xf32> to vector<16x128xf32>
    %82 = arith.addf %80, %81 : vector<16x128xf32>
    %83 = math.tanh %82 : vector<16x128xf32>
    %84 = arith.addf %83, %61 : vector<16x128xf32>
    %c0_77 = arith.constant 0 : index
    %c0_78 = arith.constant 0 : index
    %c0_79 = arith.constant 0 : index
    %85 = vector.load %arg9[%c0_77, %c0_78, %c0_79] : memref<4x128x64xf32, #tpu.memory_space<vmem>>, vector<1x128x64xf32>
    %86 = vector.shape_cast %85 : vector<1x128x64xf32> to vector<128x64xf32>
    %c0_80 = arith.constant 0 : index
    %c0_81 = arith.constant 0 : index
    %c0_82 = arith.constant 0 : index
    %87 = vector.load %arg10[%c0_80, %c0_81, %c0_82] : memref<4x3x16xf32, #tpu.memory_space<vmem>>, vector<1x3x16xf32>
    %88 = vector.shape_cast %87 : vector<1x3x16xf32> to vector<3x16xf32>
    %c0_83 = arith.constant 0 : index
    %c0_84 = arith.constant 0 : index
    %c0_85 = arith.constant 0 : index
    %89 = vector.load %arg11[%c0_83, %c0_84, %c0_85] : memref<4x1x64xf32, #tpu.memory_space<vmem>>, vector<1x1x64xf32>
    %90 = vector.shape_cast %89 : vector<1x1x64xf32> to vector<1x64xf32>
    %cst_86 = arith.constant dense<0.000000e+00> : vector<16x64xf32>
    %91 = tpu.matmul %84, %86, %cst_86 {dimension_numbers = #tpu.dot_dimension_numbers<[1], [0], [0], [1], [0, 0, 1, 1], [], []>} : vector<16x128xf32>, vector<128x64xf32>, vector<16x64xf32> -> vector<16x64xf32>
    %cst_87 = arith.constant dense<0.000000e+00> : vector<3x64xf32>
    %92 = tpu.matmul %88, %91, %cst_87 {dimension_numbers = #tpu.dot_dimension_numbers<[1], [0], [0], [1], [0, 0, 1, 1], [], []>} : vector<3x16xf32>, vector<16x64xf32>, vector<3x64xf32> -> vector<3x64xf32>
    %93 = vector.broadcast %90 : vector<1x64xf32> to vector<3x64xf32>
    %94 = arith.addf %92, %93 : vector<3x64xf32>
    %c3_88 = arith.constant 3 : index
    %c0_89 = arith.constant 0 : index
    %c0_90 = arith.constant 0 : index
    %95 = vector.load %arg2[%c3_88, %c0_89, %c0_90] : memref<12x64x64xf32, #tpu.memory_space<vmem>>, vector<1x64x64xf32>
    %96 = vector.shape_cast %95 : vector<1x64x64xf32> to vector<64x64xf32>
    %c1_91 = arith.constant 1 : index
    %c0_92 = arith.constant 0 : index
    %c0_93 = arith.constant 0 : index
    %97 = vector.load %arg4[%c1_91, %c0_92, %c0_93] : memref<4x16x3xf32, #tpu.memory_space<vmem>>, vector<1x16x3xf32>
    %98 = vector.shape_cast %97 : vector<1x16x3xf32> to vector<16x3xf32>
    %c3_94 = arith.constant 3 : index
    %c0_95 = arith.constant 0 : index
    %c0_96 = arith.constant 0 : index
    %99 = vector.load %arg3[%c3_94, %c0_95, %c0_96] : memref<12x1x64xf32, #tpu.memory_space<vmem>>, vector<1x1x64xf32>
    %100 = vector.shape_cast %99 : vector<1x1x64xf32> to vector<1x64xf32>
    %cst_97 = arith.constant dense<0.000000e+00> : vector<3x64xf32>
    %101 = tpu.matmul %94, %96, %cst_97 {dimension_numbers = #tpu.dot_dimension_numbers<[1], [0], [0], [1], [0, 0, 1, 1], [], []>} : vector<3x64xf32>, vector<64x64xf32>, vector<3x64xf32> -> vector<3x64xf32>
    %cst_98 = arith.constant dense<0.000000e+00> : vector<16x64xf32>
    %102 = tpu.matmul %98, %101, %cst_98 {dimension_numbers = #tpu.dot_dimension_numbers<[1], [0], [0], [1], [0, 0, 1, 1], [], []>} : vector<16x3xf32>, vector<3x64xf32>, vector<16x64xf32> -> vector<16x64xf32>
    %103 = vector.broadcast %100 : vector<1x64xf32> to vector<16x64xf32>
    %104 = arith.addf %102, %103 : vector<16x64xf32>
    %105 = math.tanh %104 : vector<16x64xf32>
    %c4_99 = arith.constant 4 : index
    %c0_100 = arith.constant 0 : index
    %c0_101 = arith.constant 0 : index
    %106 = vector.load %arg2[%c4_99, %c0_100, %c0_101] : memref<12x64x64xf32, #tpu.memory_space<vmem>>, vector<1x64x64xf32>
    %107 = vector.shape_cast %106 : vector<1x64x64xf32> to vector<64x64xf32>
    %c6 = arith.constant 6 : index
    %c0_102 = arith.constant 0 : index
    %c0_103 = arith.constant 0 : index
    %108 = vector.load %arg5[%c6, %c0_102, %c0_103] : memref<24x16x16xf32, #tpu.memory_space<vmem>>, vector<1x16x16xf32>
    %109 = vector.shape_cast %108 : vector<1x16x16xf32> to vector<16x16xf32>
    %c4_104 = arith.constant 4 : index
    %c0_105 = arith.constant 0 : index
    %c0_106 = arith.constant 0 : index
    %110 = vector.load %arg3[%c4_104, %c0_105, %c0_106] : memref<12x1x64xf32, #tpu.memory_space<vmem>>, vector<1x1x64xf32>
    %111 = vector.shape_cast %110 : vector<1x1x64xf32> to vector<1x64xf32>
    %cst_107 = arith.constant dense<0.000000e+00> : vector<16x64xf32>
    %112 = tpu.matmul %105, %107, %cst_107 {dimension_numbers = #tpu.dot_dimension_numbers<[1], [0], [0], [1], [0, 0, 1, 1], [], []>} : vector<16x64xf32>, vector<64x64xf32>, vector<16x64xf32> -> vector<16x64xf32>
    %cst_108 = arith.constant dense<0.000000e+00> : vector<16x64xf32>
    %113 = tpu.matmul %109, %112, %cst_108 {dimension_numbers = #tpu.dot_dimension_numbers<[1], [0], [0], [1], [0, 0, 1, 1], [], []>} : vector<16x16xf32>, vector<16x64xf32>, vector<16x64xf32> -> vector<16x64xf32>
    %114 = vector.broadcast %111 : vector<1x64xf32> to vector<16x64xf32>
    %115 = arith.addf %113, %114 : vector<16x64xf32>
    %116 = math.tanh %115 : vector<16x64xf32>
    %c5_109 = arith.constant 5 : index
    %c0_110 = arith.constant 0 : index
    %c0_111 = arith.constant 0 : index
    %117 = vector.load %arg2[%c5_109, %c0_110, %c0_111] : memref<12x64x64xf32, #tpu.memory_space<vmem>>, vector<1x64x64xf32>
    %118 = vector.shape_cast %117 : vector<1x64x64xf32> to vector<64x64xf32>
    %c7 = arith.constant 7 : index
    %c0_112 = arith.constant 0 : index
    %c0_113 = arith.constant 0 : index
    %119 = vector.load %arg5[%c7, %c0_112, %c0_113] : memref<24x16x16xf32, #tpu.memory_space<vmem>>, vector<1x16x16xf32>
    %120 = vector.shape_cast %119 : vector<1x16x16xf32> to vector<16x16xf32>
    %c5_114 = arith.constant 5 : index
    %c0_115 = arith.constant 0 : index
    %c0_116 = arith.constant 0 : index
    %121 = vector.load %arg3[%c5_114, %c0_115, %c0_116] : memref<12x1x64xf32, #tpu.memory_space<vmem>>, vector<1x1x64xf32>
    %122 = vector.shape_cast %121 : vector<1x1x64xf32> to vector<1x64xf32>
    %cst_117 = arith.constant dense<0.000000e+00> : vector<16x64xf32>
    %123 = tpu.matmul %116, %118, %cst_117 {dimension_numbers = #tpu.dot_dimension_numbers<[1], [0], [0], [1], [0, 0, 1, 1], [], []>} : vector<16x64xf32>, vector<64x64xf32>, vector<16x64xf32> -> vector<16x64xf32>
    %cst_118 = arith.constant dense<0.000000e+00> : vector<16x64xf32>
    %124 = tpu.matmul %120, %123, %cst_118 {dimension_numbers = #tpu.dot_dimension_numbers<[1], [0], [0], [1], [0, 0, 1, 1], [], []>} : vector<16x16xf32>, vector<16x64xf32>, vector<16x64xf32> -> vector<16x64xf32>
    %125 = vector.broadcast %122 : vector<1x64xf32> to vector<16x64xf32>
    %126 = arith.addf %124, %125 : vector<16x64xf32>
    %127 = math.tanh %126 : vector<16x64xf32>
    %128 = arith.addf %127, %105 : vector<16x64xf32>
    %cst_119 = arith.constant dense<0.000000e+00> : vector<16x128xf32>
    %129 = tpu.matmul %128, %3, %cst_119 {dimension_numbers = #tpu.dot_dimension_numbers<[1], [0], [0], [1], [0, 0, 1, 1], [], []>} : vector<16x64xf32>, vector<64x128xf32>, vector<16x128xf32> -> vector<16x128xf32>
    %c1_120 = arith.constant 1 : index
    %c0_121 = arith.constant 0 : index
    %c0_122 = arith.constant 0 : index
    %130 = vector.load %arg6[%c1_120, %c0_121, %c0_122] : memref<5x64x128xf32, #tpu.memory_space<vmem>>, vector<1x64x128xf32>
    %131 = vector.shape_cast %130 : vector<1x64x128xf32> to vector<64x128xf32>
    %c8 = arith.constant 8 : index
    %c0_123 = arith.constant 0 : index
    %c0_124 = arith.constant 0 : index
    %132 = vector.load %arg5[%c8, %c0_123, %c0_124] : memref<24x16x16xf32, #tpu.memory_space<vmem>>, vector<1x16x16xf32>
    %133 = vector.shape_cast %132 : vector<1x16x16xf32> to vector<16x16xf32>
    %c4_125 = arith.constant 4 : index
    %c0_126 = arith.constant 0 : index
    %c0_127 = arith.constant 0 : index
    %134 = vector.load %arg8[%c4_125, %c0_126, %c0_127] : memref<16x1x128xf32, #tpu.memory_space<vmem>>, vector<1x1x128xf32>
    %135 = vector.shape_cast %134 : vector<1x1x128xf32> to vector<1x128xf32>
    %cst_128 = arith.constant dense<0.000000e+00> : vector<16x128xf32>
    %136 = tpu.matmul %128, %131, %cst_128 {dimension_numbers = #tpu.dot_dimension_numbers<[1], [0], [0], [1], [0, 0, 1, 1], [], []>} : vector<16x64xf32>, vector<64x128xf32>, vector<16x128xf32> -> vector<16x128xf32>
    %cst_129 = arith.constant dense<0.000000e+00> : vector<16x128xf32>
    %137 = tpu.matmul %133, %136, %cst_129 {dimension_numbers = #tpu.dot_dimension_numbers<[1], [0], [0], [1], [0, 0, 1, 1], [], []>} : vector<16x16xf32>, vector<16x128xf32>, vector<16x128xf32> -> vector<16x128xf32>
    %138 = vector.broadcast %135 : vector<1x128xf32> to vector<16x128xf32>
    %139 = arith.addf %137, %138 : vector<16x128xf32>
    %140 = math.tanh %139 : vector<16x128xf32>
    %c3_130 = arith.constant 3 : index
    %c0_131 = arith.constant 0 : index
    %c0_132 = arith.constant 0 : index
    %141 = vector.load %arg7[%c3_130, %c0_131, %c0_132] : memref<12x128x128xf32, #tpu.memory_space<vmem>>, vector<1x128x128xf32>
    %142 = vector.shape_cast %141 : vector<1x128x128xf32> to vector<128x128xf32>
    %c9 = arith.constant 9 : index
    %c0_133 = arith.constant 0 : index
    %c0_134 = arith.constant 0 : index
    %143 = vector.load %arg5[%c9, %c0_133, %c0_134] : memref<24x16x16xf32, #tpu.memory_space<vmem>>, vector<1x16x16xf32>
    %144 = vector.shape_cast %143 : vector<1x16x16xf32> to vector<16x16xf32>
    %c5_135 = arith.constant 5 : index
    %c0_136 = arith.constant 0 : index
    %c0_137 = arith.constant 0 : index
    %145 = vector.load %arg8[%c5_135, %c0_136, %c0_137] : memref<16x1x128xf32, #tpu.memory_space<vmem>>, vector<1x1x128xf32>
    %146 = vector.shape_cast %145 : vector<1x1x128xf32> to vector<1x128xf32>
    %cst_138 = arith.constant dense<0.000000e+00> : vector<16x128xf32>
    %147 = tpu.matmul %140, %142, %cst_138 {dimension_numbers = #tpu.dot_dimension_numbers<[1], [0], [0], [1], [0, 0, 1, 1], [], []>} : vector<16x128xf32>, vector<128x128xf32>, vector<16x128xf32> -> vector<16x128xf32>
    %cst_139 = arith.constant dense<0.000000e+00> : vector<16x128xf32>
    %148 = tpu.matmul %144, %147, %cst_139 {dimension_numbers = #tpu.dot_dimension_numbers<[1], [0], [0], [1], [0, 0, 1, 1], [], []>} : vector<16x16xf32>, vector<16x128xf32>, vector<16x128xf32> -> vector<16x128xf32>
    %149 = vector.broadcast %146 : vector<1x128xf32> to vector<16x128xf32>
    %150 = arith.addf %148, %149 : vector<16x128xf32>
    %151 = math.tanh %150 : vector<16x128xf32>
    %152 = arith.addf %151, %129 : vector<16x128xf32>
    %c4_140 = arith.constant 4 : index
    %c0_141 = arith.constant 0 : index
    %c0_142 = arith.constant 0 : index
    %153 = vector.load %arg7[%c4_140, %c0_141, %c0_142] : memref<12x128x128xf32, #tpu.memory_space<vmem>>, vector<1x128x128xf32>
    %154 = vector.shape_cast %153 : vector<1x128x128xf32> to vector<128x128xf32>
    %c10 = arith.constant 10 : index
    %c0_143 = arith.constant 0 : index
    %c0_144 = arith.constant 0 : index
    %155 = vector.load %arg5[%c10, %c0_143, %c0_144] : memref<24x16x16xf32, #tpu.memory_space<vmem>>, vector<1x16x16xf32>
    %156 = vector.shape_cast %155 : vector<1x16x16xf32> to vector<16x16xf32>
    %c6_145 = arith.constant 6 : index
    %c0_146 = arith.constant 0 : index
    %c0_147 = arith.constant 0 : index
    %157 = vector.load %arg8[%c6_145, %c0_146, %c0_147] : memref<16x1x128xf32, #tpu.memory_space<vmem>>, vector<1x1x128xf32>
    %158 = vector.shape_cast %157 : vector<1x1x128xf32> to vector<1x128xf32>
    %cst_148 = arith.constant dense<0.000000e+00> : vector<16x128xf32>
    %159 = tpu.matmul %152, %154, %cst_148 {dimension_numbers = #tpu.dot_dimension_numbers<[1], [0], [0], [1], [0, 0, 1, 1], [], []>} : vector<16x128xf32>, vector<128x128xf32>, vector<16x128xf32> -> vector<16x128xf32>
    %cst_149 = arith.constant dense<0.000000e+00> : vector<16x128xf32>
    %160 = tpu.matmul %156, %159, %cst_149 {dimension_numbers = #tpu.dot_dimension_numbers<[1], [0], [0], [1], [0, 0, 1, 1], [], []>} : vector<16x16xf32>, vector<16x128xf32>, vector<16x128xf32> -> vector<16x128xf32>
    %161 = vector.broadcast %158 : vector<1x128xf32> to vector<16x128xf32>
    %162 = arith.addf %160, %161 : vector<16x128xf32>
    %163 = math.tanh %162 : vector<16x128xf32>
    %c5_150 = arith.constant 5 : index
    %c0_151 = arith.constant 0 : index
    %c0_152 = arith.constant 0 : index
    %164 = vector.load %arg7[%c5_150, %c0_151, %c0_152] : memref<12x128x128xf32, #tpu.memory_space<vmem>>, vector<1x128x128xf32>
    %165 = vector.shape_cast %164 : vector<1x128x128xf32> to vector<128x128xf32>
    %c11 = arith.constant 11 : index
    %c0_153 = arith.constant 0 : index
    %c0_154 = arith.constant 0 : index
    %166 = vector.load %arg5[%c11, %c0_153, %c0_154] : memref<24x16x16xf32, #tpu.memory_space<vmem>>, vector<1x16x16xf32>
    %167 = vector.shape_cast %166 : vector<1x16x16xf32> to vector<16x16xf32>
    %c7_155 = arith.constant 7 : index
    %c0_156 = arith.constant 0 : index
    %c0_157 = arith.constant 0 : index
    %168 = vector.load %arg8[%c7_155, %c0_156, %c0_157] : memref<16x1x128xf32, #tpu.memory_space<vmem>>, vector<1x1x128xf32>
    %169 = vector.shape_cast %168 : vector<1x1x128xf32> to vector<1x128xf32>
    %cst_158 = arith.constant dense<0.000000e+00> : vector<16x128xf32>
    %170 = tpu.matmul %163, %165, %cst_158 {dimension_numbers = #tpu.dot_dimension_numbers<[1], [0], [0], [1], [0, 0, 1, 1], [], []>} : vector<16x128xf32>, vector<128x128xf32>, vector<16x128xf32> -> vector<16x128xf32>
    %cst_159 = arith.constant dense<0.000000e+00> : vector<16x128xf32>
    %171 = tpu.matmul %167, %170, %cst_159 {dimension_numbers = #tpu.dot_dimension_numbers<[1], [0], [0], [1], [0, 0, 1, 1], [], []>} : vector<16x16xf32>, vector<16x128xf32>, vector<16x128xf32> -> vector<16x128xf32>
    %172 = vector.broadcast %169 : vector<1x128xf32> to vector<16x128xf32>
    %173 = arith.addf %171, %172 : vector<16x128xf32>
    %174 = math.tanh %173 : vector<16x128xf32>
    %175 = arith.addf %174, %152 : vector<16x128xf32>
    %c1_160 = arith.constant 1 : index
    %c0_161 = arith.constant 0 : index
    %c0_162 = arith.constant 0 : index
    %176 = vector.load %arg9[%c1_160, %c0_161, %c0_162] : memref<4x128x64xf32, #tpu.memory_space<vmem>>, vector<1x128x64xf32>
    %177 = vector.shape_cast %176 : vector<1x128x64xf32> to vector<128x64xf32>
    %c1_163 = arith.constant 1 : index
    %c0_164 = arith.constant 0 : index
    %c0_165 = arith.constant 0 : index
    %178 = vector.load %arg10[%c1_163, %c0_164, %c0_165] : memref<4x3x16xf32, #tpu.memory_space<vmem>>, vector<1x3x16xf32>
    %179 = vector.shape_cast %178 : vector<1x3x16xf32> to vector<3x16xf32>
    %c1_166 = arith.constant 1 : index
    %c0_167 = arith.constant 0 : index
    %c0_168 = arith.constant 0 : index
    %180 = vector.load %arg11[%c1_166, %c0_167, %c0_168] : memref<4x1x64xf32, #tpu.memory_space<vmem>>, vector<1x1x64xf32>
    %181 = vector.shape_cast %180 : vector<1x1x64xf32> to vector<1x64xf32>
    %cst_169 = arith.constant dense<0.000000e+00> : vector<16x64xf32>
    %182 = tpu.matmul %175, %177, %cst_169 {dimension_numbers = #tpu.dot_dimension_numbers<[1], [0], [0], [1], [0, 0, 1, 1], [], []>} : vector<16x128xf32>, vector<128x64xf32>, vector<16x64xf32> -> vector<16x64xf32>
    %cst_170 = arith.constant dense<0.000000e+00> : vector<3x64xf32>
    %183 = tpu.matmul %179, %182, %cst_170 {dimension_numbers = #tpu.dot_dimension_numbers<[1], [0], [0], [1], [0, 0, 1, 1], [], []>} : vector<3x16xf32>, vector<16x64xf32>, vector<3x64xf32> -> vector<3x64xf32>
    %184 = vector.broadcast %181 : vector<1x64xf32> to vector<3x64xf32>
    %185 = arith.addf %183, %184 : vector<3x64xf32>
    %c6_171 = arith.constant 6 : index
    %c0_172 = arith.constant 0 : index
    %c0_173 = arith.constant 0 : index
    %186 = vector.load %arg2[%c6_171, %c0_172, %c0_173] : memref<12x64x64xf32, #tpu.memory_space<vmem>>, vector<1x64x64xf32>
    %187 = vector.shape_cast %186 : vector<1x64x64xf32> to vector<64x64xf32>
    %c2_174 = arith.constant 2 : index
    %c0_175 = arith.constant 0 : index
    %c0_176 = arith.constant 0 : index
    %188 = vector.load %arg4[%c2_174, %c0_175, %c0_176] : memref<4x16x3xf32, #tpu.memory_space<vmem>>, vector<1x16x3xf32>
    %189 = vector.shape_cast %188 : vector<1x16x3xf32> to vector<16x3xf32>
    %c6_177 = arith.constant 6 : index
    %c0_178 = arith.constant 0 : index
    %c0_179 = arith.constant 0 : index
    %190 = vector.load %arg3[%c6_177, %c0_178, %c0_179] : memref<12x1x64xf32, #tpu.memory_space<vmem>>, vector<1x1x64xf32>
    %191 = vector.shape_cast %190 : vector<1x1x64xf32> to vector<1x64xf32>
    %cst_180 = arith.constant dense<0.000000e+00> : vector<3x64xf32>
    %192 = tpu.matmul %185, %187, %cst_180 {dimension_numbers = #tpu.dot_dimension_numbers<[1], [0], [0], [1], [0, 0, 1, 1], [], []>} : vector<3x64xf32>, vector<64x64xf32>, vector<3x64xf32> -> vector<3x64xf32>
    %cst_181 = arith.constant dense<0.000000e+00> : vector<16x64xf32>
    %193 = tpu.matmul %189, %192, %cst_181 {dimension_numbers = #tpu.dot_dimension_numbers<[1], [0], [0], [1], [0, 0, 1, 1], [], []>} : vector<16x3xf32>, vector<3x64xf32>, vector<16x64xf32> -> vector<16x64xf32>
    %194 = vector.broadcast %191 : vector<1x64xf32> to vector<16x64xf32>
    %195 = arith.addf %193, %194 : vector<16x64xf32>
    %196 = math.tanh %195 : vector<16x64xf32>
    %c7_182 = arith.constant 7 : index
    %c0_183 = arith.constant 0 : index
    %c0_184 = arith.constant 0 : index
    %197 = vector.load %arg2[%c7_182, %c0_183, %c0_184] : memref<12x64x64xf32, #tpu.memory_space<vmem>>, vector<1x64x64xf32>
    %198 = vector.shape_cast %197 : vector<1x64x64xf32> to vector<64x64xf32>
    %c12 = arith.constant 12 : index
    %c0_185 = arith.constant 0 : index
    %c0_186 = arith.constant 0 : index
    %199 = vector.load %arg5[%c12, %c0_185, %c0_186] : memref<24x16x16xf32, #tpu.memory_space<vmem>>, vector<1x16x16xf32>
    %200 = vector.shape_cast %199 : vector<1x16x16xf32> to vector<16x16xf32>
    %c7_187 = arith.constant 7 : index
    %c0_188 = arith.constant 0 : index
    %c0_189 = arith.constant 0 : index
    %201 = vector.load %arg3[%c7_187, %c0_188, %c0_189] : memref<12x1x64xf32, #tpu.memory_space<vmem>>, vector<1x1x64xf32>
    %202 = vector.shape_cast %201 : vector<1x1x64xf32> to vector<1x64xf32>
    %cst_190 = arith.constant dense<0.000000e+00> : vector<16x64xf32>
    %203 = tpu.matmul %196, %198, %cst_190 {dimension_numbers = #tpu.dot_dimension_numbers<[1], [0], [0], [1], [0, 0, 1, 1], [], []>} : vector<16x64xf32>, vector<64x64xf32>, vector<16x64xf32> -> vector<16x64xf32>
    %cst_191 = arith.constant dense<0.000000e+00> : vector<16x64xf32>
    %204 = tpu.matmul %200, %203, %cst_191 {dimension_numbers = #tpu.dot_dimension_numbers<[1], [0], [0], [1], [0, 0, 1, 1], [], []>} : vector<16x16xf32>, vector<16x64xf32>, vector<16x64xf32> -> vector<16x64xf32>
    %205 = vector.broadcast %202 : vector<1x64xf32> to vector<16x64xf32>
    %206 = arith.addf %204, %205 : vector<16x64xf32>
    %207 = math.tanh %206 : vector<16x64xf32>
    %c8_192 = arith.constant 8 : index
    %c0_193 = arith.constant 0 : index
    %c0_194 = arith.constant 0 : index
    %208 = vector.load %arg2[%c8_192, %c0_193, %c0_194] : memref<12x64x64xf32, #tpu.memory_space<vmem>>, vector<1x64x64xf32>
    %209 = vector.shape_cast %208 : vector<1x64x64xf32> to vector<64x64xf32>
    %c13 = arith.constant 13 : index
    %c0_195 = arith.constant 0 : index
    %c0_196 = arith.constant 0 : index
    %210 = vector.load %arg5[%c13, %c0_195, %c0_196] : memref<24x16x16xf32, #tpu.memory_space<vmem>>, vector<1x16x16xf32>
    %211 = vector.shape_cast %210 : vector<1x16x16xf32> to vector<16x16xf32>
    %c8_197 = arith.constant 8 : index
    %c0_198 = arith.constant 0 : index
    %c0_199 = arith.constant 0 : index
    %212 = vector.load %arg3[%c8_197, %c0_198, %c0_199] : memref<12x1x64xf32, #tpu.memory_space<vmem>>, vector<1x1x64xf32>
    %213 = vector.shape_cast %212 : vector<1x1x64xf32> to vector<1x64xf32>
    %cst_200 = arith.constant dense<0.000000e+00> : vector<16x64xf32>
    %214 = tpu.matmul %207, %209, %cst_200 {dimension_numbers = #tpu.dot_dimension_numbers<[1], [0], [0], [1], [0, 0, 1, 1], [], []>} : vector<16x64xf32>, vector<64x64xf32>, vector<16x64xf32> -> vector<16x64xf32>
    %cst_201 = arith.constant dense<0.000000e+00> : vector<16x64xf32>
    %215 = tpu.matmul %211, %214, %cst_201 {dimension_numbers = #tpu.dot_dimension_numbers<[1], [0], [0], [1], [0, 0, 1, 1], [], []>} : vector<16x16xf32>, vector<16x64xf32>, vector<16x64xf32> -> vector<16x64xf32>
    %216 = vector.broadcast %213 : vector<1x64xf32> to vector<16x64xf32>
    %217 = arith.addf %215, %216 : vector<16x64xf32>
    %218 = math.tanh %217 : vector<16x64xf32>
    %219 = arith.addf %218, %196 : vector<16x64xf32>
    %cst_202 = arith.constant dense<0.000000e+00> : vector<16x128xf32>
    %220 = tpu.matmul %219, %3, %cst_202 {dimension_numbers = #tpu.dot_dimension_numbers<[1], [0], [0], [1], [0, 0, 1, 1], [], []>} : vector<16x64xf32>, vector<64x128xf32>, vector<16x128xf32> -> vector<16x128xf32>
    %c2_203 = arith.constant 2 : index
    %c0_204 = arith.constant 0 : index
    %c0_205 = arith.constant 0 : index
    %221 = vector.load %arg6[%c2_203, %c0_204, %c0_205] : memref<5x64x128xf32, #tpu.memory_space<vmem>>, vector<1x64x128xf32>
    %222 = vector.shape_cast %221 : vector<1x64x128xf32> to vector<64x128xf32>
    %c14 = arith.constant 14 : index
    %c0_206 = arith.constant 0 : index
    %c0_207 = arith.constant 0 : index
    %223 = vector.load %arg5[%c14, %c0_206, %c0_207] : memref<24x16x16xf32, #tpu.memory_space<vmem>>, vector<1x16x16xf32>
    %224 = vector.shape_cast %223 : vector<1x16x16xf32> to vector<16x16xf32>
    %c8_208 = arith.constant 8 : index
    %c0_209 = arith.constant 0 : index
    %c0_210 = arith.constant 0 : index
    %225 = vector.load %arg8[%c8_208, %c0_209, %c0_210] : memref<16x1x128xf32, #tpu.memory_space<vmem>>, vector<1x1x128xf32>
    %226 = vector.shape_cast %225 : vector<1x1x128xf32> to vector<1x128xf32>
    %cst_211 = arith.constant dense<0.000000e+00> : vector<16x128xf32>
    %227 = tpu.matmul %219, %222, %cst_211 {dimension_numbers = #tpu.dot_dimension_numbers<[1], [0], [0], [1], [0, 0, 1, 1], [], []>} : vector<16x64xf32>, vector<64x128xf32>, vector<16x128xf32> -> vector<16x128xf32>
    %cst_212 = arith.constant dense<0.000000e+00> : vector<16x128xf32>
    %228 = tpu.matmul %224, %227, %cst_212 {dimension_numbers = #tpu.dot_dimension_numbers<[1], [0], [0], [1], [0, 0, 1, 1], [], []>} : vector<16x16xf32>, vector<16x128xf32>, vector<16x128xf32> -> vector<16x128xf32>
    %229 = vector.broadcast %226 : vector<1x128xf32> to vector<16x128xf32>
    %230 = arith.addf %228, %229 : vector<16x128xf32>
    %231 = math.tanh %230 : vector<16x128xf32>
    %c6_213 = arith.constant 6 : index
    %c0_214 = arith.constant 0 : index
    %c0_215 = arith.constant 0 : index
    %232 = vector.load %arg7[%c6_213, %c0_214, %c0_215] : memref<12x128x128xf32, #tpu.memory_space<vmem>>, vector<1x128x128xf32>
    %233 = vector.shape_cast %232 : vector<1x128x128xf32> to vector<128x128xf32>
    %c15 = arith.constant 15 : index
    %c0_216 = arith.constant 0 : index
    %c0_217 = arith.constant 0 : index
    %234 = vector.load %arg5[%c15, %c0_216, %c0_217] : memref<24x16x16xf32, #tpu.memory_space<vmem>>, vector<1x16x16xf32>
    %235 = vector.shape_cast %234 : vector<1x16x16xf32> to vector<16x16xf32>
    %c9_218 = arith.constant 9 : index
    %c0_219 = arith.constant 0 : index
    %c0_220 = arith.constant 0 : index
    %236 = vector.load %arg8[%c9_218, %c0_219, %c0_220] : memref<16x1x128xf32, #tpu.memory_space<vmem>>, vector<1x1x128xf32>
    %237 = vector.shape_cast %236 : vector<1x1x128xf32> to vector<1x128xf32>
    %cst_221 = arith.constant dense<0.000000e+00> : vector<16x128xf32>
    %238 = tpu.matmul %231, %233, %cst_221 {dimension_numbers = #tpu.dot_dimension_numbers<[1], [0], [0], [1], [0, 0, 1, 1], [], []>} : vector<16x128xf32>, vector<128x128xf32>, vector<16x128xf32> -> vector<16x128xf32>
    %cst_222 = arith.constant dense<0.000000e+00> : vector<16x128xf32>
    %239 = tpu.matmul %235, %238, %cst_222 {dimension_numbers = #tpu.dot_dimension_numbers<[1], [0], [0], [1], [0, 0, 1, 1], [], []>} : vector<16x16xf32>, vector<16x128xf32>, vector<16x128xf32> -> vector<16x128xf32>
    %240 = vector.broadcast %237 : vector<1x128xf32> to vector<16x128xf32>
    %241 = arith.addf %239, %240 : vector<16x128xf32>
    %242 = math.tanh %241 : vector<16x128xf32>
    %243 = arith.addf %242, %220 : vector<16x128xf32>
    %c7_223 = arith.constant 7 : index
    %c0_224 = arith.constant 0 : index
    %c0_225 = arith.constant 0 : index
    %244 = vector.load %arg7[%c7_223, %c0_224, %c0_225] : memref<12x128x128xf32, #tpu.memory_space<vmem>>, vector<1x128x128xf32>
    %245 = vector.shape_cast %244 : vector<1x128x128xf32> to vector<128x128xf32>
    %c16 = arith.constant 16 : index
    %c0_226 = arith.constant 0 : index
    %c0_227 = arith.constant 0 : index
    %246 = vector.load %arg5[%c16, %c0_226, %c0_227] : memref<24x16x16xf32, #tpu.memory_space<vmem>>, vector<1x16x16xf32>
    %247 = vector.shape_cast %246 : vector<1x16x16xf32> to vector<16x16xf32>
    %c10_228 = arith.constant 10 : index
    %c0_229 = arith.constant 0 : index
    %c0_230 = arith.constant 0 : index
    %248 = vector.load %arg8[%c10_228, %c0_229, %c0_230] : memref<16x1x128xf32, #tpu.memory_space<vmem>>, vector<1x1x128xf32>
    %249 = vector.shape_cast %248 : vector<1x1x128xf32> to vector<1x128xf32>
    %cst_231 = arith.constant dense<0.000000e+00> : vector<16x128xf32>
    %250 = tpu.matmul %243, %245, %cst_231 {dimension_numbers = #tpu.dot_dimension_numbers<[1], [0], [0], [1], [0, 0, 1, 1], [], []>} : vector<16x128xf32>, vector<128x128xf32>, vector<16x128xf32> -> vector<16x128xf32>
    %cst_232 = arith.constant dense<0.000000e+00> : vector<16x128xf32>
    %251 = tpu.matmul %247, %250, %cst_232 {dimension_numbers = #tpu.dot_dimension_numbers<[1], [0], [0], [1], [0, 0, 1, 1], [], []>} : vector<16x16xf32>, vector<16x128xf32>, vector<16x128xf32> -> vector<16x128xf32>
    %252 = vector.broadcast %249 : vector<1x128xf32> to vector<16x128xf32>
    %253 = arith.addf %251, %252 : vector<16x128xf32>
    %254 = math.tanh %253 : vector<16x128xf32>
    %c8_233 = arith.constant 8 : index
    %c0_234 = arith.constant 0 : index
    %c0_235 = arith.constant 0 : index
    %255 = vector.load %arg7[%c8_233, %c0_234, %c0_235] : memref<12x128x128xf32, #tpu.memory_space<vmem>>, vector<1x128x128xf32>
    %256 = vector.shape_cast %255 : vector<1x128x128xf32> to vector<128x128xf32>
    %c17 = arith.constant 17 : index
    %c0_236 = arith.constant 0 : index
    %c0_237 = arith.constant 0 : index
    %257 = vector.load %arg5[%c17, %c0_236, %c0_237] : memref<24x16x16xf32, #tpu.memory_space<vmem>>, vector<1x16x16xf32>
    %258 = vector.shape_cast %257 : vector<1x16x16xf32> to vector<16x16xf32>
    %c11_238 = arith.constant 11 : index
    %c0_239 = arith.constant 0 : index
    %c0_240 = arith.constant 0 : index
    %259 = vector.load %arg8[%c11_238, %c0_239, %c0_240] : memref<16x1x128xf32, #tpu.memory_space<vmem>>, vector<1x1x128xf32>
    %260 = vector.shape_cast %259 : vector<1x1x128xf32> to vector<1x128xf32>
    %cst_241 = arith.constant dense<0.000000e+00> : vector<16x128xf32>
    %261 = tpu.matmul %254, %256, %cst_241 {dimension_numbers = #tpu.dot_dimension_numbers<[1], [0], [0], [1], [0, 0, 1, 1], [], []>} : vector<16x128xf32>, vector<128x128xf32>, vector<16x128xf32> -> vector<16x128xf32>
    %cst_242 = arith.constant dense<0.000000e+00> : vector<16x128xf32>
    %262 = tpu.matmul %258, %261, %cst_242 {dimension_numbers = #tpu.dot_dimension_numbers<[1], [0], [0], [1], [0, 0, 1, 1], [], []>} : vector<16x16xf32>, vector<16x128xf32>, vector<16x128xf32> -> vector<16x128xf32>
    %263 = vector.broadcast %260 : vector<1x128xf32> to vector<16x128xf32>
    %264 = arith.addf %262, %263 : vector<16x128xf32>
    %265 = math.tanh %264 : vector<16x128xf32>
    %266 = arith.addf %265, %243 : vector<16x128xf32>
    %c2_243 = arith.constant 2 : index
    %c0_244 = arith.constant 0 : index
    %c0_245 = arith.constant 0 : index
    %267 = vector.load %arg9[%c2_243, %c0_244, %c0_245] : memref<4x128x64xf32, #tpu.memory_space<vmem>>, vector<1x128x64xf32>
    %268 = vector.shape_cast %267 : vector<1x128x64xf32> to vector<128x64xf32>
    %c2_246 = arith.constant 2 : index
    %c0_247 = arith.constant 0 : index
    %c0_248 = arith.constant 0 : index
    %269 = vector.load %arg10[%c2_246, %c0_247, %c0_248] : memref<4x3x16xf32, #tpu.memory_space<vmem>>, vector<1x3x16xf32>
    %270 = vector.shape_cast %269 : vector<1x3x16xf32> to vector<3x16xf32>
    %c2_249 = arith.constant 2 : index
    %c0_250 = arith.constant 0 : index
    %c0_251 = arith.constant 0 : index
    %271 = vector.load %arg11[%c2_249, %c0_250, %c0_251] : memref<4x1x64xf32, #tpu.memory_space<vmem>>, vector<1x1x64xf32>
    %272 = vector.shape_cast %271 : vector<1x1x64xf32> to vector<1x64xf32>
    %cst_252 = arith.constant dense<0.000000e+00> : vector<16x64xf32>
    %273 = tpu.matmul %266, %268, %cst_252 {dimension_numbers = #tpu.dot_dimension_numbers<[1], [0], [0], [1], [0, 0, 1, 1], [], []>} : vector<16x128xf32>, vector<128x64xf32>, vector<16x64xf32> -> vector<16x64xf32>
    %cst_253 = arith.constant dense<0.000000e+00> : vector<3x64xf32>
    %274 = tpu.matmul %270, %273, %cst_253 {dimension_numbers = #tpu.dot_dimension_numbers<[1], [0], [0], [1], [0, 0, 1, 1], [], []>} : vector<3x16xf32>, vector<16x64xf32>, vector<3x64xf32> -> vector<3x64xf32>
    %275 = vector.broadcast %272 : vector<1x64xf32> to vector<3x64xf32>
    %276 = arith.addf %274, %275 : vector<3x64xf32>
    %c9_254 = arith.constant 9 : index
    %c0_255 = arith.constant 0 : index
    %c0_256 = arith.constant 0 : index
    %277 = vector.load %arg2[%c9_254, %c0_255, %c0_256] : memref<12x64x64xf32, #tpu.memory_space<vmem>>, vector<1x64x64xf32>
    %278 = vector.shape_cast %277 : vector<1x64x64xf32> to vector<64x64xf32>
    %c3_257 = arith.constant 3 : index
    %c0_258 = arith.constant 0 : index
    %c0_259 = arith.constant 0 : index
    %279 = vector.load %arg4[%c3_257, %c0_258, %c0_259] : memref<4x16x3xf32, #tpu.memory_space<vmem>>, vector<1x16x3xf32>
    %280 = vector.shape_cast %279 : vector<1x16x3xf32> to vector<16x3xf32>
    %c9_260 = arith.constant 9 : index
    %c0_261 = arith.constant 0 : index
    %c0_262 = arith.constant 0 : index
    %281 = vector.load %arg3[%c9_260, %c0_261, %c0_262] : memref<12x1x64xf32, #tpu.memory_space<vmem>>, vector<1x1x64xf32>
    %282 = vector.shape_cast %281 : vector<1x1x64xf32> to vector<1x64xf32>
    %cst_263 = arith.constant dense<0.000000e+00> : vector<3x64xf32>
    %283 = tpu.matmul %276, %278, %cst_263 {dimension_numbers = #tpu.dot_dimension_numbers<[1], [0], [0], [1], [0, 0, 1, 1], [], []>} : vector<3x64xf32>, vector<64x64xf32>, vector<3x64xf32> -> vector<3x64xf32>
    %cst_264 = arith.constant dense<0.000000e+00> : vector<16x64xf32>
    %284 = tpu.matmul %280, %283, %cst_264 {dimension_numbers = #tpu.dot_dimension_numbers<[1], [0], [0], [1], [0, 0, 1, 1], [], []>} : vector<16x3xf32>, vector<3x64xf32>, vector<16x64xf32> -> vector<16x64xf32>
    %285 = vector.broadcast %282 : vector<1x64xf32> to vector<16x64xf32>
    %286 = arith.addf %284, %285 : vector<16x64xf32>
    %287 = math.tanh %286 : vector<16x64xf32>
    %c10_265 = arith.constant 10 : index
    %c0_266 = arith.constant 0 : index
    %c0_267 = arith.constant 0 : index
    %288 = vector.load %arg2[%c10_265, %c0_266, %c0_267] : memref<12x64x64xf32, #tpu.memory_space<vmem>>, vector<1x64x64xf32>
    %289 = vector.shape_cast %288 : vector<1x64x64xf32> to vector<64x64xf32>
    %c18 = arith.constant 18 : index
    %c0_268 = arith.constant 0 : index
    %c0_269 = arith.constant 0 : index
    %290 = vector.load %arg5[%c18, %c0_268, %c0_269] : memref<24x16x16xf32, #tpu.memory_space<vmem>>, vector<1x16x16xf32>
    %291 = vector.shape_cast %290 : vector<1x16x16xf32> to vector<16x16xf32>
    %c10_270 = arith.constant 10 : index
    %c0_271 = arith.constant 0 : index
    %c0_272 = arith.constant 0 : index
    %292 = vector.load %arg3[%c10_270, %c0_271, %c0_272] : memref<12x1x64xf32, #tpu.memory_space<vmem>>, vector<1x1x64xf32>
    %293 = vector.shape_cast %292 : vector<1x1x64xf32> to vector<1x64xf32>
    %cst_273 = arith.constant dense<0.000000e+00> : vector<16x64xf32>
    %294 = tpu.matmul %287, %289, %cst_273 {dimension_numbers = #tpu.dot_dimension_numbers<[1], [0], [0], [1], [0, 0, 1, 1], [], []>} : vector<16x64xf32>, vector<64x64xf32>, vector<16x64xf32> -> vector<16x64xf32>
    %cst_274 = arith.constant dense<0.000000e+00> : vector<16x64xf32>
    %295 = tpu.matmul %291, %294, %cst_274 {dimension_numbers = #tpu.dot_dimension_numbers<[1], [0], [0], [1], [0, 0, 1, 1], [], []>} : vector<16x16xf32>, vector<16x64xf32>, vector<16x64xf32> -> vector<16x64xf32>
    %296 = vector.broadcast %293 : vector<1x64xf32> to vector<16x64xf32>
    %297 = arith.addf %295, %296 : vector<16x64xf32>
    %298 = math.tanh %297 : vector<16x64xf32>
    %c11_275 = arith.constant 11 : index
    %c0_276 = arith.constant 0 : index
    %c0_277 = arith.constant 0 : index
    %299 = vector.load %arg2[%c11_275, %c0_276, %c0_277] : memref<12x64x64xf32, #tpu.memory_space<vmem>>, vector<1x64x64xf32>
    %300 = vector.shape_cast %299 : vector<1x64x64xf32> to vector<64x64xf32>
    %c19 = arith.constant 19 : index
    %c0_278 = arith.constant 0 : index
    %c0_279 = arith.constant 0 : index
    %301 = vector.load %arg5[%c19, %c0_278, %c0_279] : memref<24x16x16xf32, #tpu.memory_space<vmem>>, vector<1x16x16xf32>
    %302 = vector.shape_cast %301 : vector<1x16x16xf32> to vector<16x16xf32>
    %c11_280 = arith.constant 11 : index
    %c0_281 = arith.constant 0 : index
    %c0_282 = arith.constant 0 : index
    %303 = vector.load %arg3[%c11_280, %c0_281, %c0_282] : memref<12x1x64xf32, #tpu.memory_space<vmem>>, vector<1x1x64xf32>
    %304 = vector.shape_cast %303 : vector<1x1x64xf32> to vector<1x64xf32>
    %cst_283 = arith.constant dense<0.000000e+00> : vector<16x64xf32>
    %305 = tpu.matmul %298, %300, %cst_283 {dimension_numbers = #tpu.dot_dimension_numbers<[1], [0], [0], [1], [0, 0, 1, 1], [], []>} : vector<16x64xf32>, vector<64x64xf32>, vector<16x64xf32> -> vector<16x64xf32>
    %cst_284 = arith.constant dense<0.000000e+00> : vector<16x64xf32>
    %306 = tpu.matmul %302, %305, %cst_284 {dimension_numbers = #tpu.dot_dimension_numbers<[1], [0], [0], [1], [0, 0, 1, 1], [], []>} : vector<16x16xf32>, vector<16x64xf32>, vector<16x64xf32> -> vector<16x64xf32>
    %307 = vector.broadcast %304 : vector<1x64xf32> to vector<16x64xf32>
    %308 = arith.addf %306, %307 : vector<16x64xf32>
    %309 = math.tanh %308 : vector<16x64xf32>
    %310 = arith.addf %309, %287 : vector<16x64xf32>
    %cst_285 = arith.constant dense<0.000000e+00> : vector<16x128xf32>
    %311 = tpu.matmul %310, %3, %cst_285 {dimension_numbers = #tpu.dot_dimension_numbers<[1], [0], [0], [1], [0, 0, 1, 1], [], []>} : vector<16x64xf32>, vector<64x128xf32>, vector<16x128xf32> -> vector<16x128xf32>
    %c3_286 = arith.constant 3 : index
    %c0_287 = arith.constant 0 : index
    %c0_288 = arith.constant 0 : index
    %312 = vector.load %arg6[%c3_286, %c0_287, %c0_288] : memref<5x64x128xf32, #tpu.memory_space<vmem>>, vector<1x64x128xf32>
    %313 = vector.shape_cast %312 : vector<1x64x128xf32> to vector<64x128xf32>
    %c20 = arith.constant 20 : index
    %c0_289 = arith.constant 0 : index
    %c0_290 = arith.constant 0 : index
    %314 = vector.load %arg5[%c20, %c0_289, %c0_290] : memref<24x16x16xf32, #tpu.memory_space<vmem>>, vector<1x16x16xf32>
    %315 = vector.shape_cast %314 : vector<1x16x16xf32> to vector<16x16xf32>
    %c12_291 = arith.constant 12 : index
    %c0_292 = arith.constant 0 : index
    %c0_293 = arith.constant 0 : index
    %316 = vector.load %arg8[%c12_291, %c0_292, %c0_293] : memref<16x1x128xf32, #tpu.memory_space<vmem>>, vector<1x1x128xf32>
    %317 = vector.shape_cast %316 : vector<1x1x128xf32> to vector<1x128xf32>
    %cst_294 = arith.constant dense<0.000000e+00> : vector<16x128xf32>
    %318 = tpu.matmul %310, %313, %cst_294 {dimension_numbers = #tpu.dot_dimension_numbers<[1], [0], [0], [1], [0, 0, 1, 1], [], []>} : vector<16x64xf32>, vector<64x128xf32>, vector<16x128xf32> -> vector<16x128xf32>
    %cst_295 = arith.constant dense<0.000000e+00> : vector<16x128xf32>
    %319 = tpu.matmul %315, %318, %cst_295 {dimension_numbers = #tpu.dot_dimension_numbers<[1], [0], [0], [1], [0, 0, 1, 1], [], []>} : vector<16x16xf32>, vector<16x128xf32>, vector<16x128xf32> -> vector<16x128xf32>
    %320 = vector.broadcast %317 : vector<1x128xf32> to vector<16x128xf32>
    %321 = arith.addf %319, %320 : vector<16x128xf32>
    %322 = math.tanh %321 : vector<16x128xf32>
    %c9_296 = arith.constant 9 : index
    %c0_297 = arith.constant 0 : index
    %c0_298 = arith.constant 0 : index
    %323 = vector.load %arg7[%c9_296, %c0_297, %c0_298] : memref<12x128x128xf32, #tpu.memory_space<vmem>>, vector<1x128x128xf32>
    %324 = vector.shape_cast %323 : vector<1x128x128xf32> to vector<128x128xf32>
    %c21 = arith.constant 21 : index
    %c0_299 = arith.constant 0 : index
    %c0_300 = arith.constant 0 : index
    %325 = vector.load %arg5[%c21, %c0_299, %c0_300] : memref<24x16x16xf32, #tpu.memory_space<vmem>>, vector<1x16x16xf32>
    %326 = vector.shape_cast %325 : vector<1x16x16xf32> to vector<16x16xf32>
    %c13_301 = arith.constant 13 : index
    %c0_302 = arith.constant 0 : index
    %c0_303 = arith.constant 0 : index
    %327 = vector.load %arg8[%c13_301, %c0_302, %c0_303] : memref<16x1x128xf32, #tpu.memory_space<vmem>>, vector<1x1x128xf32>
    %328 = vector.shape_cast %327 : vector<1x1x128xf32> to vector<1x128xf32>
    %cst_304 = arith.constant dense<0.000000e+00> : vector<16x128xf32>
    %329 = tpu.matmul %322, %324, %cst_304 {dimension_numbers = #tpu.dot_dimension_numbers<[1], [0], [0], [1], [0, 0, 1, 1], [], []>} : vector<16x128xf32>, vector<128x128xf32>, vector<16x128xf32> -> vector<16x128xf32>
    %cst_305 = arith.constant dense<0.000000e+00> : vector<16x128xf32>
    %330 = tpu.matmul %326, %329, %cst_305 {dimension_numbers = #tpu.dot_dimension_numbers<[1], [0], [0], [1], [0, 0, 1, 1], [], []>} : vector<16x16xf32>, vector<16x128xf32>, vector<16x128xf32> -> vector<16x128xf32>
    %331 = vector.broadcast %328 : vector<1x128xf32> to vector<16x128xf32>
    %332 = arith.addf %330, %331 : vector<16x128xf32>
    %333 = math.tanh %332 : vector<16x128xf32>
    %334 = arith.addf %333, %311 : vector<16x128xf32>
    %c10_306 = arith.constant 10 : index
    %c0_307 = arith.constant 0 : index
    %c0_308 = arith.constant 0 : index
    %335 = vector.load %arg7[%c10_306, %c0_307, %c0_308] : memref<12x128x128xf32, #tpu.memory_space<vmem>>, vector<1x128x128xf32>
    %336 = vector.shape_cast %335 : vector<1x128x128xf32> to vector<128x128xf32>
    %c22 = arith.constant 22 : index
    %c0_309 = arith.constant 0 : index
    %c0_310 = arith.constant 0 : index
    %337 = vector.load %arg5[%c22, %c0_309, %c0_310] : memref<24x16x16xf32, #tpu.memory_space<vmem>>, vector<1x16x16xf32>
    %338 = vector.shape_cast %337 : vector<1x16x16xf32> to vector<16x16xf32>
    %c14_311 = arith.constant 14 : index
    %c0_312 = arith.constant 0 : index
    %c0_313 = arith.constant 0 : index
    %339 = vector.load %arg8[%c14_311, %c0_312, %c0_313] : memref<16x1x128xf32, #tpu.memory_space<vmem>>, vector<1x1x128xf32>
    %340 = vector.shape_cast %339 : vector<1x1x128xf32> to vector<1x128xf32>
    %cst_314 = arith.constant dense<0.000000e+00> : vector<16x128xf32>
    %341 = tpu.matmul %334, %336, %cst_314 {dimension_numbers = #tpu.dot_dimension_numbers<[1], [0], [0], [1], [0, 0, 1, 1], [], []>} : vector<16x128xf32>, vector<128x128xf32>, vector<16x128xf32> -> vector<16x128xf32>
    %cst_315 = arith.constant dense<0.000000e+00> : vector<16x128xf32>
    %342 = tpu.matmul %338, %341, %cst_315 {dimension_numbers = #tpu.dot_dimension_numbers<[1], [0], [0], [1], [0, 0, 1, 1], [], []>} : vector<16x16xf32>, vector<16x128xf32>, vector<16x128xf32> -> vector<16x128xf32>
    %343 = vector.broadcast %340 : vector<1x128xf32> to vector<16x128xf32>
    %344 = arith.addf %342, %343 : vector<16x128xf32>
    %345 = math.tanh %344 : vector<16x128xf32>
    %c11_316 = arith.constant 11 : index
    %c0_317 = arith.constant 0 : index
    %c0_318 = arith.constant 0 : index
    %346 = vector.load %arg7[%c11_316, %c0_317, %c0_318] : memref<12x128x128xf32, #tpu.memory_space<vmem>>, vector<1x128x128xf32>
    %347 = vector.shape_cast %346 : vector<1x128x128xf32> to vector<128x128xf32>
    %c23 = arith.constant 23 : index
    %c0_319 = arith.constant 0 : index
    %c0_320 = arith.constant 0 : index
    %348 = vector.load %arg5[%c23, %c0_319, %c0_320] : memref<24x16x16xf32, #tpu.memory_space<vmem>>, vector<1x16x16xf32>
    %349 = vector.shape_cast %348 : vector<1x16x16xf32> to vector<16x16xf32>
    %c15_321 = arith.constant 15 : index
    %c0_322 = arith.constant 0 : index
    %c0_323 = arith.constant 0 : index
    %350 = vector.load %arg8[%c15_321, %c0_322, %c0_323] : memref<16x1x128xf32, #tpu.memory_space<vmem>>, vector<1x1x128xf32>
    %351 = vector.shape_cast %350 : vector<1x1x128xf32> to vector<1x128xf32>
    %cst_324 = arith.constant dense<0.000000e+00> : vector<16x128xf32>
    %352 = tpu.matmul %345, %347, %cst_324 {dimension_numbers = #tpu.dot_dimension_numbers<[1], [0], [0], [1], [0, 0, 1, 1], [], []>} : vector<16x128xf32>, vector<128x128xf32>, vector<16x128xf32> -> vector<16x128xf32>
    %cst_325 = arith.constant dense<0.000000e+00> : vector<16x128xf32>
    %353 = tpu.matmul %349, %352, %cst_325 {dimension_numbers = #tpu.dot_dimension_numbers<[1], [0], [0], [1], [0, 0, 1, 1], [], []>} : vector<16x16xf32>, vector<16x128xf32>, vector<16x128xf32> -> vector<16x128xf32>
    %354 = vector.broadcast %351 : vector<1x128xf32> to vector<16x128xf32>
    %355 = arith.addf %353, %354 : vector<16x128xf32>
    %356 = math.tanh %355 : vector<16x128xf32>
    %357 = arith.addf %356, %334 : vector<16x128xf32>
    %c3_326 = arith.constant 3 : index
    %c0_327 = arith.constant 0 : index
    %c0_328 = arith.constant 0 : index
    %358 = vector.load %arg9[%c3_326, %c0_327, %c0_328] : memref<4x128x64xf32, #tpu.memory_space<vmem>>, vector<1x128x64xf32>
    %359 = vector.shape_cast %358 : vector<1x128x64xf32> to vector<128x64xf32>
    %c3_329 = arith.constant 3 : index
    %c0_330 = arith.constant 0 : index
    %c0_331 = arith.constant 0 : index
    %360 = vector.load %arg10[%c3_329, %c0_330, %c0_331] : memref<4x3x16xf32, #tpu.memory_space<vmem>>, vector<1x3x16xf32>
    %361 = vector.shape_cast %360 : vector<1x3x16xf32> to vector<3x16xf32>
    %c3_332 = arith.constant 3 : index
    %c0_333 = arith.constant 0 : index
    %c0_334 = arith.constant 0 : index
    %362 = vector.load %arg11[%c3_332, %c0_333, %c0_334] : memref<4x1x64xf32, #tpu.memory_space<vmem>>, vector<1x1x64xf32>
    %363 = vector.shape_cast %362 : vector<1x1x64xf32> to vector<1x64xf32>
    %cst_335 = arith.constant dense<0.000000e+00> : vector<16x64xf32>
    %364 = tpu.matmul %357, %359, %cst_335 {dimension_numbers = #tpu.dot_dimension_numbers<[1], [0], [0], [1], [0, 0, 1, 1], [], []>} : vector<16x128xf32>, vector<128x64xf32>, vector<16x64xf32> -> vector<16x64xf32>
    %cst_336 = arith.constant dense<0.000000e+00> : vector<3x64xf32>
    %365 = tpu.matmul %361, %364, %cst_336 {dimension_numbers = #tpu.dot_dimension_numbers<[1], [0], [0], [1], [0, 0, 1, 1], [], []>} : vector<3x16xf32>, vector<16x64xf32>, vector<3x64xf32> -> vector<3x64xf32>
    %366 = vector.broadcast %363 : vector<1x64xf32> to vector<3x64xf32>
    %367 = arith.addf %365, %366 : vector<3x64xf32>
    %368 = tpu.concatenate %94, %185, %276, %367 in 1 : vector<3x64xf32>, vector<3x64xf32>, vector<3x64xf32>, vector<3x64xf32> -> vector<3x256xf32>
    %c0_337 = arith.constant 0 : index
    %c0_338 = arith.constant 0 : index
    %c0_339 = arith.constant 0 : index
    %369 = vector.load %arg12[%c0_337, %c0_338, %c0_339] : memref<1x3x256xf32, #tpu.memory_space<vmem>>, vector<1x3x256xf32>
    %370 = vector.shape_cast %369 : vector<1x3x256xf32> to vector<3x256xf32>
    %371 = vector.shape_cast %368 : vector<3x256xf32> to vector<1x3x256xf32>
    tpu.vector_store %arg12[%c0_337, %c0_338, %c0_339], %371 {strides = array<i32>} : memref<1x3x256xf32, #tpu.memory_space<vmem>>, vector<1x3x256xf32>,
    return
  }
  func.func @transform_0(%arg0: i32) -> (i32, i32, i32) {
    %c0_i32 = arith.constant 0 : i32
    %c0_i32_0 = arith.constant 0 : i32
    %c0_i32_1 = arith.constant 0 : i32
    return %arg0, %c0_i32, %c0_i32_0 : i32, i32, i32
  }
  func.func @transform_1(%arg0: i32) -> (i32, i32, i32) {
    %c0_i32 = arith.constant 0 : i32
    %c0_i32_0 = arith.constant 0 : i32
    %c0_i32_1 = arith.constant 0 : i32
    %c0_i32_2 = arith.constant 0 : i32
    return %c0_i32, %c0_i32_0, %c0_i32_1 : i32, i32, i32
  }
  func.func @transform_2(%arg0: i32) -> (i32, i32, i32) {
    %c0_i32 = arith.constant 0 : i32
    %c0_i32_0 = arith.constant 0 : i32
    %c0_i32_1 = arith.constant 0 : i32
    %c0_i32_2 = arith.constant 0 : i32
    return %c0_i32, %c0_i32_0, %c0_i32_1 : i32, i32, i32
  }
  func.func @transform_3(%arg0: i32) -> (i32, i32, i32) {
    %c0_i32 = arith.constant 0 : i32
    %c0_i32_0 = arith.constant 0 : i32
    %c0_i32_1 = arith.constant 0 : i32
    %c0_i32_2 = arith.constant 0 : i32
    return %c0_i32, %c0_i32_0, %c0_i32_1 : i32, i32, i32
  }
  func.func @transform_4(%arg0: i32) -> (i32, i32, i32) {
    %c0_i32 = arith.constant 0 : i32
    %c0_i32_0 = arith.constant 0 : i32
    %c0_i32_1 = arith.constant 0 : i32
    %c0_i32_2 = arith.constant 0 : i32
    return %c0_i32, %c0_i32_0, %c0_i32_1 : i32, i32, i32
  }
  func.func @transform_5(%arg0: i32) -> (i32, i32, i32) {
    %c0_i32 = arith.constant 0 : i32
    %c0_i32_0 = arith.constant 0 : i32
    %c0_i32_1 = arith.constant 0 : i32
    %c0_i32_2 = arith.constant 0 : i32
    return %c0_i32, %c0_i32_0, %c0_i32_1 : i32, i32, i32
  }
  func.func @transform_6(%arg0: i32) -> (i32, i32, i32) {
    %c0_i32 = arith.constant 0 : i32
    %c0_i32_0 = arith.constant 0 : i32
    %c0_i32_1 = arith.constant 0 : i32
    %c0_i32_2 = arith.constant 0 : i32
    return %c0_i32, %c0_i32_0, %c0_i32_1 : i32, i32, i32
  }
  func.func @transform_7(%arg0: i32) -> (i32, i32, i32) {
    %c0_i32 = arith.constant 0 : i32
    %c0_i32_0 = arith.constant 0 : i32
    %c0_i32_1 = arith.constant 0 : i32
    %c0_i32_2 = arith.constant 0 : i32
    return %c0_i32, %c0_i32_0, %c0_i32_1 : i32, i32, i32
  }
  func.func @transform_8(%arg0: i32) -> (i32, i32, i32) {
    %c0_i32 = arith.constant 0 : i32
    %c0_i32_0 = arith.constant 0 : i32
    %c0_i32_1 = arith.constant 0 : i32
    %c0_i32_2 = arith.constant 0 : i32
    return %c0_i32, %c0_i32_0, %c0_i32_1 : i32, i32, i32
  }
  func.func @transform_9(%arg0: i32) -> (i32, i32, i32) {
    %c0_i32 = arith.constant 0 : i32
    %c0_i32_0 = arith.constant 0 : i32
    %c0_i32_1 = arith.constant 0 : i32
    %c0_i32_2 = arith.constant 0 : i32
    return %c0_i32, %c0_i32_0, %c0_i32_1 : i32, i32, i32
  }
  func.func @transform_10(%arg0: i32) -> (i32, i32, i32) {
    %c0_i32 = arith.constant 0 : i32
    %c0_i32_0 = arith.constant 0 : i32
    %c0_i32_1 = arith.constant 0 : i32
    %c0_i32_2 = arith.constant 0 : i32
    return %c0_i32, %c0_i32_0, %c0_i32_1 : i32, i32, i32
  }
  func.func @transform_11(%arg0: i32) -> (i32, i32, i32) {
    %c0_i32 = arith.constant 0 : i32
    %c0_i32_0 = arith.constant 0 : i32
    %c0_i32_1 = arith.constant 0 : i32
    return %arg0, %c0_i32, %c0_i32_0 : i32, i32, i32
  }
}

</mosaic_0001>

<bundles_post_ra>
// kernel: multi_stage_forward.1
= control target key start
LH: loop header
LB: loop body
LE: loop exit
PB: predicated region body
PF: predicated region fallthrough
CT: control target
= control target key end

     0   :  { %16 = vsyncpa [#allocation3], 0  ;;  %s10120_s0 = inlined_call_operand.vmem [shape: f32[1,3,64], index: 0, kind: input, shape index: {}]   ;;  %s10121_s1 = inlined_call_operand.hbm [shape: f32[12,64,64], index: 1, kind: input, shape index: {}]   ;;  %s10122_s2 = inlined_call_operand.vmem [shape: f32[12,1,64], index: 2, kind: input, shape index: {}]   ;;  %s10123_s3 = inlined_call_operand.vmem [shape: f32[4,16,3], index: 3, kind: input, shape index: {}]   ;;  %s10124_s4 = inlined_call_operand.vmem [shape: f32[24,16,16], index: 4, kind: input, shape index: {}]   ;;  %s10125_s5 = inlined_call_operand.hbm [shape: f32[5,64,128], index: 5, kind: input, shape index: {}]   ;;  %s10126_s6 = inlined_call_operand.vmem [shape: f32[12,128,128], index: 6, kind: input, shape index: {}]   ;;  %s10127_s7 = inlined_call_operand.vmem [shape: f32[16,1,128], index: 7, kind: input, shape index: {}]   ;;  %s10128_s8 = inlined_call_operand.vmem [shape: f32[4,128,64], index: 8, kind: input, shape index: {}]   ;;  %s10129_s9 = inlined_call_operand.vmem [shape: f32[4,3,16], index: 9, kind: input, shape index: {}]   ;;  %s10130_s10 = inlined_call_operand.vmem [shape: f32[4,1,64], index: 10, kind: input, shape index: {}]   ;;  %s10131_s11 = inlined_call_operand.vmem [shape: f32[1,3,256], index: 11, kind: output, shape index: {}]  }
   0x1   :  { %17 = vsyncpa [#allocation5], 0  ;;  %s8641_s17 = smov [#allocation2]  }
   0x2   :  { %s25_s18 = sshll.u32 %s8641_s17, 4  ;;  %s26_s18 = int_to_ptr.vmem [resolvable:$true] %s25_s18 }
   0x3   :  { %s8605_s19 = scalar_lea.vmem %s26_s18, 12288  ;;  %p8610_p1 = scmp.lt.s32.totalorder %s26_s18, %s26_s18 }
   0x4   :  { %p8606_p0 = scmp.ne.s32.totalorder %s26_s18, %s8605_s19  ;;  %p8611_p2 = scmp.lt.s32.totalorder %s8605_s19, %s8605_s19 }
   0x6   :  { %p8612_p3 = por %p8611_p2, %p8610_p1 }
   0x8   :  { %p8613_p4 = pnand %p8612_p3, %p8606_p0 }
   0xa   :  { %8616 = shalt.err (!%p8613_p4)
}
   0xb   :  { %s8642_s20 = smov 128   ;;  %s8643_s21 = smov 8  }
   0xc   :  { %31 = dma.hbm_to_vmem [thread:$0]  %s10121_s1, 12288, %s26_s18, [#allocation3], %s8642_s20, %s8642_s20, %s8643_s21  }
   0xd   :  { %s8644_s24 = smov [#allocation4]  }
   0xe   :  { %s43_s25 = sshll.u32 %s8644_s24, 4  ;;  %s44_s25 = int_to_ptr.vmem [resolvable:$true] %s43_s25 }
   0xf   :  { %s8625_s26 = scalar_lea.vmem %s44_s25, 5120  ;;  %p8630_p6 = scmp.lt.s32.totalorder %s44_s25, %s44_s25 }
  0x10   :  { %p8626_p5 = scmp.ne.s32.totalorder %s44_s25, %s8625_s26  ;;  %p8631_p7 = scmp.lt.s32.totalorder %s8625_s26, %s8625_s26 }
  0x12   :  { %p8632_p8 = por %p8631_p7, %p8630_p6 }
  0x14   :  { %p8633_p9 = pnand %p8632_p8, %p8626_p5 }
  0x16   :  { %8636 = shalt.err (!%p8633_p9)
}
  0x17   :  { %49 = dma.hbm_to_vmem [thread:$0]  %s10125_s5, 5120, %s44_s25, [#allocation5], %s8642_s20, %s8642_s20, %s8643_s21  }
  0x18   :  { %8637 = dma.done.wait [#allocation3], 12288  }
  0x19   :  { %8638 = vsyncadd [#allocation3], 4294955008 }
  0x1a   :  { %8639 = dma.done.wait [#allocation5], 5120  }
  0x1b   :  { %8640 = vsyncadd [#allocation5], 4294962176  ;;  %v8645_v0 = vmov 0.0   ;;  %vm8646_vm0 = vmmov 0   ;;  %v83_v1 = vld [vmem:[#allocation2 + $0x38] sm:$0xff]  ;;  %v82_v2 = vld [vmem:[#allocation2 + $0x30] sm:$0xff] }
  0x1c   :  { %7314 = vmatprep.subr.mxu0 %v8645_v0  ;;  %7330 = vmatprep.mubr.msk.f32.mxu0 %vm8646_vm0, %v8645_v0  ;;  %v81_v3 = vld [vmem:[#allocation2 + $0x28] sm:$0xff]  ;;  %v80_v4 = vld [vmem:[#allocation2 + $0x20] sm:$0xff]  ;;  %v79_v5 = vld [vmem:[#allocation2 + $0x18] sm:$0xff]  ;;  %vm87_vm1 = vcmask 523264   ;;  %vm167_vm2 = vcmask 23552   ;;  %vm174_vm3 = vcmask 1042432  }
  0x1d   :  { %7315 = vmatpush3.msra.mxu0 %v83_v1  ;;  %v78_v6 = vld [vmem:[#allocation2 + $0x10] sm:$0xff]  ;;  %v77_v7 = vld [vmem:[#allocation2 + $0x8] sm:$0xff]  ;;  %v76_v8 = vld [vmem:[#allocation2] sm:$0xff]  ;;  %vm355_vm4 = vcmask 130048   ;;  %s8647_s27 = smov 64  }
  0x1e   :  { %7316 = vmatprep.subr.mxu0 %v8645_v0  ;;  %v66_v9 = vld [vmem:[%s10120_s0] sm:$0x7]  ;;  %v85_v12 = vld [vmem:[%s10123_s3 + $0x8] sm:$0xff]  ;;  %v263_v14 = vld [vmem:[#allocation2 + $0x78] sm:$0xff] }
  0x1f   :  { %7317 = vmatpush3.msra.mxu0 %v82_v2  ;;  %v84_v10 = vld [vmem:[%s10123_s3] sm:$0xff]  ;;  %v262_v15 = vld [vmem:[#allocation2 + $0x70] sm:$0xff]  ;;  %v261_v16 = vld [vmem:[#allocation2 + $0x68] sm:$0xff] }
  0x20   :  { %7318 = vmatprep.subr.mxu0 %v8645_v0  ;;  %7335 = vmatprep.mubr.msk.f32.mxu1 %vm167_vm2, %v84_v10  ;;  %v260_v17 = vld [vmem:[#allocation2 + $0x60] sm:$0xff]  ;;  %v259_v18 = vld [vmem:[#allocation2 + $0x58] sm:$0xff]  ;;  %v258_v19 = vld [vmem:[#allocation2 + $0x50] sm:$0xff] }
  0x21   :  { %7319 = vmatpush3.msra.mxu0 %v81_v3  ;;  %v257_v20 = vld [vmem:[#allocation2 + $0x48] sm:$0xff]  ;;  %v256_v21 = vld [vmem:[#allocation2 + $0x40] sm:$0xff]  ;;  %v447_v33 = vld [vmem:[#allocation2 + $0xb8] sm:$0xff] }
  0x22   :  { %7320 = vmatprep.subr.mxu0 %v8645_v0  ;;  %v6271_v22 = vld [vmem:[%s10122_s2] ss:$0 sm:$0xff]  ;;  %v265_v32 = vld [vmem:[%s10124_s4 + $0x8] sm:$0xff]  ;;  %v446_v34 = vld [vmem:[#allocation2 + $0xb0] sm:$0xff] }
  0x23   :  { %7321 = vmatpush3.msra.mxu0 %v80_v4  ;;  %v264_v29 = vld [vmem:[%s10124_s4] sm:$0xff]  ;;  %v445_v35 = vld [vmem:[#allocation2 + $0xa8] sm:$0xff]  ;;  %v443_v37 = vld [vmem:[#allocation2 + $0x98] sm:$0xff] }
  0x24   :  { %7322 = vmatprep.subr.mxu0 %v8645_v0  ;;  %v444_v36 = vld [vmem:[#allocation2 + $0xa0] sm:$0xff]  ;;  %v442_v38 = vld [vmem:[#allocation2 + $0x90] sm:$0xff]  ;;  %v441_v39 = vld [vmem:[#allocation2 + $0x88] sm:$0xff] }
  0x25   :  { %7323 = vmatpush3.msra.mxu0 %v79_v5  ;;  %v440_v40 = vld [vmem:[#allocation2 + $0x80] sm:$0xff]  ;;  %v6281_v48 = vld [vmem:[%s10124_s4 + $0x10] sm:$0xff]  ;;  %v6282_v51 = vld [vmem:[%s10124_s4 + $0x18] sm:$0xff] }
  0x26   :  { %7324 = vmatprep.subr.mxu0 %v8645_v0  ;;  %v6278_v41 = vld [vmem:[%s10122_s2 + $0x1] ss:$0 sm:$0xff]  ;;  %v8770_v52 = vld [vmem:[#allocation4 + $0x138] sm:$0xff]  ;;  %v8772_v54 = vld [vmem:[#allocation4 + $0x130] sm:$0xff] }
  0x27   :  { %7325 = vmatpush3.msra.mxu0 %v78_v6  ;;  %v713_v53 = vld [vmem:[#allocation4 + $0x38] sm:$0xff]  ;;  %v712_v55 = vld [vmem:[#allocation4 + $0x30] sm:$0xff]  ;;  %v8776_v56 = vld [vmem:[#allocation4 + $0x128] sm:$0xff] }
  0x28   :  { %7326 = vmatprep.subr.mxu0 %v8645_v0  ;;  %v711_v57 = vld [vmem:[#allocation4 + $0x28] sm:$0xff]  ;;  %v8780_v58 = vld [vmem:[#allocation4 + $0x120] sm:$0xff]  ;;  %v8784_v60 = vld [vmem:[#allocation4 + $0x118] sm:$0xff] }
  0x29   :  { %7327 = vmatpush3.msra.mxu0 %v77_v7  ;;  %v710_v59 = vld [vmem:[#allocation4 + $0x20] sm:$0xff]  ;;  %v709_v61 = vld [vmem:[#allocation4 + $0x18] sm:$0xff]  ;;  %v8788_v62 = vld [vmem:[#allocation4 + $0x110] sm:$0xff] }
  0x2a   :  { %7328 = vmatprep.subr.mxu0 %v8645_v0  ;;  %v708_v63 = vld [vmem:[#allocation4 + $0x10] sm:$0xff]  ;;  %v8792_v1 = vld [vmem:[#allocation4 + $0x108] sm:$0xff]  ;;  %v8796_v3 = vld [vmem:[#allocation4 + $0x100] sm:$0xff] }
  0x2b   :  { %7329 = vmatpush3.msra.mxu0 %v76_v8  ;;  %v707_v2 = vld [vmem:[#allocation4 + $0x8] sm:$0xff]  ;;  %v706_v4 = vld [vmem:[#allocation4] sm:$0xff] }
  0x2c   :  { %7331 = vmatmul.mubr.msk.f32.vlgmr.msra.gmra.mxu0 %vm87_vm1, %v66_v9  ;;  %v6286_v5 = vld [vmem:[%s10122_s2 + $0x2] ss:$0 sm:$0xff] }
  0x2d   :  { %7361 = vmatprep.mubr.msk.f32.mxu0 %vm355_vm4, %v264_v29  ;;  %v886_v29 = vld [vmem:[%s10126_s6 + $0x20] sm:$0xff] }
  0xec   :  { %v157_v11 = vpop.f32.mrf.mxu0 }
  0xed   :  { %7333 = vmatprep.subr.msk.mxu1 %vm174_vm3, %v157_v11 }
  0xee   :  { %v7332_v13 = vpop.f32.mrf.mxu0  ;;  %7334 = vmatpush3.msk.msra.mxu1 %vm174_vm3, %v157_v11 }
  0xef   :  { %7336 = vmatmul.mubr.msk.f32.vlgmr.msra.gmra.mxu1 %vm167_vm2, %v85_v12  ;;  %7338 = vmatprep.subr.mxu1 %v263_v14 }
  0xf0   :  { %7339 = vmatpush3.msra.mxu1 %v263_v14  ;;  %v6291_v14 = vld [vmem:[%s10124_s4 + $0x20] sm:$0xff] }
  0xf1   :  { %7340 = vmatprep.subr.mxu1 %v262_v15 }
  0xf2   :  { %7341 = vmatpush3.msra.mxu1 %v262_v15 }
  0xf3   :  { %7342 = vmatprep.subr.mxu1 %v261_v16 }
  0xf4   :  { %7343 = vmatpush3.msra.mxu1 %v261_v16 }
  0xf5   :  { %7344 = vmatprep.subr.mxu1 %v260_v17 }
  0xf6   :  { %7345 = vmatpush3.msra.mxu1 %v260_v17  ;;  %v6292_v17 = vld [vmem:[%s10124_s4 + $0x28] sm:$0xff] }
  0xf7   :  { %7346 = vmatprep.subr.mxu1 %v259_v18 }
  0xf8   :  { %7347 = vmatpush3.msra.mxu1 %v259_v18  ;;  %v897_v18 = vld [vmem:[%s10126_s6 + $0x78] sm:$0xff] }
  0xf9   :  { %7348 = vmatprep.subr.mxu1 %v258_v19 }
  0xfa   :  { %7349 = vmatpush3.msra.mxu1 %v258_v19  ;;  %v896_v19 = vld [vmem:[%s10126_s6 + $0x70] sm:$0xff] }
  0xfb   :  { %7350 = vmatprep.subr.mxu1 %v257_v20 }
  0xfc   :  { %7351 = vmatpush3.msra.mxu1 %v257_v20  ;;  %v895_v20 = vld [vmem:[%s10126_s6 + $0x68] sm:$0xff] }
  0xfd   :  { %7352 = vmatprep.subr.mxu1 %v256_v21 }
  0xfe   :  { %7353 = vmatpush3.msra.mxu1 %v256_v21  ;;  %v894_v21 = vld [vmem:[%s10126_s6 + $0x60] sm:$0xff] }
  0xff   :  { %7364 = vmatprep.subr.mxu1 %v447_v33 }
 0x1af   :  { %v7337_v23 = vpop.f32.mrf.mxu1 }
 0x1b0   :  { %v250_v24 = vadd.f32 %v7337_v23, %v6271_v22  ;;  %v892_v23 = vld [vmem:[%s10126_s6 + $0x50] sm:$0xff] }
 0x1b1   :  { %v244_v25 = vpop.f32.mrf.mxu1 }
 0x1b2   :  { %v245_v26 = vadd.f32 %v6271_v22, %v244_v25  ;;  %v893_v22 = vld [vmem:[%s10126_s6 + $0x58] sm:$0xff]  ;;  %v890_v25 = vld [vmem:[%s10126_s6 + $0x40] sm:$0xff] }
 0x1b4   :  { %8477 = vtanh.f32 %v245_v26  ;;  %v889_v26 = vld [vmem:[%s10126_s6 + $0x38] sm:$0xff] }
 0x1b5   :  { %8479 = vtanh.f32 %v250_v24  ;;  %v891_v24 = vld [vmem:[%s10126_s6 + $0x48] sm:$0xff] }
 0x1c1   :  { %v8741_v27 = vpop.eup %8477 }
 0x1c2   :  { %v8743_v28 = vpop.eup %8479  ;;  %7354 = vmatprep.mubr.msk.f32.mxu1 %vm87_vm1, %v8741_v27 }
 0x1c3   :  { %7355 = vmatmul.mubr.msk.f32.vlgmr.msra.gmra.mxu1 %vm87_vm1, %v8743_v28 }
 0x1c4   :  { %7365 = vmatpush3.msra.mxu1 %v447_v33  ;;  %v882_v33 = vld [vmem:[%s10126_s6] sm:$0xff] }
 0x1c5   :  { %7366 = vmatprep.subr.mxu1 %v446_v34 }
 0x1c6   :  { %7367 = vmatpush3.msra.mxu1 %v446_v34 }
 0x1c7   :  { %7368 = vmatprep.subr.mxu1 %v445_v35 }
 0x1c8   :  { %7369 = vmatpush3.msra.mxu1 %v445_v35 }
 0x1c9   :  { %7370 = vmatprep.subr.mxu1 %v444_v36 }
 0x1ca   :  { %7371 = vmatpush3.msra.mxu1 %v444_v36  ;;  %v6295_v36 = vld [vmem:[%s10127_s7] ss:$0 sm:$0xff] }
 0x1cb   :  { %7372 = vmatprep.subr.mxu1 %v443_v37 }
 0x1cc   :  { %7373 = vmatpush3.msra.mxu1 %v443_v37 }
 0x1cd   :  { %7374 = vmatprep.subr.mxu1 %v442_v38 }
 0x1ce   :  { %7375 = vmatpush3.msra.mxu1 %v442_v38 }
 0x1cf   :  { %7376 = vmatprep.subr.mxu1 %v441_v39 }
 0x1d0   :  { %7377 = vmatpush3.msra.mxu1 %v441_v39 }
 0x1d1   :  { %7378 = vmatprep.subr.mxu1 %v440_v40 }
 0x1d2   :  { %7379 = vmatpush3.msra.mxu1 %v440_v40 }
 0x1d3   :  { %7409 = vmatprep.subr.mxu1 %v713_v53 }
 0x283   :  { %v7356_v30 = vpop.f32.mrf.mxu1 }
 0x284   :  { %7357 = vmatprep.subr.mxu0 %v7356_v30 }
 0x285   :  { %v340_v31 = vpop.f32.mrf.mxu1  ;;  %7358 = vmatpush3.msra.mxu0 %v7356_v30  ;;  %v885_v30 = vld [vmem:[%s10126_s6 + $0x18] sm:$0xff] }
 0x286   :  { %7359 = vmatprep.subr.mxu0 %v340_v31 }
 0x287   :  { %7360 = vmatpush3.msra.mxu0 %v340_v31  ;;  %v884_v31 = vld [vmem:[%s10126_s6 + $0x10] sm:$0xff] }
 0x288   :  { %7362 = vmatmul.mubr.msk.f32.vlgmr.msra.gmra.mxu0 %vm355_vm4, %v265_v32  ;;  %v883_v32 = vld [vmem:[%s10126_s6 + $0x8] sm:$0xff] }
 0x289   :  { %7387 = vmatprep.mubr.msk.f32.mxu0 %vm355_vm4, %v6281_v48  ;;  %v6318_v48 = vld [vmem:[%s10126_s6 + $0xf0] sm:$0xff] }
 0x348   :  { %v7363_v42 = vpop.f32.mrf.mxu0 }
 0x349   :  { %v434_v43 = vadd.f32 %v7363_v42, %v6278_v41 }
 0x34a   :  { %v428_v44 = vpop.f32.mrf.mxu0 }
 0x34b   :  { %v429_v45 = vadd.f32 %v6278_v41, %v428_v44 }
 0x34d   :  { %8481 = vtanh.f32 %v429_v45 }
 0x34e   :  { %8483 = vtanh.f32 %v434_v43  ;;  %v6298_v43 = vld [vmem:[%s10124_s4 + $0x30] sm:$0xff] }
 0x35a   :  { %v8482_v46 = vpop.eup %8481 }
 0x35b   :  { %v8484_v47 = vpop.eup %8483  ;;  %7380 = vmatprep.mubr.msk.f32.mxu1 %vm87_vm1, %v8482_v46  ;;  %v6299_v46 = vld [vmem:[%s10124_s4 + $0x38] sm:$0xff] }
 0x35c   :  { %7381 = vmatmul.mubr.msk.f32.vlgmr.msra.gmra.mxu1 %vm87_vm1, %v8484_v47  ;;  %v6319_v47 = vld [vmem:[%s10126_s6 + $0xf8] sm:$0xff] }
 0x35d   :  { %7410 = vmatpush3.msra.mxu1 %v713_v53  ;;  %v6314_v53 = vld [vmem:[%s10126_s6 + $0xd0] sm:$0xff] }
 0x35e   :  { %7411 = vmatprep.subr.mxu1 %v712_v55 }
 0x35f   :  { %7412 = vmatpush3.msra.mxu1 %v712_v55  ;;  %v6313_v55 = vld [vmem:[%s10126_s6 + $0xc8] sm:$0xff] }
 0x360   :  { %7413 = vmatprep.subr.mxu1 %v711_v57 }
 0x361   :  { %7414 = vmatpush3.msra.mxu1 %v711_v57  ;;  %v6312_v57 = vld [vmem:[%s10126_s6 + $0xc0] sm:$0xff] }
 0x362   :  { %7415 = vmatprep.subr.mxu1 %v710_v59 }
 0x363   :  { %7416 = vmatpush3.msra.mxu1 %v710_v59  ;;  %v6311_v59 = vld [vmem:[%s10126_s6 + $0xb8] sm:$0xff] }
 0x364   :  { %7417 = vmatprep.subr.mxu1 %v709_v61 }
 0x365   :  { %7418 = vmatpush3.msra.mxu1 %v709_v61  ;;  %v6310_v61 = vld [vmem:[%s10126_s6 + $0xb0] sm:$0xff] }
 0x366   :  { %7419 = vmatprep.subr.mxu1 %v708_v63 }
 0x367   :  { %7420 = vmatpush3.msra.mxu1 %v708_v63  ;;  %v6309_v63 = vld [vmem:[%s10126_s6 + $0xa8] sm:$0xff] }
 0x368   :  { %7421 = vmatprep.subr.mxu1 %v707_v2 }
 0x369   :  { %7422 = vmatpush3.msra.mxu1 %v707_v2  ;;  %v6308_v2 = vld [vmem:[%s10126_s6 + $0xa0] sm:$0xff] }
 0x36a   :  { %7423 = vmatprep.subr.mxu1 %v706_v4 }
 0x36b   :  { %7424 = vmatpush3.msra.mxu1 %v706_v4  ;;  %v6307_v4 = vld [vmem:[%s10126_s6 + $0x98] sm:$0xff] }
 0x41c   :  { %v7382_v49 = vpop.f32.mrf.mxu1 }
 0x41d   :  { %7383 = vmatprep.subr.mxu0 %v7382_v49 }
 0x41e   :  { %v525_v50 = vpop.f32.mrf.mxu1  ;;  %7384 = vmatpush3.msra.mxu0 %v7382_v49  ;;  %v6317_v49 = vld [vmem:[%s10126_s6 + $0xe8] sm:$0xff] }
 0x41f   :  { %7385 = vmatprep.subr.mxu0 %v525_v50 }
 0x420   :  { %7386 = vmatpush3.msra.mxu0 %v525_v50  ;;  %v6316_v50 = vld [vmem:[%s10126_s6 + $0xe0] sm:$0xff] }
 0x421   :  { %7388 = vmatmul.mubr.msk.f32.vlgmr.msra.gmra.mxu0 %vm355_vm4, %v6282_v51  ;;  %7390 = vmatprep.subr.mxu0 %v8770_v52  ;;  %v6315_v51 = vld [vmem:[%s10126_s6 + $0xd8] sm:$0xff] }
 0x422   :  { %7391 = vmatpush3.msra.mxu0 %v8770_v52 }
 0x423   :  { %7392 = vmatprep.subr.mxu0 %v8772_v54 }
 0x424   :  { %7393 = vmatpush3.msra.mxu0 %v8772_v54 }
 0x425   :  { %7394 = vmatprep.subr.mxu0 %v8776_v56 }
 0x426   :  { %7395 = vmatpush3.msra.mxu0 %v8776_v56 }
 0x427   :  { %7396 = vmatprep.subr.mxu0 %v8780_v58 }
 0x428   :  { %7397 = vmatpush3.msra.mxu0 %v8780_v58 }
 0x429   :  { %7398 = vmatprep.subr.mxu0 %v8784_v60 }
 0x42a   :  { %7399 = vmatpush3.msra.mxu0 %v8784_v60 }
 0x42b   :  { %7400 = vmatprep.subr.mxu0 %v8788_v62 }
 0x42c   :  { %7401 = vmatpush3.msra.mxu0 %v8788_v62 }
 0x42d   :  { %7402 = vmatprep.subr.mxu0 %v8792_v1 }
 0x42e   :  { %7403 = vmatpush3.msra.mxu0 %v8792_v1 }
 0x42f   :  { %7404 = vmatprep.subr.mxu0 %v8796_v3 }
 0x430   :  { %7405 = vmatpush3.msra.mxu0 %v8796_v3 }
 0x4e1   :  { %v7389_v6 = vpop.f32.mrf.mxu0 }
 0x4e2   :  { %v618_v7 = vadd.f32 %v7389_v6, %v6286_v5  ;;  %v6305_v6 = vld [vmem:[%s10126_s6 + $0x88] sm:$0xff] }
 0x4e3   :  { %v612_v8 = vpop.f32.mrf.mxu0 }
 0x4e4   :  { %v613_v9 = vadd.f32 %v6286_v5, %v612_v8  ;;  %8485 = vtanh.f32 %v618_v7  ;;  %v6306_v5 = vld [vmem:[%s10126_s6 + $0x90] sm:$0xff]  ;;  %v6304_v7 = vld [vmem:[%s10126_s6 + $0x80] sm:$0xff] }
 0x4e5   :  { %v6301_v8 = vld [vmem:[%s10127_s7 + $0x1] ss:$0 sm:$0xff] }
 0x4e6   :  { %8487 = vtanh.f32 %v613_v9 }
 0x4f1   :  { %v8486_v10 = vpop.eup %8485 }
 0x4f2   :  { %v624_v13 = vadd.f32 %v8486_v10, %v8743_v28  ;;  %v887_v28 = vld [vmem:[%s10126_s6 + $0x28] sm:$0xff] }
 0x4f3   :  { %v8488_v11 = vpop.eup %8487 }
 0x4f4   :  { %v623_v12 = vadd.f32 %v8488_v11, %v8741_v27  ;;  %v888_v27 = vld [vmem:[%s10126_s6 + $0x30] sm:$0xff] }
 0x4f6   :  { %7406 = vmatprep.mubr.msk.f32.mxu0 %vm87_vm1, %v623_v12  ;;  %7425 = vmatprep.mubr.msk.f32.mxu1 %vm87_vm1, %v623_v12 }
 0x4f7   :  { %7407 = vmatmul.mubr.msk.f32.vlgmr.msra.gmra.mxu0 %vm87_vm1, %v624_v13  ;;  %7426 = vmatmul.mubr.msk.f32.vlgmr.msra.gmra.mxu1 %vm87_vm1, %v624_v13 }
 0x4f8   :  { %7432 = vmatprep.mubr.msk.f32.mxu0 %vm355_vm4, %v6291_v14  ;;  %7474 = vmatprep.mubr.msk.f32.mxu1 %vm355_vm4, %v6298_v43 }
 0x5b7   :  { %v7427_v15 = vpop.f32.mrf.mxu1  ;;  %v8867_v34 = vpop.f32.mrf.mxu0 }
 0x5b8   :  { %7428 = vmatprep.subr.mxu0 %v7427_v15 }
 0x5b9   :  { %v784_v16 = vpop.f32.mrf.mxu1  ;;  %7429 = vmatpush3.msra.mxu0 %v7427_v15  ;;  %v8869_v35 = vpop.f32.mrf.mxu0 }
 0x5ba   :  { %7430 = vmatprep.subr.mxu0 %v784_v16 }
 0x5bb   :  { %7431 = vmatpush3.msra.mxu0 %v784_v16 }
 0x5bc   :  { %7433 = vmatmul.mubr.msk.f32.vlgmr.msra.gmra.mxu0 %vm355_vm4, %v6292_v17  ;;  %7435 = vmatprep.subr.mxu0 %v897_v18  ;;  %v6320_v17 = vld [vmem:[%s10124_s4 + $0x40] sm:$0xff] }
 0x5bd   :  { %7436 = vmatpush3.msra.mxu0 %v897_v18 }
 0x5be   :  { %7437 = vmatprep.subr.mxu0 %v896_v19 }
 0x5bf   :  { %7438 = vmatpush3.msra.mxu0 %v896_v19 }
 0x5c0   :  { %7439 = vmatprep.subr.mxu0 %v895_v20 }
 0x5c1   :  { %7440 = vmatpush3.msra.mxu0 %v895_v20  ;;  %v6321_v20 = vld [vmem:[%s10124_s4 + $0x48] sm:$0xff] }
 0x5c2   :  { %7441 = vmatprep.subr.mxu0 %v894_v21 }
 0x5c3   :  { %7442 = vmatpush3.msra.mxu0 %v894_v21  ;;  %v6341_v21 = vld [vmem:[%s10126_s6 + $0x178] sm:$0xff] }
 0x5c4   :  { %7443 = vmatprep.subr.mxu0 %v893_v22 }
 0x5c5   :  { %7444 = vmatpush3.msra.mxu0 %v893_v22  ;;  %v6340_v22 = vld [vmem:[%s10126_s6 + $0x170] sm:$0xff] }
 0x5c6   :  { %7445 = vmatprep.subr.mxu0 %v892_v23 }
 0x5c7   :  { %7446 = vmatpush3.msra.mxu0 %v892_v23  ;;  %v6339_v23 = vld [vmem:[%s10126_s6 + $0x168] sm:$0xff] }
 0x5c8   :  { %7447 = vmatprep.subr.mxu0 %v891_v24 }
 0x5c9   :  { %7448 = vmatpush3.msra.mxu0 %v891_v24  ;;  %v6338_v24 = vld [vmem:[%s10126_s6 + $0x160] sm:$0xff] }
 0x5ca   :  { %7449 = vmatprep.subr.mxu0 %v890_v25 }
 0x5cb   :  { %7450 = vmatpush3.msra.mxu0 %v890_v25  ;;  %v6337_v25 = vld [vmem:[%s10126_s6 + $0x158] sm:$0xff] }
 0x5cc   :  { %7451 = vmatprep.subr.mxu0 %v889_v26 }
 0x5cd   :  { %7452 = vmatpush3.msra.mxu0 %v889_v26  ;;  %v6336_v26 = vld [vmem:[%s10126_s6 + $0x150] sm:$0xff] }
 0x5ce   :  { %7453 = vmatprep.subr.mxu0 %v888_v27 }
 0x5cf   :  { %7454 = vmatpush3.msra.mxu0 %v888_v27  ;;  %v6335_v27 = vld [vmem:[%s10126_s6 + $0x148] sm:$0xff] }
 0x5d0   :  { %7455 = vmatprep.subr.mxu0 %v887_v28 }
 0x5d1   :  { %7456 = vmatpush3.msra.mxu0 %v887_v28  ;;  %v6334_v28 = vld [vmem:[%s10126_s6 + $0x140] sm:$0xff] }
 0x5d2   :  { %7457 = vmatprep.subr.mxu0 %v886_v29 }
 0x5d3   :  { %7458 = vmatpush3.msra.mxu0 %v886_v29  ;;  %v6333_v29 = vld [vmem:[%s10126_s6 + $0x138] sm:$0xff] }
 0x5d4   :  { %7459 = vmatprep.subr.mxu0 %v885_v30 }
 0x5d5   :  { %7460 = vmatpush3.msra.mxu0 %v885_v30  ;;  %v6332_v30 = vld [vmem:[%s10126_s6 + $0x130] sm:$0xff] }
 0x5d6   :  { %7461 = vmatprep.subr.mxu0 %v884_v31 }
 0x5d7   :  { %7462 = vmatpush3.msra.mxu0 %v884_v31  ;;  %v6331_v31 = vld [vmem:[%s10126_s6 + $0x128] sm:$0xff] }
 0x5d8   :  { %7463 = vmatprep.subr.mxu0 %v883_v32 }
 0x5d9   :  { %7464 = vmatpush3.msra.mxu0 %v883_v32  ;;  %v6330_v32 = vld [vmem:[%s10126_s6 + $0x120] sm:$0xff] }
 0x5da   :  { %7465 = vmatprep.subr.mxu0 %v882_v33 }
 0x5db   :  { %7466 = vmatpush3.msra.mxu0 %v882_v33  ;;  %v6329_v33 = vld [vmem:[%s10126_s6 + $0x118] sm:$0xff] }
 0x67c   :  { %v7434_v37 = vpop.f32.mrf.mxu0 }
 0x67d   :  { %v877_v38 = vadd.f32 %v7434_v37, %v6295_v36  ;;  %v6323_v37 = vld [vmem:[%s10127_s7 + $0x2] ss:$0 sm:$0xff] }
 0x67e   :  { %v871_v39 = vpop.f32.mrf.mxu0 }
 0x67f   :  { %v872_v40 = vadd.f32 %v6295_v36, %v871_v39  ;;  %v6326_v36 = vld [vmem:[%s10126_s6 + $0x100] sm:$0xff] }
 0x681   :  { %8489 = vtanh.f32 %v872_v40 }
 0x682   :  { %8491 = vtanh.f32 %v877_v38 }
 0x68e   :  { %v8490_v41 = vpop.eup %8489 }
 0x68f   :  { %v8492_v42 = vpop.eup %8491  ;;  %7467 = vmatprep.mubr.f32.mxu0 %v8490_v41 }
 0x690   :  { %7468 = vmatmul.mubr.f32.vlgmr.msra.gmra.mxu0 %v8492_v42 }
 0x691   :  { %7516 = vmatprep.mubr.msk.f32.mxu0 %vm355_vm4, %v6320_v17 }
 0x750   :  { %v7469_v44 = vpop.f32.mrf.mxu0 }
 0x751   :  { %7470 = vmatprep.subr.mxu1 %v7469_v44 }
 0x752   :  { %v969_v45 = vpop.f32.mrf.mxu0  ;;  %7471 = vmatpush3.msra.mxu1 %v7469_v44  ;;  %v6342_v44 = vld [vmem:[%s10124_s4 + $0x50] sm:$0xff] }
 0x753   :  { %7472 = vmatprep.subr.mxu1 %v969_v45 }
 0x754   :  { %7473 = vmatpush3.msra.mxu1 %v969_v45 }
 0x755   :  { %7475 = vmatmul.mubr.msk.f32.vlgmr.msra.gmra.mxu1 %vm355_vm4, %v6299_v46  ;;  %7477 = vmatprep.subr.mxu1 %v6319_v47 }
 0x756   :  { %7478 = vmatpush3.msra.mxu1 %v6319_v47  ;;  %v6343_v47 = vld [vmem:[%s10124_s4 + $0x58] sm:$0xff] }
 0x757   :  { %7479 = vmatprep.subr.mxu1 %v6318_v48 }
 0x758   :  { %7480 = vmatpush3.msra.mxu1 %v6318_v48  ;;  %v1458_v48 = vld [vmem:[%s10128_s8 + $0x78] sm:$0xff] }
 0x759   :  { %7481 = vmatprep.subr.mxu1 %v6317_v49 }
 0x75a   :  { %7482 = vmatpush3.msra.mxu1 %v6317_v49  ;;  %v1457_v49 = vld [vmem:[%s10128_s8 + $0x70] sm:$0xff] }
 0x75b   :  { %7483 = vmatprep.subr.mxu1 %v6316_v50 }
 0x75c   :  { %7484 = vmatpush3.msra.mxu1 %v6316_v50  ;;  %v1456_v50 = vld [vmem:[%s10128_s8 + $0x68] sm:$0xff] }
 0x75d   :  { %7485 = vmatprep.subr.mxu1 %v6315_v51 }
 0x75e   :  { %7486 = vmatpush3.msra.mxu1 %v6315_v51  ;;  %v1455_v51 = vld [vmem:[%s10128_s8 + $0x60] sm:$0xff] }
 0x75f   :  { %7487 = vmatprep.subr.mxu1 %v6314_v53 }
 0x760   :  { %7488 = vmatpush3.msra.mxu1 %v6314_v53  ;;  %v1454_v53 = vld [vmem:[%s10128_s8 + $0x58] sm:$0xff] }
 0x761   :  { %7489 = vmatprep.subr.mxu1 %v6313_v55 }
 0x762   :  { %7490 = vmatpush3.msra.mxu1 %v6313_v55  ;;  %v1453_v55 = vld [vmem:[%s10128_s8 + $0x50] sm:$0xff] }
 0x763   :  { %7491 = vmatprep.subr.mxu1 %v6312_v57 }
 0x764   :  { %7492 = vmatpush3.msra.mxu1 %v6312_v57  ;;  %v1452_v57 = vld [vmem:[%s10128_s8 + $0x48] sm:$0xff] }
 0x765   :  { %7493 = vmatprep.subr.mxu1 %v6311_v59 }
 0x766   :  { %7494 = vmatpush3.msra.mxu1 %v6311_v59  ;;  %v1451_v59 = vld [vmem:[%s10128_s8 + $0x40] sm:$0xff] }
 0x767   :  { %7495 = vmatprep.subr.mxu1 %v6310_v61 }
 0x768   :  { %7496 = vmatpush3.msra.mxu1 %v6310_v61  ;;  %v1450_v61 = vld [vmem:[%s10128_s8 + $0x38] sm:$0xff] }
 0x769   :  { %7497 = vmatprep.subr.mxu1 %v6309_v63 }
 0x76a   :  { %7498 = vmatpush3.msra.mxu1 %v6309_v63  ;;  %v1449_v63 = vld [vmem:[%s10128_s8 + $0x30] sm:$0xff] }
 0x76b   :  { %7499 = vmatprep.subr.mxu1 %v6308_v2 }
 0x76c   :  { %7500 = vmatpush3.msra.mxu1 %v6308_v2  ;;  %v1448_v2 = vld [vmem:[%s10128_s8 + $0x28] sm:$0xff] }
 0x76d   :  { %7501 = vmatprep.subr.mxu1 %v6307_v4 }
 0x76e   :  { %7502 = vmatpush3.msra.mxu1 %v6307_v4  ;;  %v1447_v4 = vld [vmem:[%s10128_s8 + $0x20] sm:$0xff] }
 0x76f   :  { %7503 = vmatprep.subr.mxu1 %v6306_v5 }
 0x770   :  { %7504 = vmatpush3.msra.mxu1 %v6306_v5  ;;  %v1446_v5 = vld [vmem:[%s10128_s8 + $0x18] sm:$0xff] }
 0x771   :  { %7505 = vmatprep.subr.mxu1 %v6305_v6 }
 0x772   :  { %7506 = vmatpush3.msra.mxu1 %v6305_v6  ;;  %v1445_v6 = vld [vmem:[%s10128_s8 + $0x10] sm:$0xff] }
 0x773   :  { %7507 = vmatprep.subr.mxu1 %v6304_v7 }
 0x774   :  { %7508 = vmatpush3.msra.mxu1 %v6304_v7  ;;  %v1444_v7 = vld [vmem:[%s10128_s8 + $0x8] sm:$0xff] }
 0x815   :  { %v7476_v9 = vpop.f32.mrf.mxu1 }
 0x816   :  { %v1062_v10 = vadd.f32 %v7476_v9, %v6301_v8  ;;  %v6345_v9 = vld [vmem:[%s10127_s7 + $0x3] ss:$0 sm:$0xff] }
 0x817   :  { %v1056_v11 = vpop.f32.mrf.mxu1 }
 0x818   :  { %v1057_v12 = vadd.f32 %v6301_v8, %v1056_v11  ;;  %8493 = vtanh.f32 %v1062_v10  ;;  %v1443_v8 = vld [vmem:[%s10128_s8] sm:$0xff] }
 0x81a   :  { %8495 = vtanh.f32 %v1057_v12 }
 0x825   :  { %v8494_v13 = vpop.eup %8493 }
 0x826   :  { %v8937_v16 = vadd.f32 %v8494_v13, %v8867_v34  ;;  %v6328_v34 = vld [vmem:[%s10126_s6 + $0x110] sm:$0xff] }
 0x827   :  { %v8496_v14 = vpop.eup %8495 }
 0x828   :  { %v8934_v15 = vadd.f32 %v8496_v14, %v8869_v35  ;;  %v6327_v35 = vld [vmem:[%s10126_s6 + $0x108] sm:$0xff] }
 0x82a   :  { %7509 = vmatprep.mubr.f32.mxu1 %v8934_v15 }
 0x82b   :  { %7510 = vmatmul.mubr.f32.vlgmr.msra.gmra.mxu1 %v8937_v16 }
 0x82c   :  { %7558 = vmatprep.mubr.msk.f32.mxu1 %vm355_vm4, %v6342_v44  ;;  %v1795_v44 = vld [vmem:[#allocation2 + $0x100] sm:$0xff] }
 0x8eb   :  { %v7511_v18 = vpop.f32.mrf.mxu1 }
 0x8ec   :  { %7512 = vmatprep.subr.mxu0 %v7511_v18 }
 0x8ed   :  { %v1157_v19 = vpop.f32.mrf.mxu1  ;;  %7513 = vmatpush3.msra.mxu0 %v7511_v18 }
 0x8ee   :  { %7514 = vmatprep.subr.mxu0 %v1157_v19 }
 0x8ef   :  { %7515 = vmatpush3.msra.mxu0 %v1157_v19 }
 0x8f0   :  { %7517 = vmatmul.mubr.msk.f32.vlgmr.msra.gmra.mxu0 %vm355_vm4, %v6321_v20  ;;  %7519 = vmatprep.subr.mxu0 %v6341_v21 }
 0x8f1   :  { %7520 = vmatpush3.msra.mxu0 %v6341_v21  ;;  %v1459_v21 = vld [vmem:[%s10129_s9] sm:$0x7] }
 0x8f2   :  { %7521 = vmatprep.subr.mxu0 %v6340_v22 }
 0x8f3   :  { %7522 = vmatpush3.msra.mxu0 %v6340_v22 }
 0x8f4   :  { %7523 = vmatprep.subr.mxu0 %v6339_v23 }
 0x8f5   :  { %7524 = vmatpush3.msra.mxu0 %v6339_v23  ;;  %v1623_v23 = vld [vmem:[#allocation2 + $0xf8] sm:$0xff] }
 0x8f6   :  { %7525 = vmatprep.subr.mxu0 %v6338_v24 }
 0x8f7   :  { %7526 = vmatpush3.msra.mxu0 %v6338_v24  ;;  %v1620_v24 = vld [vmem:[#allocation2 + $0xe0] sm:$0xff] }
 0x8f8   :  { %7527 = vmatprep.subr.mxu0 %v6337_v25 }
 0x8f9   :  { %7528 = vmatpush3.msra.mxu0 %v6337_v25  ;;  %v1619_v25 = vld [vmem:[#allocation2 + $0xd8] sm:$0xff] }
 0x8fa   :  { %7529 = vmatprep.subr.mxu0 %v6336_v26 }
 0x8fb   :  { %7530 = vmatpush3.msra.mxu0 %v6336_v26  ;;  %v1618_v26 = vld [vmem:[#allocation2 + $0xd0] sm:$0xff] }
 0x8fc   :  { %7531 = vmatprep.subr.mxu0 %v6335_v27 }
 0x8fd   :  { %7532 = vmatpush3.msra.mxu0 %v6335_v27  ;;  %v1617_v27 = vld [vmem:[#allocation2 + $0xc8] sm:$0xff] }
 0x8fe   :  { %7533 = vmatprep.subr.mxu0 %v6334_v28 }
 0x8ff   :  { %7534 = vmatpush3.msra.mxu0 %v6334_v28  ;;  %v1616_v28 = vld [vmem:[#allocation2 + $0xc0] sm:$0xff] }
 0x900   :  { %7535 = vmatprep.subr.mxu0 %v6333_v29 }
 0x901   :  { %7536 = vmatpush3.msra.mxu0 %v6333_v29  ;;  %v6348_v29 = vld [vmem:[%s10130_s10] ss:$0 sm:$0xff] }
 0x902   :  { %7537 = vmatprep.subr.mxu0 %v6332_v30 }
 0x903   :  { %7538 = vmatpush3.msra.mxu0 %v6332_v30 }
 0x904   :  { %7539 = vmatprep.subr.mxu0 %v6331_v31 }
 0x905   :  { %7540 = vmatpush3.msra.mxu0 %v6331_v31 }
 0x906   :  { %7541 = vmatprep.subr.mxu0 %v6330_v32 }
 0x907   :  { %7542 = vmatpush3.msra.mxu0 %v6330_v32 }
 0x908   :  { %7543 = vmatprep.subr.mxu0 %v6329_v33 }
 0x909   :  { %7544 = vmatpush3.msra.mxu0 %v6329_v33  ;;  %v6350_v33 = vld [vmem:[%s10123_s3 + $0x10] sm:$0xff] }
 0x90a   :  { %7545 = vmatprep.subr.mxu0 %v6328_v34 }
 0x90b   :  { %7546 = vmatpush3.msra.mxu0 %v6328_v34 }
 0x90c   :  { %7547 = vmatprep.subr.mxu0 %v6327_v35 }
 0x90d   :  { %7548 = vmatpush3.msra.mxu0 %v6327_v35  ;;  %v6351_v35 = vld [vmem:[%s10123_s3 + $0x18] sm:$0xff] }
 0x90e   :  { %7549 = vmatprep.subr.mxu0 %v6326_v36 }
 0x90f   :  { %7550 = vmatpush3.msra.mxu0 %v6326_v36 }
 0x910   :  { %7596 = vmatprep.subr.mxu0 %v8645_v0 }
 0x9b0   :  { %v7518_v38 = vpop.f32.mrf.mxu0 }
 0x9b1   :  { %v1250_v39 = vadd.f32 %v7518_v38, %v6323_v37  ;;  %v1801_v38 = vld [vmem:[#allocation2 + $0x130] sm:$0xff] }
 0x9b2   :  { %v1244_v40 = vpop.f32.mrf.mxu0 }
 0x9b3   :  { %v1245_v41 = vadd.f32 %v6323_v37, %v1244_v40  ;;  %v1802_v37 = vld [vmem:[#allocation2 + $0x138] sm:$0xff]  ;;  %v1799_v40 = vld [vmem:[#allocation2 + $0x120] sm:$0xff] }
 0x9b5   :  { %8497 = vtanh.f32 %v1245_v41  ;;  %v1798_v41 = vld [vmem:[#allocation2 + $0x118] sm:$0xff] }
 0x9b6   :  { %8499 = vtanh.f32 %v1250_v39  ;;  %v1800_v39 = vld [vmem:[#allocation2 + $0x128] sm:$0xff] }
 0x9c2   :  { %v8498_v42 = vpop.eup %8497 }
 0x9c3   :  { %v8500_v43 = vpop.eup %8499  ;;  %7551 = vmatprep.mubr.f32.mxu0 %v8498_v42  ;;  %v1797_v42 = vld [vmem:[#allocation2 + $0x110] sm:$0xff] }
 0x9c4   :  { %7552 = vmatmul.mubr.f32.vlgmr.msra.gmra.mxu0 %v8500_v43  ;;  %v1796_v43 = vld [vmem:[#allocation2 + $0x108] sm:$0xff] }
 0x9c5   :  { %7600 = vmatprep.mubr.msk.f32.mxu0 %vm8646_vm0, %v8645_v0 }
 0xa84   :  { %v7553_v45 = vpop.f32.mrf.mxu0 }
 0xa85   :  { %7554 = vmatprep.subr.mxu1 %v7553_v45 }
 0xa86   :  { %v1343_v46 = vpop.f32.mrf.mxu0  ;;  %7555 = vmatpush3.msra.mxu1 %v7553_v45  ;;  %v6354_v45 = vld [vmem:[%s10122_s2 + $0x3] ss:$0 sm:$0xff] }
 0xa87   :  { %7556 = vmatprep.subr.mxu1 %v1343_v46 }
 0xa88   :  { %7557 = vmatpush3.msra.mxu1 %v1343_v46 }
 0xa89   :  { %7559 = vmatmul.mubr.msk.f32.vlgmr.msra.gmra.mxu1 %vm355_vm4, %v6343_v47  ;;  %7561 = vmatprep.subr.mxu1 %v1458_v48 }
 0xa8a   :  { %7562 = vmatpush3.msra.mxu1 %v1458_v48 }
 0xa8b   :  { %7563 = vmatprep.subr.mxu1 %v1457_v49 }
 0xa8c   :  { %7564 = vmatpush3.msra.mxu1 %v1457_v49 }
 0xa8d   :  { %7565 = vmatprep.subr.mxu1 %v1456_v50 }
 0xa8e   :  { %7566 = vmatpush3.msra.mxu1 %v1456_v50 }
 0xa8f   :  { %7567 = vmatprep.subr.mxu1 %v1455_v51 }
 0xa90   :  { %7568 = vmatpush3.msra.mxu1 %v1455_v51 }
 0xa91   :  { %7569 = vmatprep.subr.mxu1 %v1454_v53 }
 0xa92   :  { %7570 = vmatpush3.msra.mxu1 %v1454_v53  ;;  %v6358_v53 = vld [vmem:[%s10124_s4 + $0x60] sm:$0xff] }
 0xa93   :  { %7571 = vmatprep.subr.mxu1 %v1453_v55 }
 0xa94   :  { %7572 = vmatpush3.msra.mxu1 %v1453_v55 }
 0xa95   :  { %7573 = vmatprep.subr.mxu1 %v1452_v57 }
 0xa96   :  { %7574 = vmatpush3.msra.mxu1 %v1452_v57 }
 0xa97   :  { %7575 = vmatprep.subr.mxu1 %v1451_v59 }
 0xa98   :  { %7576 = vmatpush3.msra.mxu1 %v1451_v59  ;;  %v6359_v59 = vld [vmem:[%s10124_s4 + $0x68] sm:$0xff] }
 0xa99   :  { %7577 = vmatprep.subr.mxu1 %v1450_v61 }
 0xa9a   :  { %7578 = vmatpush3.msra.mxu1 %v1450_v61  ;;  %v1986_v61 = vld [vmem:[#allocation2 + $0x178] sm:$0xff] }
 0xa9b   :  { %7579 = vmatprep.subr.mxu1 %v1449_v63 }
 0xa9c   :  { %7580 = vmatpush3.msra.mxu1 %v1449_v63  ;;  %v1985_v63 = vld [vmem:[#allocation2 + $0x170] sm:$0xff] }
 0xa9d   :  { %7581 = vmatprep.subr.mxu1 %v1448_v2 }
 0xa9e   :  { %7582 = vmatpush3.msra.mxu1 %v1448_v2  ;;  %v1984_v2 = vld [vmem:[#allocation2 + $0x168] sm:$0xff] }
 0xa9f   :  { %7583 = vmatprep.subr.mxu1 %v1447_v4 }
 0xaa0   :  { %7584 = vmatpush3.msra.mxu1 %v1447_v4  ;;  %v1983_v4 = vld [vmem:[#allocation2 + $0x160] sm:$0xff] }
 0xaa1   :  { %7585 = vmatprep.subr.mxu1 %v1446_v5 }
 0xaa2   :  { %7586 = vmatpush3.msra.mxu1 %v1446_v5  ;;  %v1982_v5 = vld [vmem:[#allocation2 + $0x158] sm:$0xff] }
 0xaa3   :  { %7587 = vmatprep.subr.mxu1 %v1445_v6 }
 0xaa4   :  { %7588 = vmatpush3.msra.mxu1 %v1445_v6  ;;  %v1981_v6 = vld [vmem:[#allocation2 + $0x150] sm:$0xff] }
 0xaa5   :  { %7589 = vmatprep.subr.mxu1 %v1444_v7 }
 0xaa6   :  { %7590 = vmatpush3.msra.mxu1 %v1444_v7  ;;  %v1980_v7 = vld [vmem:[#allocation2 + $0x148] sm:$0xff] }
 0xaa7   :  { %7591 = vmatprep.subr.mxu1 %v1443_v8 }
 0xaa8   :  { %7592 = vmatpush3.msra.mxu1 %v1443_v8  ;;  %v1979_v8 = vld [vmem:[#allocation2 + $0x140] sm:$0xff] }
 0xb49   :  { %v7560_v10 = vpop.f32.mrf.mxu1 }
 0xb4a   :  { %v1436_v11 = vadd.f32 %v7560_v10, %v6345_v9 }
 0xb4b   :  { %v1430_v12 = vpop.f32.mrf.mxu1 }
 0xb4c   :  { %v1431_v13 = vadd.f32 %v6345_v9, %v1430_v12  ;;  %8501 = vtanh.f32 %v1436_v11  ;;  %v6363_v9 = vld [vmem:[%s10122_s2 + $0x4] ss:$0 sm:$0xff] }
 0xb4e   :  { %8503 = vtanh.f32 %v1431_v13 }
 0xb59   :  { %v8502_v14 = vpop.eup %8501 }
 0xb5a   :  { %v1442_v19 = vadd.f32 %v8502_v14, %v8937_v16  ;;  %v1621_v16 = vld [vmem:[#allocation2 + $0xe8] sm:$0xff] }
 0xb5b   :  { %v8504_v17 = vpop.eup %8503 }
 0xb5c   :  { %v1441_v18 = vadd.f32 %v8504_v17, %v8934_v15  ;;  %v1622_v15 = vld [vmem:[#allocation2 + $0xf0] sm:$0xff] }
 0xb5e   :  { %7593 = vmatprep.mubr.f32.mxu1 %v1441_v18  ;;  %v6366_v18 = vld [vmem:[%s10124_s4 + $0x70] sm:$0xff] }
 0xb5f   :  { %7594 = vmatmul.mubr.f32.vlgmr.msra.gmra.mxu1 %v1442_v19 }
 0xb60   :  { %7624 = vmatprep.mubr.msk.f32.mxu1 %vm167_vm2, %v6350_v33  ;;  %v6377_v33 = vld [vmem:[%s10124_s4 + $0x88] sm:$0xff] }
 0xc1f   :  { %v7595_v20 = vpop.f32.mrf.mxu1 }
 0xc20   :  { %7597 = vmatpush3.msra.mxu0 %v7595_v20 }
 0xc21   :  { %v1527_v22 = vpop.f32.mrf.mxu1  ;;  %7598 = vmatprep.subr.mxu0 %v8645_v0 }
 0xc22   :  { %7599 = vmatpush3.msra.mxu0 %v1527_v22  ;;  %v6371_v22 = vld [vmem:[%s10122_s2 + $0x5] ss:$0 sm:$0xff] }
 0xc23   :  { %7601 = vmatmul.mubr.msk.f32.vlgmr.msra.gmra.mxu0 %vm355_vm4, %v1459_v21  ;;  %7603 = vmatprep.subr.mxu0 %v8645_v0  ;;  %v6367_v21 = vld [vmem:[%s10124_s4 + $0x78] sm:$0xff] }
 0xc24   :  { %7604 = vmatpush3.msra.mxu0 %v1623_v23  ;;  %7619 = vmatprep.mubr.msk.f32.mxu0 %vm8646_vm0, %v8645_v0 }
 0xc25   :  { %7605 = vmatprep.subr.mxu0 %v8645_v0 }
 0xc26   :  { %7606 = vmatpush3.msra.mxu0 %v1622_v15 }
 0xc27   :  { %7607 = vmatprep.subr.mxu0 %v8645_v0 }
 0xc28   :  { %7608 = vmatpush3.msra.mxu0 %v1621_v16 }
 0xc29   :  { %7609 = vmatprep.subr.mxu0 %v8645_v0 }
 0xc2a   :  { %7610 = vmatpush3.msra.mxu0 %v1620_v24 }
 0xc2b   :  { %7611 = vmatprep.subr.mxu0 %v8645_v0 }
 0xc2c   :  { %7612 = vmatpush3.msra.mxu0 %v1619_v25 }
 0xc2d   :  { %7613 = vmatprep.subr.mxu0 %v8645_v0 }
 0xc2e   :  { %7614 = vmatpush3.msra.mxu0 %v1618_v26 }
 0xc2f   :  { %7615 = vmatprep.subr.mxu0 %v8645_v0 }
 0xc30   :  { %7616 = vmatpush3.msra.mxu0 %v1617_v27 }
 0xc31   :  { %7617 = vmatprep.subr.mxu0 %v8645_v0 }
 0xc32   :  { %7618 = vmatpush3.msra.mxu0 %v1616_v28 }
 0xce3   :  { %v1611_v30 = vpop.f32.mrf.mxu0 }
 0xce4   :  { %v9082_v31 = vadd.f32 %v6348_v29, %v1611_v30  ;;  %v6376_v29 = vld [vmem:[%s10124_s4 + $0x80] sm:$0xff] }
 0xce5   :  { %v7602_v32 = vpop.f32.mrf.mxu0 }
 0xce6   :  { %7620 = vmatmul.mubr.msk.f32.vlgmr.msra.gmra.mxu0 %vm87_vm1, %v9082_v31 }
 0xce7   :  { %7650 = vmatprep.mubr.msk.f32.mxu0 %vm355_vm4, %v6358_v53  ;;  %v6381_v53 = vld [vmem:[%s10127_s7 + $0x4] ss:$0 sm:$0xff] }
 0xda6   :  { %v1698_v34 = vpop.f32.mrf.mxu0 }
 0xda7   :  { %7622 = vmatprep.subr.msk.mxu1 %vm174_vm3, %v1698_v34 }
 0xda8   :  { %v7621_v36 = vpop.f32.mrf.mxu0  ;;  %7623 = vmatpush3.msk.msra.mxu1 %vm174_vm3, %v1698_v34  ;;  %v6399_v34 = vld [vmem:[%s10126_s6 + $0x1f8] sm:$0xff] }
 0xda9   :  { %7625 = vmatmul.mubr.msk.f32.vlgmr.msra.gmra.mxu1 %vm167_vm2, %v6351_v35  ;;  %7627 = vmatprep.subr.mxu1 %v1802_v37  ;;  %v6398_v35 = vld [vmem:[%s10126_s6 + $0x1f0] sm:$0xff]  ;;  %v6397_v36 = vld [vmem:[%s10126_s6 + $0x1e8] sm:$0xff] }
 0xdaa   :  { %7628 = vmatpush3.msra.mxu1 %v1802_v37  ;;  %v6396_v37 = vld [vmem:[%s10126_s6 + $0x1e0] sm:$0xff] }
 0xdab   :  { %7629 = vmatprep.subr.mxu1 %v1801_v38 }
 0xdac   :  { %7630 = vmatpush3.msra.mxu1 %v1801_v38  ;;  %v6395_v38 = vld [vmem:[%s10126_s6 + $0x1d8] sm:$0xff] }
 0xdad   :  { %7631 = vmatprep.subr.mxu1 %v1800_v39 }
 0xdae   :  { %7632 = vmatpush3.msra.mxu1 %v1800_v39  ;;  %v6394_v39 = vld [vmem:[%s10126_s6 + $0x1d0] sm:$0xff] }
 0xdaf   :  { %7633 = vmatprep.subr.mxu1 %v1799_v40 }
 0xdb0   :  { %7634 = vmatpush3.msra.mxu1 %v1799_v40  ;;  %v6393_v40 = vld [vmem:[%s10126_s6 + $0x1c8] sm:$0xff] }
 0xdb1   :  { %7635 = vmatprep.subr.mxu1 %v1798_v41 }
 0xdb2   :  { %7636 = vmatpush3.msra.mxu1 %v1798_v41  ;;  %v6392_v41 = vld [vmem:[%s10126_s6 + $0x1c0] sm:$0xff] }
 0xdb3   :  { %7637 = vmatprep.subr.mxu1 %v1797_v42 }
 0xdb4   :  { %7638 = vmatpush3.msra.mxu1 %v1797_v42  ;;  %v6391_v42 = vld [vmem:[%s10126_s6 + $0x1b8] sm:$0xff] }
 0xdb5   :  { %7639 = vmatprep.subr.mxu1 %v1796_v43 }
 0xdb6   :  { %7640 = vmatpush3.msra.mxu1 %v1796_v43  ;;  %v6390_v43 = vld [vmem:[%s10126_s6 + $0x1b0] sm:$0xff] }
 0xdb7   :  { %7641 = vmatprep.subr.mxu1 %v1795_v44 }
 0xdb8   :  { %7642 = vmatpush3.msra.mxu1 %v1795_v44  ;;  %v6389_v44 = vld [vmem:[%s10126_s6 + $0x1a8] sm:$0xff] }
 0xe69   :  { %v7626_v46 = vpop.f32.mrf.mxu1 }
 0xe6a   :  { %v1789_v47 = vadd.f32 %v7626_v46, %v6354_v45  ;;  %v6387_v46 = vld [vmem:[%s10126_s6 + $0x198] sm:$0xff] }
 0xe6b   :  { %v1783_v48 = vpop.f32.mrf.mxu1 }
 0xe6c   :  { %v1784_v49 = vadd.f32 %v6354_v45, %v1783_v48  ;;  %v6388_v45 = vld [vmem:[%s10126_s6 + $0x1a0] sm:$0xff]  ;;  %v6385_v48 = vld [vmem:[%s10126_s6 + $0x188] sm:$0xff] }
 0xe6e   :  { %8505 = vtanh.f32 %v1784_v49  ;;  %v6384_v49 = vld [vmem:[%s10126_s6 + $0x180] sm:$0xff] }
 0xe6f   :  { %8507 = vtanh.f32 %v1789_v47  ;;  %v6386_v47 = vld [vmem:[%s10126_s6 + $0x190] sm:$0xff] }
 0xe7b   :  { %v9099_v50 = vpop.eup %8505 }
 0xe7c   :  { %v9101_v51 = vpop.eup %8507  ;;  %7643 = vmatprep.mubr.msk.f32.mxu1 %vm87_vm1, %v9099_v50 }
 0xe7d   :  { %7644 = vmatmul.mubr.msk.f32.vlgmr.msra.gmra.mxu1 %vm87_vm1, %v9101_v51 }
 0xe7e   :  { %7676 = vmatprep.mubr.msk.f32.mxu1 %vm355_vm4, %v6366_v18  ;;  %v6413_v18 = vld [vmem:[%s10126_s6 + $0x238] sm:$0xff] }
 0xf3d   :  { %v7645_v55 = vpop.f32.mrf.mxu1 }
 0xf3e   :  { %7646 = vmatprep.subr.mxu0 %v7645_v55 }
 0xf3f   :  { %v1880_v57 = vpop.f32.mrf.mxu1  ;;  %7647 = vmatpush3.msra.mxu0 %v7645_v55 }
 0xf40   :  { %7648 = vmatprep.subr.mxu0 %v1880_v57 }
 0xf41   :  { %7649 = vmatpush3.msra.mxu0 %v1880_v57 }
 0xf42   :  { %7651 = vmatmul.mubr.msk.f32.vlgmr.msra.gmra.mxu0 %vm355_vm4, %v6359_v59  ;;  %7653 = vmatprep.subr.mxu0 %v1986_v61 }
 0xf43   :  { %7654 = vmatpush3.msra.mxu0 %v1986_v61 }
 0xf44   :  { %7655 = vmatprep.subr.mxu0 %v1985_v63 }
 0xf45   :  { %7656 = vmatpush3.msra.mxu0 %v1985_v63 }
 0xf46   :  { %7657 = vmatprep.subr.mxu0 %v1984_v2 }
 0xf47   :  { %7658 = vmatpush3.msra.mxu0 %v1984_v2 }
 0xf48   :  { %7659 = vmatprep.subr.mxu0 %v1983_v4 }
 0xf49   :  { %7660 = vmatpush3.msra.mxu0 %v1983_v4  ;;  %v6400_v4 = vld [vmem:[%s10124_s4 + $0x90] sm:$0xff] }
 0xf4a   :  { %7661 = vmatprep.subr.mxu0 %v1982_v5 }
 0xf4b   :  { %7662 = vmatpush3.msra.mxu0 %v1982_v5 }
 0xf4c   :  { %7663 = vmatprep.subr.mxu0 %v1981_v6 }
 0xf4d   :  { %7664 = vmatpush3.msra.mxu0 %v1981_v6 }
 0xf4e   :  { %7665 = vmatprep.subr.mxu0 %v1980_v7 }
 0xf4f   :  { %7666 = vmatpush3.msra.mxu0 %v1980_v7  ;;  %v6401_v7 = vld [vmem:[%s10124_s4 + $0x98] sm:$0xff] }
 0xf50   :  { %7667 = vmatprep.subr.mxu0 %v1979_v8 }
 0xf51   :  { %7668 = vmatpush3.msra.mxu0 %v1979_v8  ;;  %v6421_v8 = vld [vmem:[%s10126_s6 + $0x278] sm:$0xff] }
0x1002   :  { %v7652_v10 = vpop.f32.mrf.mxu0 }
0x1003   :  { %v1973_v11 = vadd.f32 %v7652_v10, %v6363_v9  ;;  %v6419_v10 = vld [vmem:[%s10126_s6 + $0x268] sm:$0xff] }
0x1004   :  { %v1967_v12 = vpop.f32.mrf.mxu0 }
0x1005   :  { %v1968_v13 = vadd.f32 %v6363_v9, %v1967_v12  ;;  %v6420_v9 = vld [vmem:[%s10126_s6 + $0x270] sm:$0xff]  ;;  %v6417_v12 = vld [vmem:[%s10126_s6 + $0x258] sm:$0xff] }
0x1007   :  { %8509 = vtanh.f32 %v1968_v13  ;;  %v6416_v13 = vld [vmem:[%s10126_s6 + $0x250] sm:$0xff] }
0x1008   :  { %8511 = vtanh.f32 %v1973_v11  ;;  %v6418_v11 = vld [vmem:[%s10126_s6 + $0x260] sm:$0xff] }
0x1014   :  { %v8510_v14 = vpop.eup %8509 }
0x1015   :  { %v8512_v17 = vpop.eup %8511  ;;  %7669 = vmatprep.mubr.msk.f32.mxu0 %vm87_vm1, %v8510_v14  ;;  %v6415_v14 = vld [vmem:[%s10126_s6 + $0x248] sm:$0xff] }
0x1016   :  { %7670 = vmatmul.mubr.msk.f32.vlgmr.msra.gmra.mxu0 %vm87_vm1, %v8512_v17  ;;  %v6414_v17 = vld [vmem:[%s10126_s6 + $0x240] sm:$0xff] }
0x10d6   :  { %v7671_v19 = vpop.f32.mrf.mxu0 }
0x10d7   :  { %7672 = vmatprep.subr.mxu1 %v7671_v19 }
0x10d8   :  { %v2064_v20 = vpop.f32.mrf.mxu0  ;;  %7673 = vmatpush3.msra.mxu1 %v7671_v19  ;;  %v6412_v19 = vld [vmem:[%s10126_s6 + $0x230] sm:$0xff] }
0x10d9   :  { %7674 = vmatprep.subr.mxu1 %v2064_v20 }
0x10da   :  { %7675 = vmatpush3.msra.mxu1 %v2064_v20  ;;  %v6411_v20 = vld [vmem:[%s10126_s6 + $0x228] sm:$0xff] }
0x10db   :  { %7677 = vmatmul.mubr.msk.f32.vlgmr.msra.gmra.mxu1 %vm355_vm4, %v6367_v21  ;;  %7679 = vmatprep.subr.mxu1 %v8770_v52  ;;  %v6410_v21 = vld [vmem:[%s10126_s6 + $0x220] sm:$0xff] }
0x10dc   :  { %7680 = vmatpush3.msra.mxu1 %v8770_v52  ;;  %v2253_v52 = vld [vmem:[#allocation4 + $0x78] sm:$0xff] }
0x10dd   :  { %7681 = vmatprep.subr.mxu1 %v8772_v54  ;;  %7698 = vmatprep.subr.mxu0 %v2253_v52 }
0x10de   :  { %7682 = vmatpush3.msra.mxu1 %v8772_v54  ;;  %v2252_v54 = vld [vmem:[#allocation4 + $0x70] sm:$0xff]  ;;  %7699 = vmatpush3.msra.mxu0 %v2253_v52  ;;  %v6409_v52 = vld [vmem:[%s10126_s6 + $0x218] sm:$0xff] }
0x10df   :  { %7683 = vmatprep.subr.mxu1 %v8776_v56  ;;  %7700 = vmatprep.subr.mxu0 %v2252_v54 }
0x10e0   :  { %7684 = vmatpush3.msra.mxu1 %v8776_v56  ;;  %v2251_v56 = vld [vmem:[#allocation4 + $0x68] sm:$0xff]  ;;  %7701 = vmatpush3.msra.mxu0 %v2252_v54  ;;  %v6408_v54 = vld [vmem:[%s10126_s6 + $0x210] sm:$0xff] }
0x10e1   :  { %7685 = vmatprep.subr.mxu1 %v8780_v58  ;;  %7702 = vmatprep.subr.mxu0 %v2251_v56 }
0x10e2   :  { %7686 = vmatpush3.msra.mxu1 %v8780_v58  ;;  %v2250_v58 = vld [vmem:[#allocation4 + $0x60] sm:$0xff]  ;;  %7703 = vmatpush3.msra.mxu0 %v2251_v56  ;;  %v6407_v56 = vld [vmem:[%s10126_s6 + $0x208] sm:$0xff] }
0x10e3   :  { %7687 = vmatprep.subr.mxu1 %v8784_v60  ;;  %7704 = vmatprep.subr.mxu0 %v2250_v58 }
0x10e4   :  { %7688 = vmatpush3.msra.mxu1 %v8784_v60  ;;  %v2249_v60 = vld [vmem:[#allocation4 + $0x58] sm:$0xff]  ;;  %7705 = vmatpush3.msra.mxu0 %v2250_v58  ;;  %v6406_v58 = vld [vmem:[%s10126_s6 + $0x200] sm:$0xff] }
0x10e5   :  { %7689 = vmatprep.subr.mxu1 %v8788_v62  ;;  %7706 = vmatprep.subr.mxu0 %v2249_v60 }
0x10e6   :  { %7690 = vmatpush3.msra.mxu1 %v8788_v62  ;;  %v2248_v62 = vld [vmem:[#allocation4 + $0x50] sm:$0xff]  ;;  %7707 = vmatpush3.msra.mxu0 %v2249_v60  ;;  %v6403_v60 = vld [vmem:[%s10127_s7 + $0x5] ss:$0 sm:$0xff] }
0x10e7   :  { %7691 = vmatprep.subr.mxu1 %v8792_v1  ;;  %7708 = vmatprep.subr.mxu0 %v2248_v62 }
0x10e8   :  { %7692 = vmatpush3.msra.mxu1 %v8792_v1  ;;  %v2247_v1 = vld [vmem:[#allocation4 + $0x48] sm:$0xff]  ;;  %7709 = vmatpush3.msra.mxu0 %v2248_v62 }
0x10e9   :  { %7693 = vmatprep.subr.mxu1 %v8796_v3  ;;  %7710 = vmatprep.subr.mxu0 %v2247_v1 }
0x10ea   :  { %7694 = vmatpush3.msra.mxu1 %v8796_v3  ;;  %v2246_v3 = vld [vmem:[#allocation4 + $0x40] sm:$0xff]  ;;  %7711 = vmatpush3.msra.mxu0 %v2247_v1 }
0x10eb   :  { %7712 = vmatprep.subr.mxu0 %v2246_v3 }
0x10ec   :  { %7713 = vmatpush3.msra.mxu0 %v2246_v3 }
0x119b   :  { %v7678_v23 = vpop.f32.mrf.mxu1 }
0x119c   :  { %v2157_v15 = vadd.f32 %v7678_v23, %v6371_v22 }
0x119d   :  { %v2151_v16 = vpop.f32.mrf.mxu1 }
0x119e   :  { %v2152_v24 = vadd.f32 %v6371_v22, %v2151_v16  ;;  %8513 = vtanh.f32 %v2157_v15 }
0x11a0   :  { %8515 = vtanh.f32 %v2152_v24 }
0x11ab   :  { %v8514_v25 = vpop.eup %8513 }
0x11ac   :  { %v2163_v28 = vadd.f32 %v8514_v25, %v9101_v51  ;;  %v6422_v25 = vld [vmem:[%s10124_s4 + $0xa0] sm:$0xff] }
0x11ad   :  { %v8516_v26 = vpop.eup %8515 }
0x11ae   :  { %v2162_v27 = vadd.f32 %v8516_v26, %v9099_v50 }
0x11b0   :  { %7695 = vmatprep.mubr.msk.f32.mxu1 %vm87_vm1, %v2162_v27  ;;  %7714 = vmatprep.mubr.msk.f32.mxu0 %vm87_vm1, %v2162_v27 }
0x11b1   :  { %7696 = vmatmul.mubr.msk.f32.vlgmr.msra.gmra.mxu1 %vm87_vm1, %v2163_v28  ;;  %7715 = vmatmul.mubr.msk.f32.vlgmr.msra.gmra.mxu0 %vm87_vm1, %v2163_v28  ;;  %v6423_v28 = vld [vmem:[%s10124_s4 + $0xa8] sm:$0xff] }
0x11b2   :  { %7721 = vmatprep.mubr.msk.f32.mxu1 %vm355_vm4, %v6376_v29  ;;  %7763 = vmatprep.mubr.msk.f32.mxu0 %vm355_vm4, %v6400_v4  ;;  %v6443_v29 = vld [vmem:[%s10126_s6 + $0x2f8] sm:$0xff]  ;;  %v6463_v4 = vld [vmem:[%s10128_s8 + $0xe8] sm:$0xff] }
0x1271   :  { %v7716_v30 = vpop.f32.mrf.mxu0  ;;  %v9209_v50 = vpop.f32.mrf.mxu1 }
0x1272   :  { %7717 = vmatprep.subr.mxu1 %v7716_v30 }
0x1273   :  { %v2325_v32 = vpop.f32.mrf.mxu0  ;;  %7718 = vmatpush3.msra.mxu1 %v7716_v30  ;;  %v9211_v51 = vpop.f32.mrf.mxu1  ;;  %v6442_v30 = vld [vmem:[%s10126_s6 + $0x2f0] sm:$0xff] }
0x1274   :  { %7719 = vmatprep.subr.mxu1 %v2325_v32 }
0x1275   :  { %7720 = vmatpush3.msra.mxu1 %v2325_v32  ;;  %v6441_v32 = vld [vmem:[%s10126_s6 + $0x2e8] sm:$0xff] }
0x1276   :  { %7722 = vmatmul.mubr.msk.f32.vlgmr.msra.gmra.mxu1 %vm355_vm4, %v6377_v33  ;;  %7724 = vmatprep.subr.mxu1 %v6399_v34  ;;  %v6440_v33 = vld [vmem:[%s10126_s6 + $0x2e0] sm:$0xff] }
0x1277   :  { %7725 = vmatpush3.msra.mxu1 %v6399_v34  ;;  %v6439_v34 = vld [vmem:[%s10126_s6 + $0x2d8] sm:$0xff] }
0x1278   :  { %7726 = vmatprep.subr.mxu1 %v6398_v35 }
0x1279   :  { %7727 = vmatpush3.msra.mxu1 %v6398_v35  ;;  %v6438_v35 = vld [vmem:[%s10126_s6 + $0x2d0] sm:$0xff] }
0x127a   :  { %7728 = vmatprep.subr.mxu1 %v6397_v36 }
0x127b   :  { %7729 = vmatpush3.msra.mxu1 %v6397_v36  ;;  %v6437_v36 = vld [vmem:[%s10126_s6 + $0x2c8] sm:$0xff] }
0x127c   :  { %7730 = vmatprep.subr.mxu1 %v6396_v37 }
0x127d   :  { %7731 = vmatpush3.msra.mxu1 %v6396_v37  ;;  %v6436_v37 = vld [vmem:[%s10126_s6 + $0x2c0] sm:$0xff] }
0x127e   :  { %7732 = vmatprep.subr.mxu1 %v6395_v38 }
0x127f   :  { %7733 = vmatpush3.msra.mxu1 %v6395_v38  ;;  %v6435_v38 = vld [vmem:[%s10126_s6 + $0x2b8] sm:$0xff] }
0x1280   :  { %7734 = vmatprep.subr.mxu1 %v6394_v39 }
0x1281   :  { %7735 = vmatpush3.msra.mxu1 %v6394_v39  ;;  %v6434_v39 = vld [vmem:[%s10126_s6 + $0x2b0] sm:$0xff] }
0x1282   :  { %7736 = vmatprep.subr.mxu1 %v6393_v40 }
0x1283   :  { %7737 = vmatpush3.msra.mxu1 %v6393_v40  ;;  %v6433_v40 = vld [vmem:[%s10126_s6 + $0x2a8] sm:$0xff] }
0x1284   :  { %7738 = vmatprep.subr.mxu1 %v6392_v41 }
0x1285   :  { %7739 = vmatpush3.msra.mxu1 %v6392_v41  ;;  %v6432_v41 = vld [vmem:[%s10126_s6 + $0x2a0] sm:$0xff] }
0x1286   :  { %7740 = vmatprep.subr.mxu1 %v6391_v42 }
0x1287   :  { %7741 = vmatpush3.msra.mxu1 %v6391_v42  ;;  %v6431_v42 = vld [vmem:[%s10126_s6 + $0x298] sm:$0xff] }
0x1288   :  { %7742 = vmatprep.subr.mxu1 %v6390_v43 }
0x1289   :  { %7743 = vmatpush3.msra.mxu1 %v6390_v43  ;;  %v6430_v43 = vld [vmem:[%s10126_s6 + $0x290] sm:$0xff] }
0x128a   :  { %7744 = vmatprep.subr.mxu1 %v6389_v44 }
0x128b   :  { %7745 = vmatpush3.msra.mxu1 %v6389_v44  ;;  %v6429_v44 = vld [vmem:[%s10126_s6 + $0x288] sm:$0xff] }
0x128c   :  { %7746 = vmatprep.subr.mxu1 %v6388_v45 }
0x128d   :  { %7747 = vmatpush3.msra.mxu1 %v6388_v45  ;;  %v6428_v45 = vld [vmem:[%s10126_s6 + $0x280] sm:$0xff] }
0x128e   :  { %7748 = vmatprep.subr.mxu1 %v6387_v46 }
0x128f   :  { %7749 = vmatpush3.msra.mxu1 %v6387_v46  ;;  %v6425_v46 = vld [vmem:[%s10127_s7 + $0x6] ss:$0 sm:$0xff] }
0x1290   :  { %7750 = vmatprep.subr.mxu1 %v6386_v47 }
0x1291   :  { %7751 = vmatpush3.msra.mxu1 %v6386_v47 }
0x1292   :  { %7752 = vmatprep.subr.mxu1 %v6385_v48 }
0x1293   :  { %7753 = vmatpush3.msra.mxu1 %v6385_v48 }
0x1294   :  { %7754 = vmatprep.subr.mxu1 %v6384_v49 }
0x1295   :  { %7755 = vmatpush3.msra.mxu1 %v6384_v49 }
0x1336   :  { %v7723_v55 = vpop.f32.mrf.mxu1 }
0x1337   :  { %v2418_v57 = vadd.f32 %v7723_v55, %v6381_v53  ;;  %v6444_v55 = vld [vmem:[%s10124_s4 + $0xb0] sm:$0xff] }
0x1338   :  { %v2412_v59 = vpop.f32.mrf.mxu1 }
0x1339   :  { %v2413_v61 = vadd.f32 %v6381_v53, %v2412_v59 }
0x133b   :  { %8517 = vtanh.f32 %v2413_v61  ;;  %v6445_v61 = vld [vmem:[%s10124_s4 + $0xb8] sm:$0xff] }
0x133c   :  { %8519 = vtanh.f32 %v2418_v57 }
0x1348   :  { %v8518_v63 = vpop.eup %8517 }
0x1349   :  { %v8520_v2 = vpop.eup %8519  ;;  %7756 = vmatprep.mubr.f32.mxu1 %v8518_v63  ;;  %v6465_v63 = vld [vmem:[%s10128_s8 + $0xf8] sm:$0xff] }
0x134a   :  { %7757 = vmatmul.mubr.f32.vlgmr.msra.gmra.mxu1 %v8520_v2  ;;  %v6464_v2 = vld [vmem:[%s10128_s8 + $0xf0] sm:$0xff] }
0x134b   :  { %7805 = vmatprep.mubr.msk.f32.mxu1 %vm355_vm4, %v6422_v25  ;;  %v3165_v25 = vld [vmem:[#allocation2 + $0x1a0] sm:$0xff] }
0x140a   :  { %v7758_v5 = vpop.f32.mrf.mxu1 }
0x140b   :  { %7759 = vmatprep.subr.mxu0 %v7758_v5 }
0x140c   :  { %v2511_v6 = vpop.f32.mrf.mxu1  ;;  %7760 = vmatpush3.msra.mxu0 %v7758_v5  ;;  %v6462_v5 = vld [vmem:[%s10128_s8 + $0xe0] sm:$0xff] }
0x140d   :  { %7761 = vmatprep.subr.mxu0 %v2511_v6 }
0x140e   :  { %7762 = vmatpush3.msra.mxu0 %v2511_v6  ;;  %v6461_v6 = vld [vmem:[%s10128_s8 + $0xd8] sm:$0xff] }
0x140f   :  { %7764 = vmatmul.mubr.msk.f32.vlgmr.msra.gmra.mxu0 %vm355_vm4, %v6401_v7  ;;  %7766 = vmatprep.subr.mxu0 %v6421_v8  ;;  %v6460_v7 = vld [vmem:[%s10128_s8 + $0xd0] sm:$0xff] }
0x1410   :  { %7767 = vmatpush3.msra.mxu0 %v6421_v8  ;;  %v6459_v8 = vld [vmem:[%s10128_s8 + $0xc8] sm:$0xff] }
0x1411   :  { %7768 = vmatprep.subr.mxu0 %v6420_v9 }
0x1412   :  { %7769 = vmatpush3.msra.mxu0 %v6420_v9  ;;  %v6458_v9 = vld [vmem:[%s10128_s8 + $0xc0] sm:$0xff] }
0x1413   :  { %7770 = vmatprep.subr.mxu0 %v6419_v10 }
0x1414   :  { %7771 = vmatpush3.msra.mxu0 %v6419_v10  ;;  %v6457_v10 = vld [vmem:[%s10128_s8 + $0xb8] sm:$0xff] }
0x1415   :  { %7772 = vmatprep.subr.mxu0 %v6418_v11 }
0x1416   :  { %7773 = vmatpush3.msra.mxu0 %v6418_v11  ;;  %v6456_v11 = vld [vmem:[%s10128_s8 + $0xb0] sm:$0xff] }
0x1417   :  { %7774 = vmatprep.subr.mxu0 %v6417_v12 }
0x1418   :  { %7775 = vmatpush3.msra.mxu0 %v6417_v12  ;;  %v6455_v12 = vld [vmem:[%s10128_s8 + $0xa8] sm:$0xff] }
0x1419   :  { %7776 = vmatprep.subr.mxu0 %v6416_v13 }
0x141a   :  { %7777 = vmatpush3.msra.mxu0 %v6416_v13  ;;  %v6454_v13 = vld [vmem:[%s10128_s8 + $0xa0] sm:$0xff] }
0x141b   :  { %7778 = vmatprep.subr.mxu0 %v6415_v14 }
0x141c   :  { %7779 = vmatpush3.msra.mxu0 %v6415_v14  ;;  %v6453_v14 = vld [vmem:[%s10128_s8 + $0x98] sm:$0xff] }
0x141d   :  { %7780 = vmatprep.subr.mxu0 %v6414_v17 }
0x141e   :  { %7781 = vmatpush3.msra.mxu0 %v6414_v17  ;;  %v6452_v17 = vld [vmem:[%s10128_s8 + $0x90] sm:$0xff] }
0x141f   :  { %7782 = vmatprep.subr.mxu0 %v6413_v18 }
0x1420   :  { %7783 = vmatpush3.msra.mxu0 %v6413_v18  ;;  %v6451_v18 = vld [vmem:[%s10128_s8 + $0x88] sm:$0xff] }
0x1421   :  { %7784 = vmatprep.subr.mxu0 %v6412_v19 }
0x1422   :  { %7785 = vmatpush3.msra.mxu0 %v6412_v19  ;;  %v6450_v19 = vld [vmem:[%s10128_s8 + $0x80] sm:$0xff] }
0x1423   :  { %7786 = vmatprep.subr.mxu0 %v6411_v20 }
0x1424   :  { %7787 = vmatpush3.msra.mxu0 %v6411_v20  ;;  %v6447_v20 = vld [vmem:[%s10127_s7 + $0x7] ss:$0 sm:$0xff] }
0x1425   :  { %7788 = vmatprep.subr.mxu0 %v6410_v21 }
0x1426   :  { %7789 = vmatpush3.msra.mxu0 %v6410_v21 }
0x1427   :  { %7790 = vmatprep.subr.mxu0 %v6409_v52 }
0x1428   :  { %7791 = vmatpush3.msra.mxu0 %v6409_v52 }
0x1429   :  { %7792 = vmatprep.subr.mxu0 %v6408_v54 }
0x142a   :  { %7793 = vmatpush3.msra.mxu0 %v6408_v54 }
0x142b   :  { %7794 = vmatprep.subr.mxu0 %v6407_v56 }
0x142c   :  { %7795 = vmatpush3.msra.mxu0 %v6407_v56 }
0x142d   :  { %7796 = vmatprep.subr.mxu0 %v6406_v58 }
0x142e   :  { %7797 = vmatpush3.msra.mxu0 %v6406_v58 }
0x14cf   :  { %v7765_v62 = vpop.f32.mrf.mxu0 }
0x14d0   :  { %v2604_v1 = vadd.f32 %v7765_v62, %v6403_v60 }
0x14d1   :  { %v2598_v3 = vpop.f32.mrf.mxu0 }
0x14d2   :  { %v2599_v22 = vadd.f32 %v6403_v60, %v2598_v3  ;;  %8521 = vtanh.f32 %v2604_v1 }
0x14d4   :  { %8523 = vtanh.f32 %v2599_v22  ;;  %v6466_v22 = vld [vmem:[%s10129_s9 + $0x4] sm:$0x7] }
0x14df   :  { %v8522_v23 = vpop.eup %8521 }
0x14e0   :  { %v9279_v24 = vadd.f32 %v8522_v23, %v9209_v50 }
0x14e1   :  { %v8524_v15 = vpop.eup %8523 }
0x14e2   :  { %v9276_v16 = vadd.f32 %v8524_v15, %v9211_v51  ;;  %v3168_v15 = vld [vmem:[#allocation2 + $0x1b8] sm:$0xff] }
0x14e4   :  { %7798 = vmatprep.mubr.f32.mxu0 %v9276_v16 }
0x14e5   :  { %7799 = vmatmul.mubr.f32.vlgmr.msra.gmra.mxu0 %v9279_v24 }
0x14e6   :  { %7847 = vmatprep.mubr.msk.f32.mxu0 %vm355_vm4, %v6444_v55 }
0x15a5   :  { %v7800_v26 = vpop.f32.mrf.mxu0 }
0x15a6   :  { %7801 = vmatprep.subr.mxu1 %v7800_v26 }
0x15a7   :  { %v2699_v27 = vpop.f32.mrf.mxu0  ;;  %7802 = vmatpush3.msra.mxu1 %v7800_v26  ;;  %v3164_v26 = vld [vmem:[#allocation2 + $0x198] sm:$0xff] }
0x15a8   :  { %7803 = vmatprep.subr.mxu1 %v2699_v27 }
0x15a9   :  { %7804 = vmatpush3.msra.mxu1 %v2699_v27  ;;  %v3163_v27 = vld [vmem:[#allocation2 + $0x190] sm:$0xff] }
0x15aa   :  { %7806 = vmatmul.mubr.msk.f32.vlgmr.msra.gmra.mxu1 %vm355_vm4, %v6423_v28  ;;  %7808 = vmatprep.subr.mxu1 %v6443_v29  ;;  %v3162_v28 = vld [vmem:[#allocation2 + $0x188] sm:$0xff] }
0x15ab   :  { %7809 = vmatpush3.msra.mxu1 %v6443_v29  ;;  %v3161_v29 = vld [vmem:[#allocation2 + $0x180] sm:$0xff] }
0x15ac   :  { %7810 = vmatprep.subr.mxu1 %v6442_v30 }
0x15ad   :  { %7811 = vmatpush3.msra.mxu1 %v6442_v30  ;;  %v6468_v30 = vld [vmem:[%s10130_s10 + $0x1] ss:$0 sm:$0xff] }
0x15ae   :  { %7812 = vmatprep.subr.mxu1 %v6441_v32 }
0x15af   :  { %7813 = vmatpush3.msra.mxu1 %v6441_v32 }
0x15b0   :  { %7814 = vmatprep.subr.mxu1 %v6440_v33 }
0x15b1   :  { %7815 = vmatpush3.msra.mxu1 %v6440_v33 }
0x15b2   :  { %7816 = vmatprep.subr.mxu1 %v6439_v34 }
0x15b3   :  { %7817 = vmatpush3.msra.mxu1 %v6439_v34 }
0x15b4   :  { %7818 = vmatprep.subr.mxu1 %v6438_v35 }
0x15b5   :  { %7819 = vmatpush3.msra.mxu1 %v6438_v35  ;;  %v6470_v35 = vld [vmem:[%s10123_s3 + $0x20] sm:$0xff] }
0x15b6   :  { %7820 = vmatprep.subr.mxu1 %v6437_v36 }
0x15b7   :  { %7821 = vmatpush3.msra.mxu1 %v6437_v36 }
0x15b8   :  { %7822 = vmatprep.subr.mxu1 %v6436_v37 }
0x15b9   :  { %7823 = vmatpush3.msra.mxu1 %v6436_v37  ;;  %v6471_v37 = vld [vmem:[%s10123_s3 + $0x28] sm:$0xff] }
0x15ba   :  { %7824 = vmatprep.subr.mxu1 %v6435_v38 }
0x15bb   :  { %7825 = vmatpush3.msra.mxu1 %v6435_v38 }
0x15bc   :  { %7826 = vmatprep.subr.mxu1 %v6434_v39 }
0x15bd   :  { %7827 = vmatpush3.msra.mxu1 %v6434_v39  ;;  %v3347_v39 = vld [vmem:[#allocation2 + $0x1f8] sm:$0xff] }
0x15be   :  { %7828 = vmatprep.subr.mxu1 %v6433_v40 }
0x15bf   :  { %7829 = vmatpush3.msra.mxu1 %v6433_v40  ;;  %v3346_v40 = vld [vmem:[#allocation2 + $0x1f0] sm:$0xff] }
0x15c0   :  { %7830 = vmatprep.subr.mxu1 %v6432_v41 }
0x15c1   :  { %7831 = vmatpush3.msra.mxu1 %v6432_v41  ;;  %v3345_v41 = vld [vmem:[#allocation2 + $0x1e8] sm:$0xff] }
0x15c2   :  { %7832 = vmatprep.subr.mxu1 %v6431_v42 }
0x15c3   :  { %7833 = vmatpush3.msra.mxu1 %v6431_v42  ;;  %v3344_v42 = vld [vmem:[#allocation2 + $0x1e0] sm:$0xff] }
0x15c4   :  { %7834 = vmatprep.subr.mxu1 %v6430_v43 }
0x15c5   :  { %7835 = vmatpush3.msra.mxu1 %v6430_v43  ;;  %v3343_v43 = vld [vmem:[#allocation2 + $0x1d8] sm:$0xff] }
0x15c6   :  { %7836 = vmatprep.subr.mxu1 %v6429_v44 }
0x15c7   :  { %7837 = vmatpush3.msra.mxu1 %v6429_v44  ;;  %v3342_v44 = vld [vmem:[#allocation2 + $0x1d0] sm:$0xff] }
0x15c8   :  { %7838 = vmatprep.subr.mxu1 %v6428_v45 }
0x15c9   :  { %7839 = vmatpush3.msra.mxu1 %v6428_v45  ;;  %v3341_v45 = vld [vmem:[#allocation2 + $0x1c8] sm:$0xff] }
0x15ca   :  { %7885 = vmatprep.subr.mxu1 %v8645_v0 }
0x166a   :  { %v7807_v47 = vpop.f32.mrf.mxu1 }
0x166b   :  { %v2792_v48 = vadd.f32 %v7807_v47, %v6425_v46  ;;  %v6474_v47 = vld [vmem:[%s10122_s2 + $0x6] ss:$0 sm:$0xff] }
0x166c   :  { %v2786_v49 = vpop.f32.mrf.mxu1 }
0x166d   :  { %v2787_v50 = vadd.f32 %v6425_v46, %v2786_v49  ;;  %v3340_v46 = vld [vmem:[#allocation2 + $0x1c0] sm:$0xff] }
0x166f   :  { %8525 = vtanh.f32 %v2787_v50 }
0x1670   :  { %8527 = vtanh.f32 %v2792_v48 }
0x167c   :  { %v8526_v51 = vpop.eup %8525 }
0x167d   :  { %v8528_v53 = vpop.eup %8527  ;;  %7840 = vmatprep.mubr.f32.mxu1 %v8526_v51 }
0x167e   :  { %7841 = vmatmul.mubr.f32.vlgmr.msra.gmra.mxu1 %v8528_v53 }
0x167f   :  { %7889 = vmatprep.mubr.msk.f32.mxu1 %vm8646_vm0, %v8645_v0 }
0x173e   :  { %v7842_v57 = vpop.f32.mrf.mxu1 }
0x173f   :  { %7843 = vmatprep.subr.mxu0 %v7842_v57 }
0x1740   :  { %v2885_v59 = vpop.f32.mrf.mxu1  ;;  %7844 = vmatpush3.msra.mxu0 %v7842_v57  ;;  %v6478_v57 = vld [vmem:[%s10124_s4 + $0xc0] sm:$0xff] }
0x1741   :  { %7845 = vmatprep.subr.mxu0 %v2885_v59 }
0x1742   :  { %7846 = vmatpush3.msra.mxu0 %v2885_v59 }
0x1743   :  { %7848 = vmatmul.mubr.msk.f32.vlgmr.msra.gmra.mxu0 %vm355_vm4, %v6445_v61  ;;  %7850 = vmatprep.subr.mxu0 %v6465_v63 }
0x1744   :  { %7851 = vmatpush3.msra.mxu0 %v6465_v63  ;;  %v6479_v63 = vld [vmem:[%s10124_s4 + $0xc8] sm:$0xff] }
0x1745   :  { %7852 = vmatprep.subr.mxu0 %v6464_v2 }
0x1746   :  { %7853 = vmatpush3.msra.mxu0 %v6464_v2  ;;  %v3531_v2 = vld [vmem:[#allocation2 + $0x238] sm:$0xff] }
0x1747   :  { %7854 = vmatprep.subr.mxu0 %v6463_v4 }
0x1748   :  { %7855 = vmatpush3.msra.mxu0 %v6463_v4  ;;  %v3530_v4 = vld [vmem:[#allocation2 + $0x230] sm:$0xff] }
0x1749   :  { %7856 = vmatprep.subr.mxu0 %v6462_v5 }
0x174a   :  { %7857 = vmatpush3.msra.mxu0 %v6462_v5  ;;  %v3529_v5 = vld [vmem:[#allocation2 + $0x228] sm:$0xff] }
0x174b   :  { %7858 = vmatprep.subr.mxu0 %v6461_v6 }
0x174c   :  { %7859 = vmatpush3.msra.mxu0 %v6461_v6  ;;  %v3528_v6 = vld [vmem:[#allocation2 + $0x220] sm:$0xff] }
0x174d   :  { %7860 = vmatprep.subr.mxu0 %v6460_v7 }
0x174e   :  { %7861 = vmatpush3.msra.mxu0 %v6460_v7  ;;  %v3527_v7 = vld [vmem:[#allocation2 + $0x218] sm:$0xff] }
0x174f   :  { %7862 = vmatprep.subr.mxu0 %v6459_v8 }
0x1750   :  { %7863 = vmatpush3.msra.mxu0 %v6459_v8  ;;  %v3526_v8 = vld [vmem:[#allocation2 + $0x210] sm:$0xff] }
0x1751   :  { %7864 = vmatprep.subr.mxu0 %v6458_v9 }
0x1752   :  { %7865 = vmatpush3.msra.mxu0 %v6458_v9  ;;  %v3525_v9 = vld [vmem:[#allocation2 + $0x208] sm:$0xff] }
0x1753   :  { %7866 = vmatprep.subr.mxu0 %v6457_v10 }
0x1754   :  { %7867 = vmatpush3.msra.mxu0 %v6457_v10  ;;  %v3524_v10 = vld [vmem:[#allocation2 + $0x200] sm:$0xff] }
0x1755   :  { %7868 = vmatprep.subr.mxu0 %v6456_v11 }
0x1756   :  { %7869 = vmatpush3.msra.mxu0 %v6456_v11  ;;  %v6483_v11 = vld [vmem:[%s10122_s2 + $0x7] ss:$0 sm:$0xff] }
0x1757   :  { %7870 = vmatprep.subr.mxu0 %v6455_v12 }
0x1758   :  { %7871 = vmatpush3.msra.mxu0 %v6455_v12 }
0x1759   :  { %7872 = vmatprep.subr.mxu0 %v6454_v13 }
0x175a   :  { %7873 = vmatpush3.msra.mxu0 %v6454_v13 }
0x175b   :  { %7874 = vmatprep.subr.mxu0 %v6453_v14 }
0x175c   :  { %7875 = vmatpush3.msra.mxu0 %v6453_v14 }
0x175d   :  { %7876 = vmatprep.subr.mxu0 %v6452_v17 }
0x175e   :  { %7877 = vmatpush3.msra.mxu0 %v6452_v17 }
0x175f   :  { %7878 = vmatprep.subr.mxu0 %v6451_v18 }
0x1760   :  { %7879 = vmatpush3.msra.mxu0 %v6451_v18 }
0x1761   :  { %7880 = vmatprep.subr.mxu0 %v6450_v19 }
0x1762   :  { %7881 = vmatpush3.msra.mxu0 %v6450_v19 }
0x1803   :  { %v7849_v21 = vpop.f32.mrf.mxu0 }
0x1804   :  { %v2978_v52 = vadd.f32 %v7849_v21, %v6447_v20 }
0x1805   :  { %v2972_v54 = vpop.f32.mrf.mxu0 }
0x1806   :  { %v2973_v56 = vadd.f32 %v6447_v20, %v2972_v54  ;;  %8529 = vtanh.f32 %v2978_v52  ;;  %v6486_v20 = vld [vmem:[%s10124_s4 + $0xd0] sm:$0xff]  ;;  %v6487_v54 = vld [vmem:[%s10124_s4 + $0xd8] sm:$0xff] }
0x1808   :  { %8531 = vtanh.f32 %v2973_v56  ;;  %v9468_v56 = vld [vmem:[#allocation4 + $0x138] sm:$0xff] }
0x1813   :  { %v8530_v58 = vpop.eup %8529 }
0x1814   :  { %v2984_v1 = vadd.f32 %v8530_v58, %v9279_v24  ;;  %v3166_v24 = vld [vmem:[#allocation2 + $0x1a8] sm:$0xff]  ;;  %v9472_v58 = vld [vmem:[#allocation4 + $0x130] sm:$0xff] }
0x1815   :  { %v8532_v60 = vpop.eup %8531 }
0x1816   :  { %v2983_v62 = vadd.f32 %v8532_v60, %v9276_v16  ;;  %v3167_v16 = vld [vmem:[#allocation2 + $0x1b0] sm:$0xff]  ;;  %v9476_v60 = vld [vmem:[#allocation4 + $0x128] sm:$0xff] }
0x1818   :  { %7882 = vmatprep.mubr.f32.mxu0 %v2983_v62  ;;  %v9480_v62 = vld [vmem:[#allocation4 + $0x120] sm:$0xff] }
0x1819   :  { %7883 = vmatmul.mubr.f32.vlgmr.msra.gmra.mxu0 %v2984_v1  ;;  %v9484_v1 = vld [vmem:[#allocation4 + $0x118] sm:$0xff] }
0x181a   :  { %7913 = vmatprep.mubr.msk.f32.mxu0 %vm167_vm2, %v6470_v35 }
0x18d9   :  { %v7884_v3 = vpop.f32.mrf.mxu0 }
0x18da   :  { %7886 = vmatpush3.msra.mxu1 %v7884_v3  ;;  %v9488_v3 = vld [vmem:[#allocation4 + $0x110] sm:$0xff] }
0x18db   :  { %v3072_v23 = vpop.f32.mrf.mxu0  ;;  %7887 = vmatprep.subr.mxu1 %v8645_v0 }
0x18dc   :  { %7888 = vmatpush3.msra.mxu1 %v3072_v23  ;;  %v9496_v23 = vld [vmem:[#allocation4 + $0x100] sm:$0xff] }
0x18dd   :  { %7890 = vmatmul.mubr.msk.f32.vlgmr.msra.gmra.mxu1 %vm355_vm4, %v6466_v22  ;;  %7892 = vmatprep.subr.mxu1 %v8645_v0  ;;  %v9492_v22 = vld [vmem:[#allocation4 + $0x108] sm:$0xff] }
0x18de   :  { %7893 = vmatpush3.msra.mxu1 %v3168_v15  ;;  %7908 = vmatprep.mubr.msk.f32.mxu1 %vm8646_vm0, %v8645_v0  ;;  %v3798_v15 = vld [vmem:[#allocation4 + $0xb8] sm:$0xff] }
0x18df   :  { %7894 = vmatprep.subr.mxu1 %v8645_v0 }
0x18e0   :  { %7895 = vmatpush3.msra.mxu1 %v3167_v16  ;;  %v3797_v16 = vld [vmem:[#allocation4 + $0xb0] sm:$0xff] }
0x18e1   :  { %7896 = vmatprep.subr.mxu1 %v8645_v0 }
0x18e2   :  { %7897 = vmatpush3.msra.mxu1 %v3166_v24  ;;  %v3796_v24 = vld [vmem:[#allocation4 + $0xa8] sm:$0xff] }
0x18e3   :  { %7898 = vmatprep.subr.mxu1 %v8645_v0 }
0x18e4   :  { %7899 = vmatpush3.msra.mxu1 %v3165_v25  ;;  %v3795_v25 = vld [vmem:[#allocation4 + $0xa0] sm:$0xff] }
0x18e5   :  { %7900 = vmatprep.subr.mxu1 %v8645_v0 }
0x18e6   :  { %7901 = vmatpush3.msra.mxu1 %v3164_v26  ;;  %v3794_v26 = vld [vmem:[#allocation4 + $0x98] sm:$0xff] }
0x18e7   :  { %7902 = vmatprep.subr.mxu1 %v8645_v0 }
0x18e8   :  { %7903 = vmatpush3.msra.mxu1 %v3163_v27  ;;  %v3793_v27 = vld [vmem:[#allocation4 + $0x90] sm:$0xff] }
0x18e9   :  { %7904 = vmatprep.subr.mxu1 %v8645_v0 }
0x18ea   :  { %7905 = vmatpush3.msra.mxu1 %v3162_v28  ;;  %v3792_v28 = vld [vmem:[#allocation4 + $0x88] sm:$0xff] }
0x18eb   :  { %7906 = vmatprep.subr.mxu1 %v8645_v0 }
0x18ec   :  { %7907 = vmatpush3.msra.mxu1 %v3161_v29  ;;  %v3791_v29 = vld [vmem:[#allocation4 + $0x80] sm:$0xff] }
0x199d   :  { %v3156_v32 = vpop.f32.mrf.mxu1 }
0x199e   :  { %v3157_v33 = vadd.f32 %v6468_v30, %v3156_v32  ;;  %v6491_v30 = vld [vmem:[%s10122_s2 + $0x8] ss:$0 sm:$0xff] }
0x199f   :  { %v7891_v34 = vpop.f32.mrf.mxu1 }
0x19a0   :  { %6250 = vrot.lane.b32.xlu0 %v3157_v33, %s8647_s27  ;;  %7909 = vmatmul.mubr.msk.f32.vlgmr.msra.gmra.mxu1 %vm87_vm1, %v3157_v33 }
0x19a1   :  { %7939 = vmatprep.mubr.msk.f32.mxu1 %vm355_vm4, %v6478_v57  ;;  %v6509_v57 = vld [vmem:[%s10126_s6 + $0x328] sm:$0xff] }
0x1a60   :  { %v3243_v36 = vpop.f32.mrf.mxu1 }
0x1a61   :  { %7911 = vmatprep.subr.msk.mxu0 %vm174_vm3, %v3243_v36 }
0x1a62   :  { %v7910_v38 = vpop.f32.mrf.mxu1  ;;  %7912 = vmatpush3.msk.msra.mxu0 %vm174_vm3, %v3243_v36 }
0x1a63   :  { %7914 = vmatmul.mubr.msk.f32.vlgmr.msra.gmra.mxu0 %vm167_vm2, %v6471_v37  ;;  %7916 = vmatprep.subr.mxu0 %v3347_v39 }
0x1a64   :  { %7917 = vmatpush3.msra.mxu0 %v3347_v39 }
0x1a65   :  { %7918 = vmatprep.subr.mxu0 %v3346_v40 }
0x1a66   :  { %7919 = vmatpush3.msra.mxu0 %v3346_v40  ;;  %v6496_v40 = vld [vmem:[%s10124_s4 + $0xe0] sm:$0xff] }
0x1a67   :  { %7920 = vmatprep.subr.mxu0 %v3345_v41 }
0x1a68   :  { %7921 = vmatpush3.msra.mxu0 %v3345_v41 }
0x1a69   :  { %7922 = vmatprep.subr.mxu0 %v3344_v42 }
0x1a6a   :  { %7923 = vmatpush3.msra.mxu0 %v3344_v42 }
0x1a6b   :  { %7924 = vmatprep.subr.mxu0 %v3343_v43 }
0x1a6c   :  { %7925 = vmatpush3.msra.mxu0 %v3343_v43  ;;  %v6497_v43 = vld [vmem:[%s10124_s4 + $0xe8] sm:$0xff] }
0x1a6d   :  { %7926 = vmatprep.subr.mxu0 %v3342_v44 }
0x1a6e   :  { %7927 = vmatpush3.msra.mxu0 %v3342_v44  ;;  %v6519_v44 = vld [vmem:[%s10126_s6 + $0x378] sm:$0xff] }
0x1a6f   :  { %7928 = vmatprep.subr.mxu0 %v3341_v45 }
0x1a70   :  { %7929 = vmatpush3.msra.mxu0 %v3341_v45  ;;  %v6518_v45 = vld [vmem:[%s10126_s6 + $0x370] sm:$0xff] }
0x1a71   :  { %7930 = vmatprep.subr.mxu0 %v3340_v46 }
0x1a72   :  { %7931 = vmatpush3.msra.mxu0 %v3340_v46  ;;  %v6517_v46 = vld [vmem:[%s10126_s6 + $0x368] sm:$0xff] }
0x1b23   :  { %v7915_v48 = vpop.f32.mrf.mxu0 }
0x1b24   :  { %v3334_v49 = vadd.f32 %v7915_v48, %v6474_v47  ;;  %v6515_v48 = vld [vmem:[%s10126_s6 + $0x358] sm:$0xff] }
0x1b25   :  { %v3328_v50 = vpop.f32.mrf.mxu0 }
0x1b26   :  { %v3329_v51 = vadd.f32 %v6474_v47, %v3328_v50  ;;  %v6516_v47 = vld [vmem:[%s10126_s6 + $0x360] sm:$0xff]  ;;  %v6513_v50 = vld [vmem:[%s10126_s6 + $0x348] sm:$0xff] }
0x1b28   :  { %8533 = vtanh.f32 %v3329_v51  ;;  %v6512_v51 = vld [vmem:[%s10126_s6 + $0x340] sm:$0xff] }
0x1b29   :  { %8535 = vtanh.f32 %v3334_v49  ;;  %v6514_v49 = vld [vmem:[%s10126_s6 + $0x350] sm:$0xff] }
0x1b35   :  { %v9439_v53 = vpop.eup %8533 }
0x1b36   :  { %v9441_v55 = vpop.eup %8535  ;;  %7932 = vmatprep.mubr.msk.f32.mxu0 %vm87_vm1, %v9439_v53 }
0x1b37   :  { %7933 = vmatmul.mubr.msk.f32.vlgmr.msra.gmra.mxu0 %vm87_vm1, %v9441_v55 }
0x1b38   :  { %7965 = vmatprep.mubr.msk.f32.mxu0 %vm355_vm4, %v6486_v20  ;;  %v6541_v20 = vld [vmem:[%s10126_s6 + $0x3f8] sm:$0xff] }
0x1bf7   :  { %v7934_v59 = vpop.f32.mrf.mxu0 }
0x1bf8   :  { %7935 = vmatprep.subr.mxu1 %v7934_v59 }
0x1bf9   :  { %v3425_v61 = vpop.f32.mrf.mxu0  ;;  %7936 = vmatpush3.msra.mxu1 %v7934_v59  ;;  %v6508_v59 = vld [vmem:[%s10126_s6 + $0x320] sm:$0xff] }
0x1bfa   :  { %7937 = vmatprep.subr.mxu1 %v3425_v61 }
0x1bfb   :  { %7938 = vmatpush3.msra.mxu1 %v3425_v61  ;;  %v6507_v61 = vld [vmem:[%s10126_s6 + $0x318] sm:$0xff] }
0x1bfc   :  { %7940 = vmatmul.mubr.msk.f32.vlgmr.msra.gmra.mxu1 %vm355_vm4, %v6479_v63  ;;  %7942 = vmatprep.subr.mxu1 %v3531_v2  ;;  %v6506_v63 = vld [vmem:[%s10126_s6 + $0x310] sm:$0xff] }
0x1bfd   :  { %7943 = vmatpush3.msra.mxu1 %v3531_v2  ;;  %v6505_v2 = vld [vmem:[%s10126_s6 + $0x308] sm:$0xff] }
0x1bfe   :  { %7944 = vmatprep.subr.mxu1 %v3530_v4 }
0x1bff   :  { %7945 = vmatpush3.msra.mxu1 %v3530_v4  ;;  %v6504_v4 = vld [vmem:[%s10126_s6 + $0x300] sm:$0xff] }
0x1c00   :  { %7946 = vmatprep.subr.mxu1 %v3529_v5 }
0x1c01   :  { %7947 = vmatpush3.msra.mxu1 %v3529_v5 }
0x1c02   :  { %7948 = vmatprep.subr.mxu1 %v3528_v6 }
0x1c03   :  { %7949 = vmatpush3.msra.mxu1 %v3528_v6 }
0x1c04   :  { %7950 = vmatprep.subr.mxu1 %v3527_v7 }
0x1c05   :  { %7951 = vmatpush3.msra.mxu1 %v3527_v7  ;;  %v6501_v7 = vld [vmem:[%s10127_s7 + $0x8] ss:$0 sm:$0xff] }
0x1c06   :  { %7952 = vmatprep.subr.mxu1 %v3526_v8 }
0x1c07   :  { %7953 = vmatpush3.msra.mxu1 %v3526_v8 }
0x1c08   :  { %7954 = vmatprep.subr.mxu1 %v3525_v9 }
0x1c09   :  { %7955 = vmatpush3.msra.mxu1 %v3525_v9 }
0x1c0a   :  { %7956 = vmatprep.subr.mxu1 %v3524_v10 }
0x1c0b   :  { %7957 = vmatpush3.msra.mxu1 %v3524_v10 }
0x1c0c   :  { %7987 = vmatprep.subr.mxu1 %v3798_v15 }
0x1cbc   :  { %v7941_v12 = vpop.f32.mrf.mxu1 }
0x1cbd   :  { %v3518_v13 = vadd.f32 %v7941_v12, %v6483_v11 }
0x1cbe   :  { %v3512_v14 = vpop.f32.mrf.mxu1 }
0x1cbf   :  { %v3513_v17 = vadd.f32 %v6483_v11, %v3512_v14  ;;  %v6520_v14 = vld [vmem:[%s10124_s4 + $0xf0] sm:$0xff] }
0x1cc1   :  { %8537 = vtanh.f32 %v3513_v17 }
0x1cc2   :  { %8539 = vtanh.f32 %v3518_v13 }
0x1cce   :  { %v8538_v18 = vpop.eup %8537 }
0x1ccf   :  { %v8540_v19 = vpop.eup %8539  ;;  %7958 = vmatprep.mubr.msk.f32.mxu1 %vm87_vm1, %v8538_v18 }
0x1cd0   :  { %7959 = vmatmul.mubr.msk.f32.vlgmr.msra.gmra.mxu1 %vm87_vm1, %v8540_v19  ;;  %v6521_v19 = vld [vmem:[%s10124_s4 + $0xf8] sm:$0xff] }
0x1cd1   :  { %7988 = vmatpush3.msra.mxu1 %v3798_v15  ;;  %v6537_v15 = vld [vmem:[%s10126_s6 + $0x3d8] sm:$0xff] }
0x1cd2   :  { %7989 = vmatprep.subr.mxu1 %v3797_v16 }
0x1cd3   :  { %7990 = vmatpush3.msra.mxu1 %v3797_v16  ;;  %v6536_v16 = vld [vmem:[%s10126_s6 + $0x3d0] sm:$0xff] }
0x1cd4   :  { %7991 = vmatprep.subr.mxu1 %v3796_v24 }
0x1cd5   :  { %7992 = vmatpush3.msra.mxu1 %v3796_v24  ;;  %v6535_v24 = vld [vmem:[%s10126_s6 + $0x3c8] sm:$0xff] }
0x1cd6   :  { %7993 = vmatprep.subr.mxu1 %v3795_v25 }
0x1cd7   :  { %7994 = vmatpush3.msra.mxu1 %v3795_v25  ;;  %v6534_v25 = vld [vmem:[%s10126_s6 + $0x3c0] sm:$0xff] }
0x1cd8   :  { %7995 = vmatprep.subr.mxu1 %v3794_v26 }
0x1cd9   :  { %7996 = vmatpush3.msra.mxu1 %v3794_v26  ;;  %v6533_v26 = vld [vmem:[%s10126_s6 + $0x3b8] sm:$0xff] }
0x1cda   :  { %7997 = vmatprep.subr.mxu1 %v3793_v27 }
0x1cdb   :  { %7998 = vmatpush3.msra.mxu1 %v3793_v27  ;;  %v6532_v27 = vld [vmem:[%s10126_s6 + $0x3b0] sm:$0xff] }
0x1cdc   :  { %7999 = vmatprep.subr.mxu1 %v3792_v28 }
0x1cdd   :  { %8000 = vmatpush3.msra.mxu1 %v3792_v28  ;;  %v6531_v28 = vld [vmem:[%s10126_s6 + $0x3a8] sm:$0xff] }
0x1cde   :  { %8001 = vmatprep.subr.mxu1 %v3791_v29 }
0x1cdf   :  { %8002 = vmatpush3.msra.mxu1 %v3791_v29  ;;  %v6530_v29 = vld [vmem:[%s10126_s6 + $0x3a0] sm:$0xff] }
0x1d90   :  { %v7960_v21 = vpop.f32.mrf.mxu1 }
0x1d91   :  { %7961 = vmatprep.subr.mxu0 %v7960_v21 }
0x1d92   :  { %v3609_v52 = vpop.f32.mrf.mxu1  ;;  %7962 = vmatpush3.msra.mxu0 %v7960_v21  ;;  %v6540_v21 = vld [vmem:[%s10126_s6 + $0x3f0] sm:$0xff] }
0x1d93   :  { %7963 = vmatprep.subr.mxu0 %v3609_v52 }
0x1d94   :  { %7964 = vmatpush3.msra.mxu0 %v3609_v52  ;;  %v6539_v52 = vld [vmem:[%s10126_s6 + $0x3e8] sm:$0xff] }
0x1d95   :  { %7966 = vmatmul.mubr.msk.f32.vlgmr.msra.gmra.mxu0 %vm355_vm4, %v6487_v54  ;;  %7968 = vmatprep.subr.mxu0 %v9468_v56  ;;  %v6538_v54 = vld [vmem:[%s10126_s6 + $0x3e0] sm:$0xff] }
0x1d96   :  { %7969 = vmatpush3.msra.mxu0 %v9468_v56 }
0x1d97   :  { %7970 = vmatprep.subr.mxu0 %v9472_v58 }
0x1d98   :  { %7971 = vmatpush3.msra.mxu0 %v9472_v58 }
0x1d99   :  { %7972 = vmatprep.subr.mxu0 %v9476_v60 }
0x1d9a   :  { %7973 = vmatpush3.msra.mxu0 %v9476_v60 }
0x1d9b   :  { %7974 = vmatprep.subr.mxu0 %v9480_v62 }
0x1d9c   :  { %7975 = vmatpush3.msra.mxu0 %v9480_v62 }
0x1d9d   :  { %7976 = vmatprep.subr.mxu0 %v9484_v1 }
0x1d9e   :  { %7977 = vmatpush3.msra.mxu0 %v9484_v1 }
0x1d9f   :  { %7978 = vmatprep.subr.mxu0 %v9488_v3 }
0x1da0   :  { %7979 = vmatpush3.msra.mxu0 %v9488_v3 }
0x1da1   :  { %7980 = vmatprep.subr.mxu0 %v9492_v22 }
0x1da2   :  { %7981 = vmatpush3.msra.mxu0 %v9492_v22 }
0x1da3   :  { %7982 = vmatprep.subr.mxu0 %v9496_v23 }
0x1da4   :  { %7983 = vmatpush3.msra.mxu0 %v9496_v23 }
0x1e55   :  { %v7967_v32 = vpop.f32.mrf.mxu0 }
0x1e56   :  { %v3702_v33 = vadd.f32 %v7967_v32, %v6491_v30  ;;  %v6528_v32 = vld [vmem:[%s10126_s6 + $0x390] sm:$0xff] }
0x1e57   :  { %v3696_v34 = vpop.f32.mrf.mxu0 }
0x1e58   :  { %v3697_v35 = vadd.f32 %v6491_v30, %v3696_v34  ;;  %8541 = vtanh.f32 %v3702_v33  ;;  %v6529_v30 = vld [vmem:[%s10126_s6 + $0x398] sm:$0xff]  ;;  %v6527_v33 = vld [vmem:[%s10126_s6 + $0x388] sm:$0xff]  ;;  %v6526_v34 = vld [vmem:[%s10126_s6 + $0x380] sm:$0xff] }
0x1e5a   :  { %8543 = vtanh.f32 %v3697_v35  ;;  %v6523_v35 = vld [vmem:[%s10127_s7 + $0x9] ss:$0 sm:$0xff] }
0x1e65   :  { %v8542_v36 = vpop.eup %8541 }
0x1e66   :  { %v3708_v39 = vadd.f32 %v8542_v36, %v9441_v55  ;;  %v6510_v55 = vld [vmem:[%s10126_s6 + $0x330] sm:$0xff] }
0x1e67   :  { %v8544_v37 = vpop.eup %8543 }
0x1e68   :  { %v3707_v38 = vadd.f32 %v8544_v37, %v9439_v53  ;;  %v6511_v53 = vld [vmem:[%s10126_s6 + $0x338] sm:$0xff] }
0x1e6a   :  { %7984 = vmatprep.mubr.msk.f32.mxu0 %vm87_vm1, %v3707_v38  ;;  %8003 = vmatprep.mubr.msk.f32.mxu1 %vm87_vm1, %v3707_v38 }
0x1e6b   :  { %7985 = vmatmul.mubr.msk.f32.vlgmr.msra.gmra.mxu0 %vm87_vm1, %v3708_v39  ;;  %8004 = vmatmul.mubr.msk.f32.vlgmr.msra.gmra.mxu1 %vm87_vm1, %v3708_v39 }
0x1e6c   :  { %8010 = vmatprep.mubr.msk.f32.mxu0 %vm355_vm4, %v6496_v40  ;;  %8052 = vmatprep.mubr.msk.f32.mxu1 %vm355_vm4, %v6520_v14 }
0x1f2b   :  { %v8005_v41 = vpop.f32.mrf.mxu1  ;;  %v9565_v5 = vpop.f32.mrf.mxu0 }
0x1f2c   :  { %8006 = vmatprep.subr.mxu0 %v8005_v41 }
0x1f2d   :  { %v3870_v42 = vpop.f32.mrf.mxu1  ;;  %8007 = vmatpush3.msra.mxu0 %v8005_v41  ;;  %v9567_v6 = vpop.f32.mrf.mxu0 }
0x1f2e   :  { %8008 = vmatprep.subr.mxu0 %v3870_v42 }
0x1f2f   :  { %8009 = vmatpush3.msra.mxu0 %v3870_v42 }
0x1f30   :  { %8011 = vmatmul.mubr.msk.f32.vlgmr.msra.gmra.mxu0 %vm355_vm4, %v6497_v43  ;;  %8013 = vmatprep.subr.mxu0 %v6519_v44 }
0x1f31   :  { %8014 = vmatpush3.msra.mxu0 %v6519_v44  ;;  %v6542_v44 = vld [vmem:[%s10124_s4 + $0x100] sm:$0xff] }
0x1f32   :  { %8015 = vmatprep.subr.mxu0 %v6518_v45 }
0x1f33   :  { %8016 = vmatpush3.msra.mxu0 %v6518_v45 }
0x1f34   :  { %8017 = vmatprep.subr.mxu0 %v6517_v46 }
0x1f35   :  { %8018 = vmatpush3.msra.mxu0 %v6517_v46 }
0x1f36   :  { %8019 = vmatprep.subr.mxu0 %v6516_v47 }
0x1f37   :  { %8020 = vmatpush3.msra.mxu0 %v6516_v47  ;;  %v6543_v47 = vld [vmem:[%s10124_s4 + $0x108] sm:$0xff] }
0x1f38   :  { %8021 = vmatprep.subr.mxu0 %v6515_v48 }
0x1f39   :  { %8022 = vmatpush3.msra.mxu0 %v6515_v48  ;;  %v6563_v48 = vld [vmem:[%s10126_s6 + $0x478] sm:$0xff] }
0x1f3a   :  { %8023 = vmatprep.subr.mxu0 %v6514_v49 }
0x1f3b   :  { %8024 = vmatpush3.msra.mxu0 %v6514_v49  ;;  %v6562_v49 = vld [vmem:[%s10126_s6 + $0x470] sm:$0xff] }
0x1f3c   :  { %8025 = vmatprep.subr.mxu0 %v6513_v50 }
0x1f3d   :  { %8026 = vmatpush3.msra.mxu0 %v6513_v50  ;;  %v6561_v50 = vld [vmem:[%s10126_s6 + $0x468] sm:$0xff] }
0x1f3e   :  { %8027 = vmatprep.subr.mxu0 %v6512_v51 }
0x1f3f   :  { %8028 = vmatpush3.msra.mxu0 %v6512_v51  ;;  %v6560_v51 = vld [vmem:[%s10126_s6 + $0x460] sm:$0xff] }
0x1f40   :  { %8029 = vmatprep.subr.mxu0 %v6511_v53 }
0x1f41   :  { %8030 = vmatpush3.msra.mxu0 %v6511_v53  ;;  %v6559_v53 = vld [vmem:[%s10126_s6 + $0x458] sm:$0xff] }
0x1f42   :  { %8031 = vmatprep.subr.mxu0 %v6510_v55 }
0x1f43   :  { %8032 = vmatpush3.msra.mxu0 %v6510_v55  ;;  %v6558_v55 = vld [vmem:[%s10126_s6 + $0x450] sm:$0xff] }
0x1f44   :  { %8033 = vmatprep.subr.mxu0 %v6509_v57 }
0x1f45   :  { %8034 = vmatpush3.msra.mxu0 %v6509_v57  ;;  %v6557_v57 = vld [vmem:[%s10126_s6 + $0x448] sm:$0xff] }
0x1f46   :  { %8035 = vmatprep.subr.mxu0 %v6508_v59 }
0x1f47   :  { %8036 = vmatpush3.msra.mxu0 %v6508_v59  ;;  %v6556_v59 = vld [vmem:[%s10126_s6 + $0x440] sm:$0xff] }
0x1f48   :  { %8037 = vmatprep.subr.mxu0 %v6507_v61 }
0x1f49   :  { %8038 = vmatpush3.msra.mxu0 %v6507_v61  ;;  %v6555_v61 = vld [vmem:[%s10126_s6 + $0x438] sm:$0xff] }
0x1f4a   :  { %8039 = vmatprep.subr.mxu0 %v6506_v63 }
0x1f4b   :  { %8040 = vmatpush3.msra.mxu0 %v6506_v63  ;;  %v6554_v63 = vld [vmem:[%s10126_s6 + $0x430] sm:$0xff] }
0x1f4c   :  { %8041 = vmatprep.subr.mxu0 %v6505_v2 }
0x1f4d   :  { %8042 = vmatpush3.msra.mxu0 %v6505_v2  ;;  %v6553_v2 = vld [vmem:[%s10126_s6 + $0x428] sm:$0xff] }
0x1f4e   :  { %8043 = vmatprep.subr.mxu0 %v6504_v4 }
0x1f4f   :  { %8044 = vmatpush3.msra.mxu0 %v6504_v4  ;;  %v6552_v4 = vld [vmem:[%s10126_s6 + $0x420] sm:$0xff] }
0x1ff0   :  { %v8012_v8 = vpop.f32.mrf.mxu0 }
0x1ff1   :  { %v3963_v9 = vadd.f32 %v8012_v8, %v6501_v7  ;;  %v6548_v8 = vld [vmem:[%s10126_s6 + $0x400] sm:$0xff] }
0x1ff2   :  { %v3957_v10 = vpop.f32.mrf.mxu0 }
0x1ff3   :  { %v3958_v11 = vadd.f32 %v6501_v7, %v3957_v10  ;;  %v6549_v7 = vld [vmem:[%s10126_s6 + $0x408] sm:$0xff] }
0x1ff5   :  { %8545 = vtanh.f32 %v3958_v11 }
0x1ff6   :  { %8547 = vtanh.f32 %v3963_v9  ;;  %v6545_v9 = vld [vmem:[%s10127_s7 + $0xa] ss:$0 sm:$0xff] }
0x2002   :  { %v8546_v12 = vpop.eup %8545 }
0x2003   :  { %v8548_v13 = vpop.eup %8547  ;;  %8045 = vmatprep.mubr.f32.mxu0 %v8546_v12 }
0x2004   :  { %8046 = vmatmul.mubr.f32.vlgmr.msra.gmra.mxu0 %v8548_v13 }
0x2005   :  { %8094 = vmatprep.mubr.msk.f32.mxu0 %vm355_vm4, %v6542_v44 }
0x20c4   :  { %v8047_v17 = vpop.f32.mrf.mxu0 }
0x20c5   :  { %8048 = vmatprep.subr.mxu1 %v8047_v17 }
0x20c6   :  { %v4056_v18 = vpop.f32.mrf.mxu0  ;;  %8049 = vmatpush3.msra.mxu1 %v8047_v17 }
0x20c7   :  { %8050 = vmatprep.subr.mxu1 %v4056_v18 }
0x20c8   :  { %8051 = vmatpush3.msra.mxu1 %v4056_v18  ;;  %v6564_v18 = vld [vmem:[%s10124_s4 + $0x110] sm:$0xff] }
0x20c9   :  { %8053 = vmatmul.mubr.msk.f32.vlgmr.msra.gmra.mxu1 %vm355_vm4, %v6521_v19  ;;  %8055 = vmatprep.subr.mxu1 %v6541_v20 }
0x20ca   :  { %8056 = vmatpush3.msra.mxu1 %v6541_v20 }
0x20cb   :  { %8057 = vmatprep.subr.mxu1 %v6540_v21 }
0x20cc   :  { %8058 = vmatpush3.msra.mxu1 %v6540_v21  ;;  %v6565_v21 = vld [vmem:[%s10124_s4 + $0x118] sm:$0xff] }
0x20cd   :  { %8059 = vmatprep.subr.mxu1 %v6539_v52 }
0x20ce   :  { %8060 = vmatpush3.msra.mxu1 %v6539_v52  ;;  %v6585_v52 = vld [vmem:[%s10128_s8 + $0x178] sm:$0xff] }
0x20cf   :  { %8061 = vmatprep.subr.mxu1 %v6538_v54 }
0x20d0   :  { %8062 = vmatpush3.msra.mxu1 %v6538_v54  ;;  %v6584_v54 = vld [vmem:[%s10128_s8 + $0x170] sm:$0xff] }
0x20d1   :  { %8063 = vmatprep.subr.mxu1 %v6537_v15 }
0x20d2   :  { %8064 = vmatpush3.msra.mxu1 %v6537_v15  ;;  %v6583_v15 = vld [vmem:[%s10128_s8 + $0x168] sm:$0xff] }
0x20d3   :  { %8065 = vmatprep.subr.mxu1 %v6536_v16 }
0x20d4   :  { %8066 = vmatpush3.msra.mxu1 %v6536_v16  ;;  %v6582_v16 = vld [vmem:[%s10128_s8 + $0x160] sm:$0xff] }
0x20d5   :  { %8067 = vmatprep.subr.mxu1 %v6535_v24 }
0x20d6   :  { %8068 = vmatpush3.msra.mxu1 %v6535_v24  ;;  %v6581_v24 = vld [vmem:[%s10128_s8 + $0x158] sm:$0xff] }
0x20d7   :  { %8069 = vmatprep.subr.mxu1 %v6534_v25 }
0x20d8   :  { %8070 = vmatpush3.msra.mxu1 %v6534_v25  ;;  %v6580_v25 = vld [vmem:[%s10128_s8 + $0x150] sm:$0xff] }
0x20d9   :  { %8071 = vmatprep.subr.mxu1 %v6533_v26 }
0x20da   :  { %8072 = vmatpush3.msra.mxu1 %v6533_v26  ;;  %v6579_v26 = vld [vmem:[%s10128_s8 + $0x148] sm:$0xff] }
0x20db   :  { %8073 = vmatprep.subr.mxu1 %v6532_v27 }
0x20dc   :  { %8074 = vmatpush3.msra.mxu1 %v6532_v27  ;;  %v6578_v27 = vld [vmem:[%s10128_s8 + $0x140] sm:$0xff] }
0x20dd   :  { %8075 = vmatprep.subr.mxu1 %v6531_v28 }
0x20de   :  { %8076 = vmatpush3.msra.mxu1 %v6531_v28  ;;  %v6577_v28 = vld [vmem:[%s10128_s8 + $0x138] sm:$0xff] }
0x20df   :  { %8077 = vmatprep.subr.mxu1 %v6530_v29 }
0x20e0   :  { %8078 = vmatpush3.msra.mxu1 %v6530_v29  ;;  %v6576_v29 = vld [vmem:[%s10128_s8 + $0x130] sm:$0xff] }
0x20e1   :  { %8079 = vmatprep.subr.mxu1 %v6529_v30 }
0x20e2   :  { %8080 = vmatpush3.msra.mxu1 %v6529_v30  ;;  %v6575_v30 = vld [vmem:[%s10128_s8 + $0x128] sm:$0xff] }
0x20e3   :  { %8081 = vmatprep.subr.mxu1 %v6528_v32 }
0x20e4   :  { %8082 = vmatpush3.msra.mxu1 %v6528_v32  ;;  %v6574_v32 = vld [vmem:[%s10128_s8 + $0x120] sm:$0xff] }
0x20e5   :  { %8083 = vmatprep.subr.mxu1 %v6527_v33 }
0x20e6   :  { %8084 = vmatpush3.msra.mxu1 %v6527_v33  ;;  %v6573_v33 = vld [vmem:[%s10128_s8 + $0x118] sm:$0xff] }
0x20e7   :  { %8085 = vmatprep.subr.mxu1 %v6526_v34 }
0x20e8   :  { %8086 = vmatpush3.msra.mxu1 %v6526_v34  ;;  %v6572_v34 = vld [vmem:[%s10128_s8 + $0x110] sm:$0xff] }
0x2189   :  { %v8054_v36 = vpop.f32.mrf.mxu1 }
0x218a   :  { %v4149_v37 = vadd.f32 %v8054_v36, %v6523_v35  ;;  %v6570_v36 = vld [vmem:[%s10128_s8 + $0x100] sm:$0xff] }
0x218b   :  { %v4143_v38 = vpop.f32.mrf.mxu1 }
0x218c   :  { %v4144_v39 = vadd.f32 %v6523_v35, %v4143_v38  ;;  %8549 = vtanh.f32 %v4149_v37  ;;  %v6571_v35 = vld [vmem:[%s10128_s8 + $0x108] sm:$0xff] }
0x218d   :  { %v6567_v37 = vld [vmem:[%s10127_s7 + $0xb] ss:$0 sm:$0xff] }
0x218e   :  { %8551 = vtanh.f32 %v4144_v39 }
0x2199   :  { %v8550_v40 = vpop.eup %8549 }
0x219a   :  { %v9635_v43 = vadd.f32 %v8550_v40, %v9565_v5  ;;  %v6551_v5 = vld [vmem:[%s10126_s6 + $0x418] sm:$0xff] }
0x219b   :  { %v8552_v41 = vpop.eup %8551 }
0x219c   :  { %v9632_v42 = vadd.f32 %v8552_v41, %v9567_v6  ;;  %v6550_v6 = vld [vmem:[%s10126_s6 + $0x410] sm:$0xff] }
0x219e   :  { %8087 = vmatprep.mubr.f32.mxu1 %v9632_v42 }
0x219f   :  { %8088 = vmatmul.mubr.f32.vlgmr.msra.gmra.mxu1 %v9635_v43 }
0x21a0   :  { %8136 = vmatprep.mubr.msk.f32.mxu1 %vm355_vm4, %v6564_v18  ;;  %v4886_v18 = vld [vmem:[#allocation2 + $0x288] sm:$0xff] }
0x225f   :  { %v8089_v45 = vpop.f32.mrf.mxu1 }
0x2260   :  { %8090 = vmatprep.subr.mxu0 %v8089_v45 }
0x2261   :  { %v4244_v46 = vpop.f32.mrf.mxu1  ;;  %8091 = vmatpush3.msra.mxu0 %v8089_v45 }
0x2262   :  { %8092 = vmatprep.subr.mxu0 %v4244_v46 }
0x2263   :  { %8093 = vmatpush3.msra.mxu0 %v4244_v46 }
0x2264   :  { %8095 = vmatmul.mubr.msk.f32.vlgmr.msra.gmra.mxu0 %vm355_vm4, %v6543_v47  ;;  %8097 = vmatprep.subr.mxu0 %v6563_v48 }
0x2265   :  { %8098 = vmatpush3.msra.mxu0 %v6563_v48 }
0x2266   :  { %8099 = vmatprep.subr.mxu0 %v6562_v49 }
0x2267   :  { %8100 = vmatpush3.msra.mxu0 %v6562_v49  ;;  %v6586_v49 = vld [vmem:[%s10129_s9 + $0x8] sm:$0x7] }
0x2268   :  { %8101 = vmatprep.subr.mxu0 %v6561_v50 }
0x2269   :  { %8102 = vmatpush3.msra.mxu0 %v6561_v50 }
0x226a   :  { %8103 = vmatprep.subr.mxu0 %v6560_v51 }
0x226b   :  { %8104 = vmatpush3.msra.mxu0 %v6560_v51  ;;  %v4713_v51 = vld [vmem:[#allocation2 + $0x278] sm:$0xff] }
0x226c   :  { %8105 = vmatprep.subr.mxu0 %v6559_v53 }
0x226d   :  { %8106 = vmatpush3.msra.mxu0 %v6559_v53  ;;  %v4710_v53 = vld [vmem:[#allocation2 + $0x260] sm:$0xff] }
0x226e   :  { %8107 = vmatprep.subr.mxu0 %v6558_v55 }
0x226f   :  { %8108 = vmatpush3.msra.mxu0 %v6558_v55  ;;  %v4709_v55 = vld [vmem:[#allocation2 + $0x258] sm:$0xff] }
0x2270   :  { %8109 = vmatprep.subr.mxu0 %v6557_v57 }
0x2271   :  { %8110 = vmatpush3.msra.mxu0 %v6557_v57  ;;  %v4708_v57 = vld [vmem:[#allocation2 + $0x250] sm:$0xff] }
0x2272   :  { %8111 = vmatprep.subr.mxu0 %v6556_v59 }
0x2273   :  { %8112 = vmatpush3.msra.mxu0 %v6556_v59  ;;  %v4707_v59 = vld [vmem:[#allocation2 + $0x248] sm:$0xff] }
0x2274   :  { %8113 = vmatprep.subr.mxu0 %v6555_v61 }
0x2275   :  { %8114 = vmatpush3.msra.mxu0 %v6555_v61  ;;  %v4706_v61 = vld [vmem:[#allocation2 + $0x240] sm:$0xff] }
0x2276   :  { %8115 = vmatprep.subr.mxu0 %v6554_v63 }
0x2277   :  { %8116 = vmatpush3.msra.mxu0 %v6554_v63  ;;  %v6588_v63 = vld [vmem:[%s10130_s10 + $0x2] ss:$0 sm:$0xff] }
0x2278   :  { %8117 = vmatprep.subr.mxu0 %v6553_v2 }
0x2279   :  { %8118 = vmatpush3.msra.mxu0 %v6553_v2 }
0x227a   :  { %8119 = vmatprep.subr.mxu0 %v6552_v4 }
0x227b   :  { %8120 = vmatpush3.msra.mxu0 %v6552_v4 }
0x227c   :  { %8121 = vmatprep.subr.mxu0 %v6551_v5 }
0x227d   :  { %8122 = vmatpush3.msra.mxu0 %v6551_v5 }
0x227e   :  { %8123 = vmatprep.subr.mxu0 %v6550_v6 }
0x227f   :  { %8124 = vmatpush3.msra.mxu0 %v6550_v6  ;;  %v6590_v6 = vld [vmem:[%s10123_s3 + $0x30] sm:$0xff] }
0x2280   :  { %8125 = vmatprep.subr.mxu0 %v6549_v7 }
0x2281   :  { %8126 = vmatpush3.msra.mxu0 %v6549_v7 }
0x2282   :  { %8127 = vmatprep.subr.mxu0 %v6548_v8 }
0x2283   :  { %8128 = vmatpush3.msra.mxu0 %v6548_v8  ;;  %v6591_v8 = vld [vmem:[%s10123_s3 + $0x38] sm:$0xff] }
0x2284   :  { %8174 = vmatprep.subr.mxu0 %v8645_v0 }
0x2324   :  { %v8096_v10 = vpop.f32.mrf.mxu0 }
0x2325   :  { %v4337_v11 = vadd.f32 %v8096_v10, %v6545_v9  ;;  %v4892_v10 = vld [vmem:[#allocation2 + $0x2b8] sm:$0xff] }
0x2326   :  { %v4331_v12 = vpop.f32.mrf.mxu0 }
0x2327   :  { %v4332_v13 = vadd.f32 %v6545_v9, %v4331_v12  ;;  %v4890_v12 = vld [vmem:[#allocation2 + $0x2a8] sm:$0xff] }
0x2329   :  { %8553 = vtanh.f32 %v4332_v13  ;;  %v4889_v13 = vld [vmem:[#allocation2 + $0x2a0] sm:$0xff] }
0x232a   :  { %8555 = vtanh.f32 %v4337_v11  ;;  %v4891_v11 = vld [vmem:[#allocation2 + $0x2b0] sm:$0xff] }
0x2336   :  { %v8554_v14 = vpop.eup %8553 }
0x2337   :  { %v8556_v17 = vpop.eup %8555  ;;  %8129 = vmatprep.mubr.f32.mxu0 %v8554_v14  ;;  %v4888_v14 = vld [vmem:[#allocation2 + $0x298] sm:$0xff] }
0x2338   :  { %8130 = vmatmul.mubr.f32.vlgmr.msra.gmra.mxu0 %v8556_v17  ;;  %v4887_v17 = vld [vmem:[#allocation2 + $0x290] sm:$0xff] }
0x2339   :  { %8178 = vmatprep.mubr.msk.f32.mxu0 %vm8646_vm0, %v8645_v0 }
0x23f8   :  { %v8131_v19 = vpop.f32.mrf.mxu0 }
0x23f9   :  { %8132 = vmatprep.subr.mxu1 %v8131_v19 }
0x23fa   :  { %v4430_v20 = vpop.f32.mrf.mxu0  ;;  %8133 = vmatpush3.msra.mxu1 %v8131_v19  ;;  %v4885_v19 = vld [vmem:[#allocation2 + $0x280] sm:$0xff] }
0x23fb   :  { %8134 = vmatprep.subr.mxu1 %v4430_v20 }
0x23fc   :  { %8135 = vmatpush3.msra.mxu1 %v4430_v20  ;;  %v6594_v20 = vld [vmem:[%s10122_s2 + $0x9] ss:$0 sm:$0xff] }
0x23fd   :  { %8137 = vmatmul.mubr.msk.f32.vlgmr.msra.gmra.mxu1 %vm355_vm4, %v6565_v21  ;;  %8139 = vmatprep.subr.mxu1 %v6585_v52 }
0x23fe   :  { %8140 = vmatpush3.msra.mxu1 %v6585_v52 }
0x23ff   :  { %8141 = vmatprep.subr.mxu1 %v6584_v54 }
0x2400   :  { %8142 = vmatpush3.msra.mxu1 %v6584_v54 }
0x2401   :  { %8143 = vmatprep.subr.mxu1 %v6583_v15 }
0x2402   :  { %8144 = vmatpush3.msra.mxu1 %v6583_v15 }
0x2403   :  { %8145 = vmatprep.subr.mxu1 %v6582_v16 }
0x2404   :  { %8146 = vmatpush3.msra.mxu1 %v6582_v16 }
0x2405   :  { %8147 = vmatprep.subr.mxu1 %v6581_v24 }
0x2406   :  { %8148 = vmatpush3.msra.mxu1 %v6581_v24 }
0x2407   :  { %8149 = vmatprep.subr.mxu1 %v6580_v25 }
0x2408   :  { %8150 = vmatpush3.msra.mxu1 %v6580_v25  ;;  %v6598_v25 = vld [vmem:[%s10124_s4 + $0x120] sm:$0xff] }
0x2409   :  { %8151 = vmatprep.subr.mxu1 %v6579_v26 }
0x240a   :  { %8152 = vmatpush3.msra.mxu1 %v6579_v26 }
0x240b   :  { %8153 = vmatprep.subr.mxu1 %v6578_v27 }
0x240c   :  { %8154 = vmatpush3.msra.mxu1 %v6578_v27 }
0x240d   :  { %8155 = vmatprep.subr.mxu1 %v6577_v28 }
0x240e   :  { %8156 = vmatpush3.msra.mxu1 %v6577_v28  ;;  %v6599_v28 = vld [vmem:[%s10124_s4 + $0x128] sm:$0xff] }
0x240f   :  { %8157 = vmatprep.subr.mxu1 %v6576_v29 }
0x2410   :  { %8158 = vmatpush3.msra.mxu1 %v6576_v29  ;;  %v5076_v29 = vld [vmem:[#allocation2 + $0x2f8] sm:$0xff] }
0x2411   :  { %8159 = vmatprep.subr.mxu1 %v6575_v30 }
0x2412   :  { %8160 = vmatpush3.msra.mxu1 %v6575_v30  ;;  %v5075_v30 = vld [vmem:[#allocation2 + $0x2f0] sm:$0xff] }
0x2413   :  { %8161 = vmatprep.subr.mxu1 %v6574_v32 }
0x2414   :  { %8162 = vmatpush3.msra.mxu1 %v6574_v32  ;;  %v5074_v32 = vld [vmem:[#allocation2 + $0x2e8] sm:$0xff] }
0x2415   :  { %8163 = vmatprep.subr.mxu1 %v6573_v33 }
0x2416   :  { %8164 = vmatpush3.msra.mxu1 %v6573_v33  ;;  %v5073_v33 = vld [vmem:[#allocation2 + $0x2e0] sm:$0xff] }
0x2417   :  { %8165 = vmatprep.subr.mxu1 %v6572_v34 }
0x2418   :  { %8166 = vmatpush3.msra.mxu1 %v6572_v34  ;;  %v5072_v34 = vld [vmem:[#allocation2 + $0x2d8] sm:$0xff] }
0x2419   :  { %8167 = vmatprep.subr.mxu1 %v6571_v35 }
0x241a   :  { %8168 = vmatpush3.msra.mxu1 %v6571_v35  ;;  %v5071_v35 = vld [vmem:[#allocation2 + $0x2d0] sm:$0xff] }
0x241b   :  { %8169 = vmatprep.subr.mxu1 %v6570_v36 }
0x241c   :  { %8170 = vmatpush3.msra.mxu1 %v6570_v36  ;;  %v5070_v36 = vld [vmem:[#allocation2 + $0x2c8] sm:$0xff] }
0x24bd   :  { %v8138_v38 = vpop.f32.mrf.mxu1 }
0x24be   :  { %v4523_v39 = vadd.f32 %v8138_v38, %v6567_v37  ;;  %v6603_v38 = vld [vmem:[%s10122_s2 + $0xa] ss:$0 sm:$0xff] }
0x24bf   :  { %v4517_v40 = vpop.f32.mrf.mxu1 }
0x24c0   :  { %v4518_v41 = vadd.f32 %v6567_v37, %v4517_v40  ;;  %8557 = vtanh.f32 %v4523_v39  ;;  %v5069_v37 = vld [vmem:[#allocation2 + $0x2c0] sm:$0xff] }
0x24c2   :  { %8559 = vtanh.f32 %v4518_v41 }
0x24cd   :  { %v8558_v44 = vpop.eup %8557 }
0x24ce   :  { %v4529_v47 = vadd.f32 %v8558_v44, %v9635_v43  ;;  %v4711_v43 = vld [vmem:[#allocation2 + $0x268] sm:$0xff] }
0x24cf   :  { %v8560_v45 = vpop.eup %8559 }
0x24d0   :  { %v4528_v46 = vadd.f32 %v8560_v45, %v9632_v42  ;;  %v4712_v42 = vld [vmem:[#allocation2 + $0x270] sm:$0xff] }
0x24d2   :  { %8171 = vmatprep.mubr.f32.mxu1 %v4528_v46 }
0x24d3   :  { %8172 = vmatmul.mubr.f32.vlgmr.msra.gmra.mxu1 %v4529_v47  ;;  %v6606_v47 = vld [vmem:[%s10124_s4 + $0x130] sm:$0xff] }
0x24d4   :  { %8202 = vmatprep.mubr.msk.f32.mxu1 %vm167_vm2, %v6590_v6 }
0x2593   :  { %v8173_v48 = vpop.f32.mrf.mxu1 }
0x2594   :  { %8175 = vmatpush3.msra.mxu0 %v8173_v48 }
0x2595   :  { %v4617_v50 = vpop.f32.mrf.mxu1  ;;  %8176 = vmatprep.subr.mxu0 %v8645_v0 }
0x2596   :  { %8177 = vmatpush3.msra.mxu0 %v4617_v50  ;;  %v6607_v50 = vld [vmem:[%s10124_s4 + $0x138] sm:$0xff] }
0x2597   :  { %8179 = vmatmul.mubr.msk.f32.vlgmr.msra.gmra.mxu0 %vm355_vm4, %v6586_v49  ;;  %8181 = vmatprep.subr.mxu0 %v8645_v0 }
0x2598   :  { %8182 = vmatpush3.msra.mxu0 %v4713_v51  ;;  %8197 = vmatprep.mubr.msk.f32.mxu0 %vm8646_vm0, %v8645_v0  ;;  %v6611_v51 = vld [vmem:[%s10122_s2 + $0xb] ss:$0 sm:$0xff] }
0x2599   :  { %8183 = vmatprep.subr.mxu0 %v8645_v0 }
0x259a   :  { %8184 = vmatpush3.msra.mxu0 %v4712_v42 }
0x259b   :  { %8185 = vmatprep.subr.mxu0 %v8645_v0 }
0x259c   :  { %8186 = vmatpush3.msra.mxu0 %v4711_v43 }
0x259d   :  { %8187 = vmatprep.subr.mxu0 %v8645_v0 }
0x259e   :  { %8188 = vmatpush3.msra.mxu0 %v4710_v53 }
0x259f   :  { %8189 = vmatprep.subr.mxu0 %v8645_v0 }
0x25a0   :  { %8190 = vmatpush3.msra.mxu0 %v4709_v55 }
0x25a1   :  { %8191 = vmatprep.subr.mxu0 %v8645_v0 }
0x25a2   :  { %8192 = vmatpush3.msra.mxu0 %v4708_v57 }
0x25a3   :  { %8193 = vmatprep.subr.mxu0 %v8645_v0 }
0x25a4   :  { %8194 = vmatpush3.msra.mxu0 %v4707_v59 }
0x25a5   :  { %8195 = vmatprep.subr.mxu0 %v8645_v0 }
0x25a6   :  { %8196 = vmatpush3.msra.mxu0 %v4706_v61 }
0x2657   :  { %v4701_v2 = vpop.f32.mrf.mxu0 }
0x2658   :  { %v9780_v4 = vadd.f32 %v6588_v63, %v4701_v2  ;;  %v6616_v2 = vld [vmem:[%s10124_s4 + $0x140] sm:$0xff] }
0x2659   :  { %v8180_v5 = vpop.f32.mrf.mxu0 }
0x265a   :  { %8198 = vmatmul.mubr.msk.f32.vlgmr.msra.gmra.mxu0 %vm87_vm1, %v9780_v4 }
0x265b   :  { %8228 = vmatprep.mubr.msk.f32.mxu0 %vm355_vm4, %v6598_v25 }
0x271a   :  { %v4788_v7 = vpop.f32.mrf.mxu0 }
0x271b   :  { %8200 = vmatprep.subr.msk.mxu1 %vm174_vm3, %v4788_v7 }
0x271c   :  { %v8199_v9 = vpop.f32.mrf.mxu0  ;;  %8201 = vmatpush3.msk.msra.mxu1 %vm174_vm3, %v4788_v7  ;;  %v6617_v7 = vld [vmem:[%s10124_s4 + $0x148] sm:$0xff] }
0x271d   :  { %8203 = vmatmul.mubr.msk.f32.vlgmr.msra.gmra.mxu1 %vm167_vm2, %v6591_v8  ;;  %8205 = vmatprep.subr.mxu1 %v4892_v10  ;;  %v6639_v8 = vld [vmem:[%s10126_s6 + $0x4f8] sm:$0xff]  ;;  %v6638_v9 = vld [vmem:[%s10126_s6 + $0x4f0] sm:$0xff] }
0x271e   :  { %8206 = vmatpush3.msra.mxu1 %v4892_v10  ;;  %v6637_v10 = vld [vmem:[%s10126_s6 + $0x4e8] sm:$0xff] }
0x271f   :  { %8207 = vmatprep.subr.mxu1 %v4891_v11 }
0x2720   :  { %8208 = vmatpush3.msra.mxu1 %v4891_v11  ;;  %v6636_v11 = vld [vmem:[%s10126_s6 + $0x4e0] sm:$0xff] }
0x2721   :  { %8209 = vmatprep.subr.mxu1 %v4890_v12 }
0x2722   :  { %8210 = vmatpush3.msra.mxu1 %v4890_v12  ;;  %v6635_v12 = vld [vmem:[%s10126_s6 + $0x4d8] sm:$0xff] }
0x2723   :  { %8211 = vmatprep.subr.mxu1 %v4889_v13 }
0x2724   :  { %8212 = vmatpush3.msra.mxu1 %v4889_v13  ;;  %v6634_v13 = vld [vmem:[%s10126_s6 + $0x4d0] sm:$0xff] }
0x2725   :  { %8213 = vmatprep.subr.mxu1 %v4888_v14 }
0x2726   :  { %8214 = vmatpush3.msra.mxu1 %v4888_v14  ;;  %v6633_v14 = vld [vmem:[%s10126_s6 + $0x4c8] sm:$0xff] }
0x2727   :  { %8215 = vmatprep.subr.mxu1 %v4887_v17 }
0x2728   :  { %8216 = vmatpush3.msra.mxu1 %v4887_v17  ;;  %v6632_v17 = vld [vmem:[%s10126_s6 + $0x4c0] sm:$0xff] }
0x2729   :  { %8217 = vmatprep.subr.mxu1 %v4886_v18 }
0x272a   :  { %8218 = vmatpush3.msra.mxu1 %v4886_v18  ;;  %v6631_v18 = vld [vmem:[%s10126_s6 + $0x4b8] sm:$0xff] }
0x272b   :  { %8219 = vmatprep.subr.mxu1 %v4885_v19 }
0x272c   :  { %8220 = vmatpush3.msra.mxu1 %v4885_v19  ;;  %v6630_v19 = vld [vmem:[%s10126_s6 + $0x4b0] sm:$0xff] }
0x27dd   :  { %v8204_v21 = vpop.f32.mrf.mxu1 }
0x27de   :  { %v4879_v52 = vadd.f32 %v8204_v21, %v6594_v20  ;;  %v6628_v21 = vld [vmem:[%s10126_s6 + $0x4a0] sm:$0xff] }
0x27df   :  { %v4873_v54 = vpop.f32.mrf.mxu1 }
0x27e0   :  { %v4874_v15 = vadd.f32 %v6594_v20, %v4873_v54  ;;  %v6629_v20 = vld [vmem:[%s10126_s6 + $0x4a8] sm:$0xff]  ;;  %v6626_v54 = vld [vmem:[%s10126_s6 + $0x490] sm:$0xff] }
0x27e2   :  { %8561 = vtanh.f32 %v4874_v15  ;;  %v6625_v15 = vld [vmem:[%s10126_s6 + $0x488] sm:$0xff] }
0x27e3   :  { %8563 = vtanh.f32 %v4879_v52  ;;  %v6627_v52 = vld [vmem:[%s10126_s6 + $0x498] sm:$0xff] }
0x27ef   :  { %v9797_v16 = vpop.eup %8561 }
0x27f0   :  { %v9799_v24 = vpop.eup %8563  ;;  %8221 = vmatprep.mubr.msk.f32.mxu1 %vm87_vm1, %v9797_v16 }
0x27f1   :  { %8222 = vmatmul.mubr.msk.f32.vlgmr.msra.gmra.mxu1 %vm87_vm1, %v9799_v24 }
0x27f2   :  { %8254 = vmatprep.mubr.msk.f32.mxu1 %vm355_vm4, %v6606_v47  ;;  %v6654_v47 = vld [vmem:[%s10126_s6 + $0x540] sm:$0xff] }
0x28b1   :  { %v8223_v26 = vpop.f32.mrf.mxu1 }
0x28b2   :  { %8224 = vmatprep.subr.mxu0 %v8223_v26 }
0x28b3   :  { %v4970_v27 = vpop.f32.mrf.mxu1  ;;  %8225 = vmatpush3.msra.mxu0 %v8223_v26  ;;  %v6621_v26 = vld [vmem:[%s10127_s7 + $0xc] ss:$0 sm:$0xff] }
0x28b4   :  { %8226 = vmatprep.subr.mxu0 %v4970_v27 }
0x28b5   :  { %8227 = vmatpush3.msra.mxu0 %v4970_v27 }
0x28b6   :  { %8229 = vmatmul.mubr.msk.f32.vlgmr.msra.gmra.mxu0 %vm355_vm4, %v6599_v28  ;;  %8231 = vmatprep.subr.mxu0 %v5076_v29 }
0x28b7   :  { %8232 = vmatpush3.msra.mxu0 %v5076_v29 }
0x28b8   :  { %8233 = vmatprep.subr.mxu0 %v5075_v30 }
0x28b9   :  { %8234 = vmatpush3.msra.mxu0 %v5075_v30 }
0x28ba   :  { %8235 = vmatprep.subr.mxu0 %v5074_v32 }
0x28bb   :  { %8236 = vmatpush3.msra.mxu0 %v5074_v32 }
0x28bc   :  { %8237 = vmatprep.subr.mxu0 %v5073_v33 }
0x28bd   :  { %8238 = vmatpush3.msra.mxu0 %v5073_v33 }
0x28be   :  { %8239 = vmatprep.subr.mxu0 %v5072_v34 }
0x28bf   :  { %8240 = vmatpush3.msra.mxu0 %v5072_v34  ;;  %v6640_v34 = vld [vmem:[%s10124_s4 + $0x150] sm:$0xff] }
0x28c0   :  { %8241 = vmatprep.subr.mxu0 %v5071_v35 }
0x28c1   :  { %8242 = vmatpush3.msra.mxu0 %v5071_v35 }
0x28c2   :  { %8243 = vmatprep.subr.mxu0 %v5070_v36 }
0x28c3   :  { %8244 = vmatpush3.msra.mxu0 %v5070_v36 }
0x28c4   :  { %8245 = vmatprep.subr.mxu0 %v5069_v37 }
0x28c5   :  { %8246 = vmatpush3.msra.mxu0 %v5069_v37  ;;  %v6641_v37 = vld [vmem:[%s10124_s4 + $0x158] sm:$0xff] }
0x2976   :  { %v8230_v39 = vpop.f32.mrf.mxu0 }
0x2977   :  { %v5063_v40 = vadd.f32 %v8230_v39, %v6603_v38  ;;  %v6660_v39 = vld [vmem:[%s10126_s6 + $0x570] sm:$0xff] }
0x2978   :  { %v5057_v41 = vpop.f32.mrf.mxu0 }
0x2979   :  { %v5058_v44 = vadd.f32 %v6603_v38, %v5057_v41  ;;  %v6661_v38 = vld [vmem:[%s10126_s6 + $0x578] sm:$0xff]  ;;  %v6658_v41 = vld [vmem:[%s10126_s6 + $0x560] sm:$0xff] }
0x297b   :  { %8565 = vtanh.f32 %v5058_v44  ;;  %v6657_v44 = vld [vmem:[%s10126_s6 + $0x558] sm:$0xff] }
0x297c   :  { %8567 = vtanh.f32 %v5063_v40  ;;  %v6659_v40 = vld [vmem:[%s10126_s6 + $0x568] sm:$0xff] }
0x2988   :  { %v8566_v45 = vpop.eup %8565 }
0x2989   :  { %v8568_v46 = vpop.eup %8567  ;;  %8247 = vmatprep.mubr.msk.f32.mxu0 %vm87_vm1, %v8566_v45  ;;  %v6656_v45 = vld [vmem:[%s10126_s6 + $0x550] sm:$0xff] }
0x298a   :  { %8248 = vmatmul.mubr.msk.f32.vlgmr.msra.gmra.mxu0 %vm87_vm1, %v8568_v46  ;;  %v6655_v46 = vld [vmem:[%s10126_s6 + $0x548] sm:$0xff] }
0x2a4a   :  { %v8249_v48 = vpop.f32.mrf.mxu0 }
0x2a4b   :  { %8250 = vmatprep.subr.mxu1 %v8249_v48 }
0x2a4c   :  { %v5154_v49 = vpop.f32.mrf.mxu0  ;;  %8251 = vmatpush3.msra.mxu1 %v8249_v48  ;;  %v6653_v48 = vld [vmem:[%s10126_s6 + $0x538] sm:$0xff] }
0x2a4d   :  { %8252 = vmatprep.subr.mxu1 %v5154_v49 }
0x2a4e   :  { %8253 = vmatpush3.msra.mxu1 %v5154_v49  ;;  %v6652_v49 = vld [vmem:[%s10126_s6 + $0x530] sm:$0xff] }
0x2a4f   :  { %8255 = vmatmul.mubr.msk.f32.vlgmr.msra.gmra.mxu1 %vm355_vm4, %v6607_v50  ;;  %8257 = vmatprep.subr.mxu1 %v9468_v56  ;;  %v6651_v50 = vld [vmem:[%s10126_s6 + $0x528] sm:$0xff] }
0x2a50   :  { %8258 = vmatpush3.msra.mxu1 %v9468_v56  ;;  %v5343_v56 = vld [vmem:[#allocation4 + $0xf8] sm:$0xff] }
0x2a51   :  { %8259 = vmatprep.subr.mxu1 %v9472_v58  ;;  %8276 = vmatprep.subr.mxu0 %v5343_v56 }
0x2a52   :  { %8260 = vmatpush3.msra.mxu1 %v9472_v58  ;;  %v5342_v58 = vld [vmem:[#allocation4 + $0xf0] sm:$0xff]  ;;  %8277 = vmatpush3.msra.mxu0 %v5343_v56  ;;  %v6650_v56 = vld [vmem:[%s10126_s6 + $0x520] sm:$0xff] }
0x2a53   :  { %8261 = vmatprep.subr.mxu1 %v9476_v60  ;;  %8278 = vmatprep.subr.mxu0 %v5342_v58 }
0x2a54   :  { %8262 = vmatpush3.msra.mxu1 %v9476_v60  ;;  %v5341_v60 = vld [vmem:[#allocation4 + $0xe8] sm:$0xff]  ;;  %8279 = vmatpush3.msra.mxu0 %v5342_v58  ;;  %v6649_v58 = vld [vmem:[%s10126_s6 + $0x518] sm:$0xff] }
0x2a55   :  { %8263 = vmatprep.subr.mxu1 %v9480_v62  ;;  %8280 = vmatprep.subr.mxu0 %v5341_v60 }
0x2a56   :  { %8264 = vmatpush3.msra.mxu1 %v9480_v62  ;;  %v5340_v62 = vld [vmem:[#allocation4 + $0xe0] sm:$0xff]  ;;  %8281 = vmatpush3.msra.mxu0 %v5341_v60  ;;  %v6648_v60 = vld [vmem:[%s10126_s6 + $0x510] sm:$0xff] }
0x2a57   :  { %8265 = vmatprep.subr.mxu1 %v9484_v1  ;;  %8282 = vmatprep.subr.mxu0 %v5340_v62 }
0x2a58   :  { %8266 = vmatpush3.msra.mxu1 %v9484_v1  ;;  %v5339_v1 = vld [vmem:[#allocation4 + $0xd8] sm:$0xff]  ;;  %8283 = vmatpush3.msra.mxu0 %v5340_v62  ;;  %v6647_v62 = vld [vmem:[%s10126_s6 + $0x508] sm:$0xff] }
0x2a59   :  { %8267 = vmatprep.subr.mxu1 %v9488_v3  ;;  %8284 = vmatprep.subr.mxu0 %v5339_v1 }
0x2a5a   :  { %8268 = vmatpush3.msra.mxu1 %v9488_v3  ;;  %v5338_v3 = vld [vmem:[#allocation4 + $0xd0] sm:$0xff]  ;;  %8285 = vmatpush3.msra.mxu0 %v5339_v1  ;;  %v6646_v1 = vld [vmem:[%s10126_s6 + $0x500] sm:$0xff] }
0x2a5b   :  { %8269 = vmatprep.subr.mxu1 %v9492_v22  ;;  %8286 = vmatprep.subr.mxu0 %v5338_v3 }
0x2a5c   :  { %8270 = vmatpush3.msra.mxu1 %v9492_v22  ;;  %v5337_v22 = vld [vmem:[#allocation4 + $0xc8] sm:$0xff]  ;;  %8287 = vmatpush3.msra.mxu0 %v5338_v3 }
0x2a5d   :  { %8271 = vmatprep.subr.mxu1 %v9496_v23  ;;  %8288 = vmatprep.subr.mxu0 %v5337_v22  ;;  %v6643_v3 = vld [vmem:[%s10127_s7 + $0xd] ss:$0 sm:$0xff] }
0x2a5e   :  { %8272 = vmatpush3.msra.mxu1 %v9496_v23  ;;  %v5336_v23 = vld [vmem:[#allocation4 + $0xc0] sm:$0xff]  ;;  %8289 = vmatpush3.msra.mxu0 %v5337_v22 }
0x2a5f   :  { %8290 = vmatprep.subr.mxu0 %v5336_v23 }
0x2a60   :  { %8291 = vmatpush3.msra.mxu0 %v5336_v23 }
0x2b0f   :  { %v8256_v42 = vpop.f32.mrf.mxu1 }
0x2b10   :  { %v5247_v43 = vadd.f32 %v8256_v42, %v6611_v51 }
0x2b11   :  { %v5241_v53 = vpop.f32.mrf.mxu1 }
0x2b12   :  { %v5242_v55 = vadd.f32 %v6611_v51, %v5241_v53  ;;  %8569 = vtanh.f32 %v5247_v43 }
0x2b14   :  { %8571 = vtanh.f32 %v5242_v55 }
0x2b1f   :  { %v8570_v57 = vpop.eup %8569 }
0x2b20   :  { %v5253_v63 = vadd.f32 %v8570_v57, %v9799_v24 }
0x2b21   :  { %v8572_v59 = vpop.eup %8571 }
0x2b22   :  { %v5252_v61 = vadd.f32 %v8572_v59, %v9797_v16  ;;  %v6624_v16 = vld [vmem:[%s10126_s6 + $0x480] sm:$0xff] }
0x2b23   :  { %v6662_v59 = vld [vmem:[%s10124_s4 + $0x160] sm:$0xff] }
0x2b24   :  { %8273 = vmatprep.mubr.msk.f32.mxu1 %vm87_vm1, %v5252_v61  ;;  %8292 = vmatprep.mubr.msk.f32.mxu0 %vm87_vm1, %v5252_v61 }
0x2b25   :  { %8274 = vmatmul.mubr.msk.f32.vlgmr.msra.gmra.mxu1 %vm87_vm1, %v5253_v63  ;;  %8293 = vmatmul.mubr.msk.f32.vlgmr.msra.gmra.mxu0 %vm87_vm1, %v5253_v63 }
0x2b26   :  { %8299 = vmatprep.mubr.msk.f32.mxu1 %vm355_vm4, %v6616_v2  ;;  %8341 = vmatprep.mubr.msk.f32.mxu0 %vm355_vm4, %v6640_v34  ;;  %v6663_v2 = vld [vmem:[%s10124_s4 + $0x168] sm:$0xff]  ;;  %v6704_v34 = vld [vmem:[%s10128_s8 + $0x1f0] sm:$0xff] }
0x2be5   :  { %v8294_v5 = vpop.f32.mrf.mxu0  ;;  %v9907_v24 = vpop.f32.mrf.mxu1 }
0x2be6   :  { %8295 = vmatprep.subr.mxu1 %v8294_v5 }
0x2be7   :  { %v5415_v6 = vpop.f32.mrf.mxu0  ;;  %8296 = vmatpush3.msra.mxu1 %v8294_v5  ;;  %v9909_v25 = vpop.f32.mrf.mxu1  ;;  %v6683_v5 = vld [vmem:[%s10126_s6 + $0x5f8] sm:$0xff] }
0x2be8   :  { %8297 = vmatprep.subr.mxu1 %v5415_v6 }
0x2be9   :  { %8298 = vmatpush3.msra.mxu1 %v5415_v6  ;;  %v6682_v6 = vld [vmem:[%s10126_s6 + $0x5f0] sm:$0xff] }
0x2bea   :  { %8300 = vmatmul.mubr.msk.f32.vlgmr.msra.gmra.mxu1 %vm355_vm4, %v6617_v7  ;;  %8302 = vmatprep.subr.mxu1 %v6639_v8  ;;  %v6681_v7 = vld [vmem:[%s10126_s6 + $0x5e8] sm:$0xff] }
0x2beb   :  { %8303 = vmatpush3.msra.mxu1 %v6639_v8  ;;  %v6680_v8 = vld [vmem:[%s10126_s6 + $0x5e0] sm:$0xff] }
0x2bec   :  { %8304 = vmatprep.subr.mxu1 %v6638_v9 }
0x2bed   :  { %8305 = vmatpush3.msra.mxu1 %v6638_v9  ;;  %v6679_v9 = vld [vmem:[%s10126_s6 + $0x5d8] sm:$0xff] }
0x2bee   :  { %8306 = vmatprep.subr.mxu1 %v6637_v10 }
0x2bef   :  { %8307 = vmatpush3.msra.mxu1 %v6637_v10  ;;  %v6678_v10 = vld [vmem:[%s10126_s6 + $0x5d0] sm:$0xff] }
0x2bf0   :  { %8308 = vmatprep.subr.mxu1 %v6636_v11 }
0x2bf1   :  { %8309 = vmatpush3.msra.mxu1 %v6636_v11  ;;  %v6677_v11 = vld [vmem:[%s10126_s6 + $0x5c8] sm:$0xff] }
0x2bf2   :  { %8310 = vmatprep.subr.mxu1 %v6635_v12 }
0x2bf3   :  { %8311 = vmatpush3.msra.mxu1 %v6635_v12  ;;  %v6676_v12 = vld [vmem:[%s10126_s6 + $0x5c0] sm:$0xff] }
0x2bf4   :  { %8312 = vmatprep.subr.mxu1 %v6634_v13 }
0x2bf5   :  { %8313 = vmatpush3.msra.mxu1 %v6634_v13  ;;  %v6675_v13 = vld [vmem:[%s10126_s6 + $0x5b8] sm:$0xff] }
0x2bf6   :  { %8314 = vmatprep.subr.mxu1 %v6633_v14 }
0x2bf7   :  { %8315 = vmatpush3.msra.mxu1 %v6633_v14  ;;  %v6674_v14 = vld [vmem:[%s10126_s6 + $0x5b0] sm:$0xff] }
0x2bf8   :  { %8316 = vmatprep.subr.mxu1 %v6632_v17 }
0x2bf9   :  { %8317 = vmatpush3.msra.mxu1 %v6632_v17  ;;  %v6673_v17 = vld [vmem:[%s10126_s6 + $0x5a8] sm:$0xff] }
0x2bfa   :  { %8318 = vmatprep.subr.mxu1 %v6631_v18 }
0x2bfb   :  { %8319 = vmatpush3.msra.mxu1 %v6631_v18  ;;  %v6672_v18 = vld [vmem:[%s10126_s6 + $0x5a0] sm:$0xff] }
0x2bfc   :  { %8320 = vmatprep.subr.mxu1 %v6630_v19 }
0x2bfd   :  { %8321 = vmatpush3.msra.mxu1 %v6630_v19  ;;  %v6671_v19 = vld [vmem:[%s10126_s6 + $0x598] sm:$0xff] }
0x2bfe   :  { %8322 = vmatprep.subr.mxu1 %v6629_v20 }
0x2bff   :  { %8323 = vmatpush3.msra.mxu1 %v6629_v20  ;;  %v6670_v20 = vld [vmem:[%s10126_s6 + $0x590] sm:$0xff] }
0x2c00   :  { %8324 = vmatprep.subr.mxu1 %v6628_v21 }
0x2c01   :  { %8325 = vmatpush3.msra.mxu1 %v6628_v21  ;;  %v6669_v21 = vld [vmem:[%s10126_s6 + $0x588] sm:$0xff] }
0x2c02   :  { %8326 = vmatprep.subr.mxu1 %v6627_v52 }
0x2c03   :  { %8327 = vmatpush3.msra.mxu1 %v6627_v52  ;;  %v6668_v52 = vld [vmem:[%s10126_s6 + $0x580] sm:$0xff] }
0x2c04   :  { %8328 = vmatprep.subr.mxu1 %v6626_v54 }
0x2c05   :  { %8329 = vmatpush3.msra.mxu1 %v6626_v54  ;;  %v6665_v54 = vld [vmem:[%s10127_s7 + $0xe] ss:$0 sm:$0xff] }
0x2c06   :  { %8330 = vmatprep.subr.mxu1 %v6625_v15 }
0x2c07   :  { %8331 = vmatpush3.msra.mxu1 %v6625_v15 }
0x2c08   :  { %8332 = vmatprep.subr.mxu1 %v6624_v16 }
0x2c09   :  { %8333 = vmatpush3.msra.mxu1 %v6624_v16 }
0x2caa   :  { %v8301_v27 = vpop.f32.mrf.mxu1 }
0x2cab   :  { %v5508_v28 = vadd.f32 %v8301_v27, %v6621_v26 }
0x2cac   :  { %v5502_v29 = vpop.f32.mrf.mxu1 }
0x2cad   :  { %v5503_v30 = vadd.f32 %v6621_v26, %v5502_v29 }
0x2caf   :  { %8573 = vtanh.f32 %v5503_v30 }
0x2cb0   :  { %8575 = vtanh.f32 %v5508_v28  ;;  %v6684_v28 = vld [vmem:[%s10124_s4 + $0x170] sm:$0xff] }
0x2cbc   :  { %v8574_v32 = vpop.eup %8573 }
0x2cbd   :  { %v8576_v33 = vpop.eup %8575  ;;  %8334 = vmatprep.mubr.f32.mxu1 %v8574_v32  ;;  %v6685_v32 = vld [vmem:[%s10124_s4 + $0x178] sm:$0xff] }
0x2cbe   :  { %8335 = vmatmul.mubr.f32.vlgmr.msra.gmra.mxu1 %v8576_v33  ;;  %v6705_v33 = vld [vmem:[%s10128_s8 + $0x1f8] sm:$0xff] }
0x2cbf   :  { %8383 = vmatprep.mubr.msk.f32.mxu1 %vm355_vm4, %v6662_v59 }
0x2d7e   :  { %v8336_v35 = vpop.f32.mrf.mxu1 }
0x2d7f   :  { %8337 = vmatprep.subr.mxu0 %v8336_v35 }
0x2d80   :  { %v5601_v36 = vpop.f32.mrf.mxu1  ;;  %8338 = vmatpush3.msra.mxu0 %v8336_v35  ;;  %v6703_v35 = vld [vmem:[%s10128_s8 + $0x1e8] sm:$0xff] }
0x2d81   :  { %8339 = vmatprep.subr.mxu0 %v5601_v36 }
0x2d82   :  { %8340 = vmatpush3.msra.mxu0 %v5601_v36  ;;  %v6702_v36 = vld [vmem:[%s10128_s8 + $0x1e0] sm:$0xff] }
0x2d83   :  { %8342 = vmatmul.mubr.msk.f32.vlgmr.msra.gmra.mxu0 %vm355_vm4, %v6641_v37  ;;  %8344 = vmatprep.subr.mxu0 %v6661_v38  ;;  %v6701_v37 = vld [vmem:[%s10128_s8 + $0x1d8] sm:$0xff] }
0x2d84   :  { %8345 = vmatpush3.msra.mxu0 %v6661_v38  ;;  %v6700_v38 = vld [vmem:[%s10128_s8 + $0x1d0] sm:$0xff] }
0x2d85   :  { %8346 = vmatprep.subr.mxu0 %v6660_v39 }
0x2d86   :  { %8347 = vmatpush3.msra.mxu0 %v6660_v39  ;;  %v6699_v39 = vld [vmem:[%s10128_s8 + $0x1c8] sm:$0xff] }
0x2d87   :  { %8348 = vmatprep.subr.mxu0 %v6659_v40 }
0x2d88   :  { %8349 = vmatpush3.msra.mxu0 %v6659_v40  ;;  %v6698_v40 = vld [vmem:[%s10128_s8 + $0x1c0] sm:$0xff] }
0x2d89   :  { %8350 = vmatprep.subr.mxu0 %v6658_v41 }
0x2d8a   :  { %8351 = vmatpush3.msra.mxu0 %v6658_v41  ;;  %v6697_v41 = vld [vmem:[%s10128_s8 + $0x1b8] sm:$0xff] }
0x2d8b   :  { %8352 = vmatprep.subr.mxu0 %v6657_v44 }
0x2d8c   :  { %8353 = vmatpush3.msra.mxu0 %v6657_v44  ;;  %v6696_v44 = vld [vmem:[%s10128_s8 + $0x1b0] sm:$0xff] }
0x2d8d   :  { %8354 = vmatprep.subr.mxu0 %v6656_v45 }
0x2d8e   :  { %8355 = vmatpush3.msra.mxu0 %v6656_v45  ;;  %v6695_v45 = vld [vmem:[%s10128_s8 + $0x1a8] sm:$0xff] }
0x2d8f   :  { %8356 = vmatprep.subr.mxu0 %v6655_v46 }
0x2d90   :  { %8357 = vmatpush3.msra.mxu0 %v6655_v46  ;;  %v6694_v46 = vld [vmem:[%s10128_s8 + $0x1a0] sm:$0xff] }
0x2d91   :  { %8358 = vmatprep.subr.mxu0 %v6654_v47 }
0x2d92   :  { %8359 = vmatpush3.msra.mxu0 %v6654_v47  ;;  %v6693_v47 = vld [vmem:[%s10128_s8 + $0x198] sm:$0xff] }
0x2d93   :  { %8360 = vmatprep.subr.mxu0 %v6653_v48 }
0x2d94   :  { %8361 = vmatpush3.msra.mxu0 %v6653_v48  ;;  %v6692_v48 = vld [vmem:[%s10128_s8 + $0x190] sm:$0xff] }
0x2d95   :  { %8362 = vmatprep.subr.mxu0 %v6652_v49 }
0x2d96   :  { %8363 = vmatpush3.msra.mxu0 %v6652_v49  ;;  %v6691_v49 = vld [vmem:[%s10128_s8 + $0x188] sm:$0xff] }
0x2d97   :  { %8364 = vmatprep.subr.mxu0 %v6651_v50 }
0x2d98   :  { %8365 = vmatpush3.msra.mxu0 %v6651_v50  ;;  %v6690_v50 = vld [vmem:[%s10128_s8 + $0x180] sm:$0xff] }
0x2d99   :  { %8366 = vmatprep.subr.mxu0 %v6650_v56 }
0x2d9a   :  { %8367 = vmatpush3.msra.mxu0 %v6650_v56  ;;  %v6687_v56 = vld [vmem:[%s10127_s7 + $0xf] ss:$0 sm:$0xff] }
0x2d9b   :  { %8368 = vmatprep.subr.mxu0 %v6649_v58 }
0x2d9c   :  { %8369 = vmatpush3.msra.mxu0 %v6649_v58 }
0x2d9d   :  { %8370 = vmatprep.subr.mxu0 %v6648_v60 }
0x2d9e   :  { %8371 = vmatpush3.msra.mxu0 %v6648_v60 }
0x2d9f   :  { %8372 = vmatprep.subr.mxu0 %v6647_v62 }
0x2da0   :  { %8373 = vmatpush3.msra.mxu0 %v6647_v62 }
0x2da1   :  { %8374 = vmatprep.subr.mxu0 %v6646_v1 }
0x2da2   :  { %8375 = vmatpush3.msra.mxu0 %v6646_v1 }
0x2e43   :  { %v8343_v22 = vpop.f32.mrf.mxu0 }
0x2e44   :  { %v5694_v23 = vadd.f32 %v8343_v22, %v6643_v3 }
0x2e45   :  { %v5688_v51 = vpop.f32.mrf.mxu0 }
0x2e46   :  { %v5689_v42 = vadd.f32 %v6643_v3, %v5688_v51  ;;  %8577 = vtanh.f32 %v5694_v23 }
0x2e48   :  { %8579 = vtanh.f32 %v5689_v42 }
0x2e53   :  { %v8578_v43 = vpop.eup %8577 }
0x2e54   :  { %v9977_v57 = vadd.f32 %v8578_v43, %v9907_v24  ;;  %v6706_v43 = vld [vmem:[%s10129_s9 + $0xc] sm:$0x7] }
0x2e55   :  { %v8580_v53 = vpop.eup %8579 }
0x2e56   :  { %v9974_v55 = vadd.f32 %v8580_v53, %v9909_v25 }
0x2e58   :  { %8376 = vmatprep.mubr.f32.mxu0 %v9974_v55 }
0x2e59   :  { %8377 = vmatmul.mubr.f32.vlgmr.msra.gmra.mxu0 %v9977_v57 }
0x2e5a   :  { %8425 = vmatprep.mubr.msk.f32.mxu0 %vm355_vm4, %v6684_v28 }
0x2f19   :  { %v8378_v61 = vpop.f32.mrf.mxu0 }
0x2f1a   :  { %8379 = vmatprep.subr.mxu1 %v8378_v61 }
0x2f1b   :  { %v5789_v63 = vpop.f32.mrf.mxu0  ;;  %8380 = vmatpush3.msra.mxu1 %v8378_v61 }
0x2f1c   :  { %8381 = vmatprep.subr.mxu1 %v5789_v63 }
0x2f1d   :  { %8382 = vmatpush3.msra.mxu1 %v5789_v63  ;;  %v6251_v63 = vpop.permute.xlu0 %6250 }
0x2f1e   :  { %8384 = vmatmul.mubr.msk.f32.vlgmr.msra.gmra.mxu1 %vm355_vm4, %v6663_v2  ;;  %8386 = vmatprep.subr.mxu1 %v6683_v5 }
0x2f1f   :  { %8387 = vmatpush3.msra.mxu1 %v6683_v5  ;;  %v6257_v5 = vsel %vm87_vm1, %v9082_v31, %v6251_v63 }
0x2f20   :  { %8388 = vmatprep.subr.mxu1 %v6682_v6 }
0x2f21   :  { %8389 = vmatpush3.msra.mxu1 %v6682_v6 }
0x2f22   :  { %8390 = vmatprep.subr.mxu1 %v6681_v7 }
0x2f23   :  { %8391 = vmatpush3.msra.mxu1 %v6681_v7 }
0x2f24   :  { %8392 = vmatprep.subr.mxu1 %v6680_v8 }
0x2f25   :  { %8393 = vmatpush3.msra.mxu1 %v6680_v8 }
0x2f26   :  { %8394 = vmatprep.subr.mxu1 %v6679_v9 }
0x2f27   :  { %8395 = vmatpush3.msra.mxu1 %v6679_v9 }
0x2f28   :  { %8396 = vmatprep.subr.mxu1 %v6678_v10 }
0x2f29   :  { %8397 = vmatpush3.msra.mxu1 %v6678_v10 }
0x2f2a   :  { %8398 = vmatprep.subr.mxu1 %v6677_v11 }
0x2f2b   :  { %8399 = vmatpush3.msra.mxu1 %v6677_v11 }
0x2f2c   :  { %8400 = vmatprep.subr.mxu1 %v6676_v12 }
0x2f2d   :  { %8401 = vmatpush3.msra.mxu1 %v6676_v12 }
0x2f2e   :  { %8402 = vmatprep.subr.mxu1 %v6675_v13 }
0x2f2f   :  { %8403 = vmatpush3.msra.mxu1 %v6675_v13 }
0x2f30   :  { %8404 = vmatprep.subr.mxu1 %v6674_v14 }
0x2f31   :  { %8405 = vmatpush3.msra.mxu1 %v6674_v14 }
0x2f32   :  { %8406 = vmatprep.subr.mxu1 %v6673_v17 }
0x2f33   :  { %8407 = vmatpush3.msra.mxu1 %v6673_v17 }
0x2f34   :  { %8408 = vmatprep.subr.mxu1 %v6672_v18 }
0x2f35   :  { %8409 = vmatpush3.msra.mxu1 %v6672_v18 }
0x2f36   :  { %8410 = vmatprep.subr.mxu1 %v6671_v19 }
0x2f37   :  { %8411 = vmatpush3.msra.mxu1 %v6671_v19 }
0x2f38   :  { %8412 = vmatprep.subr.mxu1 %v6670_v20 }
0x2f39   :  { %8413 = vmatpush3.msra.mxu1 %v6670_v20 }
0x2f3a   :  { %8414 = vmatprep.subr.mxu1 %v6669_v21 }
0x2f3b   :  { %8415 = vmatpush3.msra.mxu1 %v6669_v21 }
0x2f3c   :  { %8416 = vmatprep.subr.mxu1 %v6668_v52 }
0x2f3d   :  { %8417 = vmatpush3.msra.mxu1 %v6668_v52 }
0x2f3e   :  { %8463 = vmatprep.subr.mxu1 %v8645_v0 }
0x2fde   :  { %v8385_v15 = vpop.f32.mrf.mxu1 }
0x2fdf   :  { %v5882_v16 = vadd.f32 %v8385_v15, %v6665_v54 }
0x2fe0   :  { %v5876_v24 = vpop.f32.mrf.mxu1 }
0x2fe1   :  { %v5877_v25 = vadd.f32 %v6665_v54, %v5876_v24 }
0x2fe3   :  { %8581 = vtanh.f32 %v5877_v25 }
0x2fe4   :  { %8583 = vtanh.f32 %v5882_v16 }
0x2ff0   :  { %v8582_v26 = vpop.eup %8581 }
0x2ff1   :  { %v8584_v27 = vpop.eup %8583  ;;  %8418 = vmatprep.mubr.f32.mxu1 %v8582_v26 }
0x2ff2   :  { %8419 = vmatmul.mubr.f32.vlgmr.msra.gmra.mxu1 %v8584_v27 }
0x2ff3   :  { %8467 = vmatprep.mubr.msk.f32.mxu1 %vm8646_vm0, %v8645_v0 }
0x30b2   :  { %v8420_v29 = vpop.f32.mrf.mxu1 }
0x30b3   :  { %8421 = vmatprep.subr.mxu0 %v8420_v29 }
0x30b4   :  { %v5975_v30 = vpop.f32.mrf.mxu1  ;;  %8422 = vmatpush3.msra.mxu0 %v8420_v29 }
0x30b5   :  { %8423 = vmatprep.subr.mxu0 %v5975_v30 }
0x30b6   :  { %8424 = vmatpush3.msra.mxu0 %v5975_v30 }
0x30b7   :  { %8426 = vmatmul.mubr.msk.f32.vlgmr.msra.gmra.mxu0 %vm355_vm4, %v6685_v32  ;;  %8428 = vmatprep.subr.mxu0 %v6705_v33 }
0x30b8   :  { %8429 = vmatpush3.msra.mxu0 %v6705_v33 }
0x30b9   :  { %8430 = vmatprep.subr.mxu0 %v6704_v34 }
0x30ba   :  { %8431 = vmatpush3.msra.mxu0 %v6704_v34 }
0x30bb   :  { %8432 = vmatprep.subr.mxu0 %v6703_v35 }
0x30bc   :  { %8433 = vmatpush3.msra.mxu0 %v6703_v35 }
0x30bd   :  { %8434 = vmatprep.subr.mxu0 %v6702_v36 }
0x30be   :  { %8435 = vmatpush3.msra.mxu0 %v6702_v36 }
0x30bf   :  { %8436 = vmatprep.subr.mxu0 %v6701_v37 }
0x30c0   :  { %8437 = vmatpush3.msra.mxu0 %v6701_v37 }
0x30c1   :  { %8438 = vmatprep.subr.mxu0 %v6700_v38 }
0x30c2   :  { %8439 = vmatpush3.msra.mxu0 %v6700_v38 }
0x30c3   :  { %8440 = vmatprep.subr.mxu0 %v6699_v39 }
0x30c4   :  { %8441 = vmatpush3.msra.mxu0 %v6699_v39 }
0x30c5   :  { %8442 = vmatprep.subr.mxu0 %v6698_v40 }
0x30c6   :  { %8443 = vmatpush3.msra.mxu0 %v6698_v40 }
0x30c7   :  { %8444 = vmatprep.subr.mxu0 %v6697_v41 }
0x30c8   :  { %8445 = vmatpush3.msra.mxu0 %v6697_v41 }
0x30c9   :  { %8446 = vmatprep.subr.mxu0 %v6696_v44 }
0x30ca   :  { %8447 = vmatpush3.msra.mxu0 %v6696_v44 }
0x30cb   :  { %8448 = vmatprep.subr.mxu0 %v6695_v45 }
0x30cc   :  { %8449 = vmatpush3.msra.mxu0 %v6695_v45 }
0x30cd   :  { %8450 = vmatprep.subr.mxu0 %v6694_v46 }
0x30ce   :  { %8451 = vmatpush3.msra.mxu0 %v6694_v46 }
0x30cf   :  { %8452 = vmatprep.subr.mxu0 %v6693_v47 }
0x30d0   :  { %8453 = vmatpush3.msra.mxu0 %v6693_v47 }
0x30d1   :  { %8454 = vmatprep.subr.mxu0 %v6692_v48 }
0x30d2   :  { %8455 = vmatpush3.msra.mxu0 %v6692_v48 }
0x30d3   :  { %8456 = vmatprep.subr.mxu0 %v6691_v49 }
0x30d4   :  { %8457 = vmatpush3.msra.mxu0 %v6691_v49 }
0x30d5   :  { %8458 = vmatprep.subr.mxu0 %v6690_v50 }
0x30d6   :  { %8459 = vmatpush3.msra.mxu0 %v6690_v50 }
0x3177   :  { %v8427_v58 = vpop.f32.mrf.mxu0 }
0x3178   :  { %v6068_v60 = vadd.f32 %v8427_v58, %v6687_v56 }
0x3179   :  { %v6062_v62 = vpop.f32.mrf.mxu0 }
0x317a   :  { %v6063_v1 = vadd.f32 %v6687_v56, %v6062_v62  ;;  %8585 = vtanh.f32 %v6068_v60 }
0x317c   :  { %8587 = vtanh.f32 %v6063_v1 }
0x3187   :  { %v8586_v3 = vpop.eup %8585 }
0x3188   :  { %v6074_v51 = vadd.f32 %v8586_v3, %v9977_v57 }
0x3189   :  { %v8588_v22 = vpop.eup %8587 }
0x318a   :  { %v6073_v23 = vadd.f32 %v8588_v22, %v9974_v55  ;;  %v6708_v55 = vld [vmem:[%s10130_s10 + $0x3] ss:$0 sm:$0xff] }
0x318c   :  { %8460 = vmatprep.mubr.f32.mxu0 %v6073_v23 }
0x318d   :  { %8461 = vmatmul.mubr.f32.vlgmr.msra.gmra.mxu0 %v6074_v51 }
0x324d   :  { %v8462_v42 = vpop.f32.mrf.mxu0 }
0x324e   :  { %8464 = vmatpush3.msra.mxu1 %v8462_v42 }
0x324f   :  { %v6162_v53 = vpop.f32.mrf.mxu0  ;;  %8465 = vmatprep.subr.mxu1 %v8645_v0 }
0x3250   :  { %8466 = vmatpush3.msra.mxu1 %v6162_v53 }
0x3251   :  { %8468 = vmatmul.mubr.msk.f32.vlgmr.msra.gmra.mxu1 %vm355_vm4, %v6706_v43 }
0x3311   :  { %v6246_v59 = vpop.f32.mrf.mxu1 }
0x3312   :  { %v6247_v57 = vadd.f32 %v6708_v55, %v6246_v59 }
0x3313   :  { %v8469_v61 = vpop.f32.mrf.mxu1 }
0x3314   :  { %6254 = vrot.lane.b32.xlu0 %v6247_v57, %s8647_s27 }
0x3386   :  { %v6255_v2 = vpop.permute.xlu0 %6254 }
0x3387   :  { %v6258_v0 = vsel %vm87_vm1, %v9780_v4, %v6255_v2 }
0x3388   :  { %v6261_v6 = vcombine.low %v6257_v5, %v6258_v0 }
0x338a   :  { %6263 = vst [vmem:[%s10131_s11] sm:$0x77] %v6261_v6 }
0x338b   :  { %6268 = vsyncpa [#allocation3], 1 }
0x338c   :  { %6269 = vsyncpa [#allocation5], 1 }

</bundles_post_ra>
